<compile_context>
chip_gen: v5e
topology: v5e:2x2
jax: 0.10.0
libtpu: 0.0.40
codegen_flags: <defaults>
</compile_context>

<pallas_src>
import math

import jax
import jax.numpy as jnp
from jax.experimental import pallas as pl
from jax.experimental.pallas import tpu as pltpu


def make_decoder_kernel(num_hidden, nonlinearity):
    """Kernel for one batch tile.

    Ref order: z_ref, (w_ref, b_ref) * num_hidden, wo_ref, bo_ref, out_ref.
    Weights bf16 (in, out); biases f32 (1, out); activations bf16 between
    layers with f32 accumulation / elementwise math (portable to v5e which has
    no bf16 VPU).
    """

    def kernel(z_ref, *refs):
        f32 = jnp.float32
        out_ref = refs[-1]
        wb = refs[:-1]

        h = z_ref[...].astype(jnp.bfloat16)          # bf16 activations
        for layer in range(num_hidden):
            w = wb[2 * layer][...]                    # bf16
            b = wb[2 * layer + 1][...]                # f32
            y = jnp.dot(h, w, preferred_element_type=f32) + b
            h = nonlinearity(y).astype(jnp.bfloat16)  # store activation as bf16

        wo = wb[-2][...]
        bo = wb[-1][...]
        y = jnp.dot(h, wo, preferred_element_type=f32) + bo
        out_ref[...] = jax.nn.sigmoid(y).astype(out_ref.dtype)

    return kernel


def init_linear(key, fan_in, fan_out):
    """nn.Linear-style init; W stored as (in, out), b as (1, out)."""
    kw, kb = jax.random.split(key)
    bound = 1.0 / math.sqrt(fan_in)
    w = jax.random.uniform(kw, (fan_in, fan_out), jnp.float32, -bound, bound)
    b = jax.random.uniform(kb, (1, fan_out), jnp.float32, -bound, bound)
    return w, b


def make_params(key, latent_size, hidden_sizes, output_size):
    """List of (W, b) for hidden layers followed by the output layer."""
    dims = [latent_size] + list(hidden_sizes) + [output_size]
    keys = jax.random.split(key, len(dims) - 1)
    return [init_linear(keys[i], dims[i], dims[i + 1]) for i in range(len(dims) - 1)]


def decoder_forward(z, params, *, nonlinearity=None, tile_b=None,
                    out_dtype=jnp.float32):
    """Run the Decoder forward as one pallas_call (batch-tiled grid or single block)."""
    if nonlinearity is None:
        nonlinearity = lambda v: jnp.maximum(v, 0.0)   # ReLU

    B, latent = z.shape
    num_hidden = len(params) - 1
    output_size = params[-1][0].shape[1]
    out_pad = 128 * pl.cdiv(output_size, 128)          # lane-dense output slab

    # ---- parameter packing: bf16 weights, f32 biases; pad last layer columns.
    flat = []
    for idx, (w, b) in enumerate(params):
        if idx == len(params) - 1 and out_pad != output_size:
            w = jnp.pad(w, ((0, 0), (0, out_pad - output_size)))
            b = jnp.pad(b, ((0, 0), (0, out_pad - output_size)))
        flat.append(w.astype(jnp.bfloat16))
        flat.append(b.astype(jnp.float32))

    # ---- batch tiling heuristic.
    MAX_TILE = 256   # M=256 fills v6e/v7x MXU; don't grow beyond (v5e: 128 already full)
    b16 = max(16, 16 * pl.cdiv(B, 16))                 # minimal padding, bf16 sublanes
    if tile_b is None:
        if b16 <= 16:
            tile_b = b16                                # tiny batch: one block, no grid
        else:
            # >=2 steps so the "parallel" axis feeds both v7x TensorCores.
            n_steps = max(2, pl.cdiv(b16, MAX_TILE))
            tile_b = 16 * pl.cdiv(pl.cdiv(B, n_steps), 16)
    else:
        tile_b = max(8, 8 * pl.cdiv(tile_b, 8))
    tile_b = min(tile_b, b16)
    b_pad = tile_b * pl.cdiv(B, tile_b)
    n_steps = b_pad // tile_b

    zp = z.astype(jnp.float32)
    if b_pad != B:
        zp = jnp.pad(zp, ((0, b_pad - B), (0, 0)))

    # ---- VMEM budget: weights once (Buffered(1)) + double-buffered z/out tiles
    #      + activation scratch, with headroom.  Floored at the smallest default
    #      (16 MiB, v5e) so we never shrink the compiler's own scratch budget.
    weight_bytes = sum(int(a.size) * a.dtype.itemsize for a in flat)
    io_tile_bytes = 2 * (tile_b * latent * 4 + tile_b * out_pad * 4)
    hidden_dims = [w.shape[1] for w, _ in params[:-1]]
    act_bytes = 2 * tile_b * max([latent] + hidden_dims + [out_pad]) * 4
    vmem_budget = int(1.3 * (weight_bytes + io_tile_bytes + act_bytes)) + (2 << 20)
    vmem_budget = max(vmem_budget, 16 << 20)
    vmem_budget = min(vmem_budget, 64 << 20)
    # TODO(synk): if a large decoder pushes vmem_budget past ~48 MiB (v7x), add a
    # second grid axis tiling the output/hidden dim instead of keeping all
    # weights resident.

    # ---- advisory cost for XLA's scheduler (transcendentals counts only the
    #      sigmoid; a transcendental hidden nonlinearity under-reports -- advisory).
    dims = [latent] + hidden_dims + [out_pad]
    flops = 2 * b_pad * sum(dims[i] * dims[i + 1] for i in range(len(dims) - 1))
    bytes_io = int(zp.size) * 4 + b_pad * out_pad * jnp.dtype(out_dtype).itemsize
    cost = pl.CostEstimate(flops=flops,
                           transcendentals=b_pad * out_pad,
                           bytes_accessed=weight_bytes + bytes_io)

    kernel = make_decoder_kernel(num_hidden, nonlinearity)
    out_shape = jax.ShapeDtypeStruct((b_pad, out_pad), out_dtype)

    if n_steps == 1:
        # Single batch tile: whole arrays in VMEM, no grid / pipeline overhead.
        out = pl.pallas_call(
            kernel,
            out_shape=out_shape,
            compiler_params=pltpu.CompilerParams(vmem_limit_bytes=vmem_budget),
            cost_estimate=cost,
        )(zp, *flat)
    else:
        def build(single_buffer_weights):
            pm = {"pipeline_mode": pl.Buffered(1)} if single_buffer_weights else {}
            z_spec = pl.BlockSpec((tile_b, latent), lambda i: (i, 0))
            out_spec = pl.BlockSpec((tile_b, out_pad), lambda i: (i, 0))
            # Weights/biases: full-array blocks, constant index_map -> fetched
            # once, VMEM-resident across all batch steps; single-buffered.
            w_specs = [pl.BlockSpec(a.shape, lambda i: (0, 0), **pm) for a in flat]
            return pl.pallas_call(
                kernel,
                out_shape=out_shape,
                grid=(n_steps,),
                in_specs=[z_spec] + w_specs,
                out_specs=out_spec,
                compiler_params=pltpu.CompilerParams(
                    dimension_semantics=("parallel",),   # shards batch across v7x TCs
                    vmem_limit_bytes=vmem_budget),
                cost_estimate=cost,
            )

        try:
            out = build(True)(zp, *flat)
        except Exception:
            # Fallback: default (double) buffering if Buffered(1) is rejected.
            out = build(False)(zp, *flat)

    return out[:B, :output_size]


def decoder_reference(z, params):
    """Pure-JAX reference using the same bf16 weight/activation quantization."""
    h = z.astype(jnp.float32)
    for idx, (w, b) in enumerate(params):
        y = jnp.dot(h.astype(jnp.bfloat16), w.astype(jnp.bfloat16),
                    preferred_element_type=jnp.float32) + b
        h = jnp.maximum(y, 0.0) if idx < len(params) - 1 else jax.nn.sigmoid(y)
    return h


if __name__ == "__main__":
    # Shapes consistent with the module: Decoder(latent=10, hidden=(32, 256),
    # output=784, nonlinearity=ReLU).
    LATENT, HIDDEN, OUTPUT = 10, (32, 256), 784

    key = jax.random.PRNGKey(0)
    kz, kp = jax.random.split(key)
    params = make_params(kp, LATENT, HIDDEN, OUTPUT)

    # Case 1: B=64 -> two 32-row tiles, exercises the pipelined "parallel" grid.
    z_big = jax.random.normal(kz, (64, LATENT), jnp.float32)
    x_big = jax.block_until_ready(decoder_forward(z_big, params))
    ref_big = decoder_reference(z_big, params)
    assert x_big.shape == (64, OUTPUT)
    assert bool(jnp.all(jnp.isfinite(x_big)))
    assert jnp.allclose(x_big, ref_big, atol=2e-3, rtol=2e-3)

    # Case 2: B=8 -> single block, grid dropped entirely.
    z_small = z_big[:8]
    x_small = jax.block_until_ready(decoder_forward(z_small, params))
    ref_small = decoder_reference(z_small, params)
    assert x_small.shape == (8, OUTPUT)
    assert jnp.allclose(x_small, ref_small, atol=2e-3, rtol=2e-3)

    print("KERNEL_OK")
</pallas_src>

<mosaic_0001>
module attributes {stable_mosaic.version = 11 : i64} {
  func.func @kernel(%arg0: i32, %arg1: memref<32x10xf32, #tpu.memory_space<vmem>>, %arg2: memref<10x32xbf16, #tpu.memory_space<vmem>>, %arg3: memref<1x32xf32, #tpu.memory_space<vmem>>, %arg4: memref<32x256xbf16, #tpu.memory_space<vmem>>, %arg5: memref<1x256xf32, #tpu.memory_space<vmem>>, %arg6: memref<256x896xbf16, #tpu.memory_space<vmem>>, %arg7: memref<1x896xf32, #tpu.memory_space<vmem>>, %arg8: memref<32x896xf32, #tpu.memory_space<vmem>>) attributes {dimension_semantics = [#tpu.dimension_semantics<parallel>], iteration_bounds = array<i64: 2>, scalar_prefetch = 0 : i64, scratch_operands = 0 : i64, tpu.core_type = #tpu.core_type<tc>, window_params = [{transform_indices = @transform_0, window_bounds = array<i64: 32, 10>}, {pipeline_mode = #tpu.pipeline_mode<synchronous>, transform_indices = @transform_1, window_bounds = array<i64: 10, 32>}, {pipeline_mode = #tpu.pipeline_mode<synchronous>, transform_indices = @transform_2, window_bounds = array<i64: 1, 32>}, {pipeline_mode = #tpu.pipeline_mode<synchronous>, transform_indices = @transform_3, window_bounds = array<i64: 32, 256>}, {pipeline_mode = #tpu.pipeline_mode<synchronous>, transform_indices = @transform_4, window_bounds = array<i64: 1, 256>}, {pipeline_mode = #tpu.pipeline_mode<synchronous>, transform_indices = @transform_5, window_bounds = array<i64: 256, 896>}, {pipeline_mode = #tpu.pipeline_mode<synchronous>, transform_indices = @transform_6, window_bounds = array<i64: 1, 896>}, {transform_indices = @transform_7, window_bounds = array<i64: 32, 896>}]} {
    %c0 = arith.constant 0 : index
    %c0_0 = arith.constant 0 : index
    %0 = vector.load %arg1[%c0, %c0_0] : memref<32x10xf32, #tpu.memory_space<vmem>>, vector<32x10xf32>
    %1 = arith.truncf %0 : vector<32x10xf32> to vector<32x10xbf16>
    %c0_1 = arith.constant 0 : index
    %c0_2 = arith.constant 0 : index
    %2 = vector.load %arg2[%c0_1, %c0_2] : memref<10x32xbf16, #tpu.memory_space<vmem>>, vector<10x32xbf16>
    %c0_3 = arith.constant 0 : index
    %c0_4 = arith.constant 0 : index
    %3 = vector.load %arg3[%c0_3, %c0_4] : memref<1x32xf32, #tpu.memory_space<vmem>>, vector<1x32xf32>
    %cst = arith.constant dense<0.000000e+00> : vector<32x32xf32>
    %4 = tpu.matmul %1, %2, %cst {dimension_numbers = #tpu.dot_dimension_numbers<[1], [0], [0], [1], [0, 0, 1, 1], [], []>} : vector<32x10xbf16>, vector<10x32xbf16>, vector<32x32xf32> -> vector<32x32xf32>
    %5 = vector.broadcast %3 : vector<1x32xf32> to vector<32x32xf32>
    %6 = arith.addf %4, %5 : vector<32x32xf32>
    %cst_5 = arith.constant 0.000000e+00 : f32
    %7 = vector.broadcast %cst_5 : f32 to vector<32x32xf32>
    %8 = arith.maximumf %6, %7 : vector<32x32xf32>
    %9 = arith.truncf %8 : vector<32x32xf32> to vector<32x32xbf16>
    %c0_6 = arith.constant 0 : index
    %c0_7 = arith.constant 0 : index
    %10 = vector.load %arg4[%c0_6, %c0_7] : memref<32x256xbf16, #tpu.memory_space<vmem>>, vector<32x256xbf16>
    %c0_8 = arith.constant 0 : index
    %c0_9 = arith.constant 0 : index
    %11 = vector.load %arg5[%c0_8, %c0_9] : memref<1x256xf32, #tpu.memory_space<vmem>>, vector<1x256xf32>
    %cst_10 = arith.constant dense<0.000000e+00> : vector<32x256xf32>
    %12 = tpu.matmul %9, %10, %cst_10 {dimension_numbers = #tpu.dot_dimension_numbers<[1], [0], [0], [1], [0, 0, 1, 1], [], []>} : vector<32x32xbf16>, vector<32x256xbf16>, vector<32x256xf32> -> vector<32x256xf32>
    %13 = vector.broadcast %11 : vector<1x256xf32> to vector<32x256xf32>
    %14 = arith.addf %12, %13 : vector<32x256xf32>
    %cst_11 = arith.constant 0.000000e+00 : f32
    %15 = vector.broadcast %cst_11 : f32 to vector<32x256xf32>
    %16 = arith.maximumf %14, %15 : vector<32x256xf32>
    %17 = arith.truncf %16 : vector<32x256xf32> to vector<32x256xbf16>
    %c0_12 = arith.constant 0 : index
    %c0_13 = arith.constant 0 : index
    %18 = vector.load %arg6[%c0_12, %c0_13] : memref<256x896xbf16, #tpu.memory_space<vmem>>, vector<256x896xbf16>
    %c0_14 = arith.constant 0 : index
    %c0_15 = arith.constant 0 : index
    %19 = vector.load %arg7[%c0_14, %c0_15] : memref<1x896xf32, #tpu.memory_space<vmem>>, vector<1x896xf32>
    %cst_16 = arith.constant dense<0.000000e+00> : vector<32x896xf32>
    %20 = tpu.matmul %17, %18, %cst_16 {dimension_numbers = #tpu.dot_dimension_numbers<[1], [0], [0], [1], [0, 0, 1, 1], [], []>} : vector<32x256xbf16>, vector<256x896xbf16>, vector<32x896xf32> -> vector<32x896xf32>
    %21 = vector.broadcast %19 : vector<1x896xf32> to vector<32x896xf32>
    %22 = arith.addf %20, %21 : vector<32x896xf32>
    %23 = arith.negf %22 : vector<32x896xf32>
    %24 = math.exp %23 : vector<32x896xf32>
    %cst_17 = arith.constant 1.000000e+00 : f32
    %25 = vector.broadcast %cst_17 : f32 to vector<32x896xf32>
    %26 = arith.addf %25, %24 : vector<32x896xf32>
    %27 = arith.divf %25, %26 : vector<32x896xf32>
    %c0_18 = arith.constant 0 : index
    %c0_19 = arith.constant 0 : index
    %28 = vector.load %arg8[%c0_18, %c0_19] : memref<32x896xf32, #tpu.memory_space<vmem>>, vector<32x896xf32>
    tpu.vector_store %arg8[%c0_18, %c0_19], %27 {strides = array<i32>} : memref<32x896xf32, #tpu.memory_space<vmem>>, vector<32x896xf32>,
    return
  }
  func.func @transform_0(%arg0: i32) -> (i32, i32) {
    %c0_i32 = arith.constant 0 : i32
    %c0_i32_0 = arith.constant 0 : i32
    return %arg0, %c0_i32 : i32, i32
  }
  func.func @transform_1(%arg0: i32) -> (i32, i32) {
    %c0_i32 = arith.constant 0 : i32
    %c0_i32_0 = arith.constant 0 : i32
    %c0_i32_1 = arith.constant 0 : i32
    return %c0_i32, %c0_i32_0 : i32, i32
  }
  func.func @transform_2(%arg0: i32) -> (i32, i32) {
    %c0_i32 = arith.constant 0 : i32
    %c0_i32_0 = arith.constant 0 : i32
    %c0_i32_1 = arith.constant 0 : i32
    return %c0_i32, %c0_i32_0 : i32, i32
  }
  func.func @transform_3(%arg0: i32) -> (i32, i32) {
    %c0_i32 = arith.constant 0 : i32
    %c0_i32_0 = arith.constant 0 : i32
    %c0_i32_1 = arith.constant 0 : i32
    return %c0_i32, %c0_i32_0 : i32, i32
  }
  func.func @transform_4(%arg0: i32) -> (i32, i32) {
    %c0_i32 = arith.constant 0 : i32
    %c0_i32_0 = arith.constant 0 : i32
    %c0_i32_1 = arith.constant 0 : i32
    return %c0_i32, %c0_i32_0 : i32, i32
  }
  func.func @transform_5(%arg0: i32) -> (i32, i32) {
    %c0_i32 = arith.constant 0 : i32
    %c0_i32_0 = arith.constant 0 : i32
    %c0_i32_1 = arith.constant 0 : i32
    return %c0_i32, %c0_i32_0 : i32, i32
  }
  func.func @transform_6(%arg0: i32) -> (i32, i32) {
    %c0_i32 = arith.constant 0 : i32
    %c0_i32_0 = arith.constant 0 : i32
    %c0_i32_1 = arith.constant 0 : i32
    return %c0_i32, %c0_i32_0 : i32, i32
  }
  func.func @transform_7(%arg0: i32) -> (i32, i32) {
    %c0_i32 = arith.constant 0 : i32
    %c0_i32_0 = arith.constant 0 : i32
    return %arg0, %c0_i32 : i32, i32
  }
}

module attributes {stable_mosaic.version = 11 : i64} {
  func.func @kernel(%arg0: i32, %arg1: memref<32x10xf32, #tpu.memory_space<vmem>>, %arg2: memref<10x32xbf16, #tpu.memory_space<vmem>>, %arg3: memref<1x32xf32, #tpu.memory_space<vmem>>, %arg4: memref<32x256xbf16, #tpu.memory_space<vmem>>, %arg5: memref<1x256xf32, #tpu.memory_space<vmem>>, %arg6: memref<256x896xbf16, #tpu.memory_space<vmem>>, %arg7: memref<1x896xf32, #tpu.memory_space<vmem>>, %arg8: memref<32x896xf32, #tpu.memory_space<vmem>>) attributes {dimension_semantics = [#tpu.dimension_semantics<parallel>], iteration_bounds = array<i64: 2>, scalar_prefetch = 0 : i64, scratch_operands = 0 : i64, tpu.core_type = #tpu.core_type<tc>, window_params = [{transform_indices = @transform_0, window_bounds = array<i64: 32, 10>}, {pipeline_mode = #tpu.pipeline_mode<synchronous>, transform_indices = @transform_1, window_bounds = array<i64: 10, 32>}, {pipeline_mode = #tpu.pipeline_mode<synchronous>, transform_indices = @transform_2, window_bounds = array<i64: 1, 32>}, {pipeline_mode = #tpu.pipeline_mode<synchronous>, transform_indices = @transform_3, window_bounds = array<i64: 32, 256>}, {pipeline_mode = #tpu.pipeline_mode<synchronous>, transform_indices = @transform_4, window_bounds = array<i64: 1, 256>}, {pipeline_mode = #tpu.pipeline_mode<synchronous>, transform_indices = @transform_5, window_bounds = array<i64: 256, 896>}, {pipeline_mode = #tpu.pipeline_mode<synchronous>, transform_indices = @transform_6, window_bounds = array<i64: 1, 896>}, {transform_indices = @transform_7, window_bounds = array<i64: 32, 896>}]} {
    %c0 = arith.constant 0 : index
    %c0_0 = arith.constant 0 : index
    %0 = vector.load %arg1[%c0, %c0_0] : memref<32x10xf32, #tpu.memory_space<vmem>>, vector<32x10xf32>
    %1 = arith.truncf %0 : vector<32x10xf32> to vector<32x10xbf16>
    %c0_1 = arith.constant 0 : index
    %c0_2 = arith.constant 0 : index
    %2 = vector.load %arg2[%c0_1, %c0_2] : memref<10x32xbf16, #tpu.memory_space<vmem>>, vector<10x32xbf16>
    %c0_3 = arith.constant 0 : index
    %c0_4 = arith.constant 0 : index
    %3 = vector.load %arg3[%c0_3, %c0_4] : memref<1x32xf32, #tpu.memory_space<vmem>>, vector<1x32xf32>
    %cst = arith.constant dense<0.000000e+00> : vector<32x32xf32>
    %4 = tpu.matmul %1, %2, %cst {dimension_numbers = #tpu.dot_dimension_numbers<[1], [0], [0], [1], [0, 0, 1, 1], [], []>} : vector<32x10xbf16>, vector<10x32xbf16>, vector<32x32xf32> -> vector<32x32xf32>
    %5 = vector.broadcast %3 : vector<1x32xf32> to vector<32x32xf32>
    %6 = arith.addf %4, %5 : vector<32x32xf32>
    %cst_5 = arith.constant 0.000000e+00 : f32
    %7 = vector.broadcast %cst_5 : f32 to vector<32x32xf32>
    %8 = arith.maximumf %6, %7 : vector<32x32xf32>
    %9 = arith.truncf %8 : vector<32x32xf32> to vector<32x32xbf16>
    %c0_6 = arith.constant 0 : index
    %c0_7 = arith.constant 0 : index
    %10 = vector.load %arg4[%c0_6, %c0_7] : memref<32x256xbf16, #tpu.memory_space<vmem>>, vector<32x256xbf16>
    %c0_8 = arith.constant 0 : index
    %c0_9 = arith.constant 0 : index
    %11 = vector.load %arg5[%c0_8, %c0_9] : memref<1x256xf32, #tpu.memory_space<vmem>>, vector<1x256xf32>
    %cst_10 = arith.constant dense<0.000000e+00> : vector<32x256xf32>
    %12 = tpu.matmul %9, %10, %cst_10 {dimension_numbers = #tpu.dot_dimension_numbers<[1], [0], [0], [1], [0, 0, 1, 1], [], []>} : vector<32x32xbf16>, vector<32x256xbf16>, vector<32x256xf32> -> vector<32x256xf32>
    %13 = vector.broadcast %11 : vector<1x256xf32> to vector<32x256xf32>
    %14 = arith.addf %12, %13 : vector<32x256xf32>
    %cst_11 = arith.constant 0.000000e+00 : f32
    %15 = vector.broadcast %cst_11 : f32 to vector<32x256xf32>
    %16 = arith.maximumf %14, %15 : vector<32x256xf32>
    %17 = arith.truncf %16 : vector<32x256xf32> to vector<32x256xbf16>
    %c0_12 = arith.constant 0 : index
    %c0_13 = arith.constant 0 : index
    %18 = vector.load %arg6[%c0_12, %c0_13] : memref<256x896xbf16, #tpu.memory_space<vmem>>, vector<256x896xbf16>
    %c0_14 = arith.constant 0 : index
    %c0_15 = arith.constant 0 : index
    %19 = vector.load %arg7[%c0_14, %c0_15] : memref<1x896xf32, #tpu.memory_space<vmem>>, vector<1x896xf32>
    %cst_16 = arith.constant dense<0.000000e+00> : vector<32x896xf32>
    %20 = tpu.matmul %17, %18, %cst_16 {dimension_numbers = #tpu.dot_dimension_numbers<[1], [0], [0], [1], [0, 0, 1, 1], [], []>} : vector<32x256xbf16>, vector<256x896xbf16>, vector<32x896xf32> -> vector<32x896xf32>
    %21 = vector.broadcast %19 : vector<1x896xf32> to vector<32x896xf32>
    %22 = arith.addf %20, %21 : vector<32x896xf32>
    %23 = arith.negf %22 : vector<32x896xf32>
    %24 = math.exp %23 : vector<32x896xf32>
    %cst_17 = arith.constant 1.000000e+00 : f32
    %25 = vector.broadcast %cst_17 : f32 to vector<32x896xf32>
    %26 = arith.addf %25, %24 : vector<32x896xf32>
    %27 = arith.divf %25, %26 : vector<32x896xf32>
    %c0_18 = arith.constant 0 : index
    %c0_19 = arith.constant 0 : index
    %28 = vector.load %arg8[%c0_18, %c0_19] : memref<32x896xf32, #tpu.memory_space<vmem>>, vector<32x896xf32>
    tpu.vector_store %arg8[%c0_18, %c0_19], %27 {strides = array<i32>} : memref<32x896xf32, #tpu.memory_space<vmem>>, vector<32x896xf32>,
    return
  }
  func.func @transform_0(%arg0: i32) -> (i32, i32) {
    %c0_i32 = arith.constant 0 : i32
    %c0_i32_0 = arith.constant 0 : i32
    return %arg0, %c0_i32 : i32, i32
  }
  func.func @transform_1(%arg0: i32) -> (i32, i32) {
    %c0_i32 = arith.constant 0 : i32
    %c0_i32_0 = arith.constant 0 : i32
    %c0_i32_1 = arith.constant 0 : i32
    return %c0_i32, %c0_i32_0 : i32, i32
  }
  func.func @transform_2(%arg0: i32) -> (i32, i32) {
    %c0_i32 = arith.constant 0 : i32
    %c0_i32_0 = arith.constant 0 : i32
    %c0_i32_1 = arith.constant 0 : i32
    return %c0_i32, %c0_i32_0 : i32, i32
  }
  func.func @transform_3(%arg0: i32) -> (i32, i32) {
    %c0_i32 = arith.constant 0 : i32
    %c0_i32_0 = arith.constant 0 : i32
    %c0_i32_1 = arith.constant 0 : i32
    return %c0_i32, %c0_i32_0 : i32, i32
  }
  func.func @transform_4(%arg0: i32) -> (i32, i32) {
    %c0_i32 = arith.constant 0 : i32
    %c0_i32_0 = arith.constant 0 : i32
    %c0_i32_1 = arith.constant 0 : i32
    return %c0_i32, %c0_i32_0 : i32, i32
  }
  func.func @transform_5(%arg0: i32) -> (i32, i32) {
    %c0_i32 = arith.constant 0 : i32
    %c0_i32_0 = arith.constant 0 : i32
    %c0_i32_1 = arith.constant 0 : i32
    return %c0_i32, %c0_i32_0 : i32, i32
  }
  func.func @transform_6(%arg0: i32) -> (i32, i32) {
    %c0_i32 = arith.constant 0 : i32
    %c0_i32_0 = arith.constant 0 : i32
    %c0_i32_1 = arith.constant 0 : i32
    return %c0_i32, %c0_i32_0 : i32, i32
  }
  func.func @transform_7(%arg0: i32) -> (i32, i32) {
    %c0_i32 = arith.constant 0 : i32
    %c0_i32_0 = arith.constant 0 : i32
    return %arg0, %c0_i32 : i32, i32
  }
}

</mosaic_0001>

<bundles_post_ra>
// kernel: tpu_custom_call.1
= control target key start
LH: loop header
LB: loop body
LE: loop exit
PB: predicated region body
PF: predicated region fallthrough
CT: control target
= control target key end

     0   :  { %12 = vsyncpa [#allocation3], 0  ;;  %s3652_s0 = inlined_call_operand.vmem [shape: f32[64,10], index: 0, kind: input, shape index: {}]   ;;  %s3653_s1 = inlined_call_operand.vmem [shape: bf16[10,32], index: 1, kind: input, shape index: {}]   ;;  %s3654_s2 = inlined_call_operand.vmem [shape: f32[1,32], index: 2, kind: input, shape index: {}]   ;;  %s3655_s3 = inlined_call_operand.vmem [shape: bf16[32,256], index: 3, kind: input, shape index: {}]   ;;  %s3656_s4 = inlined_call_operand.vmem [shape: f32[1,256], index: 4, kind: input, shape index: {}]   ;;  %s3657_s5 = inlined_call_operand.hbm [shape: bf16[256,896], index: 5, kind: input, shape index: {}]   ;;  %s3658_s6 = inlined_call_operand.vmem [shape: f32[1,896], index: 6, kind: input, shape index: {}]   ;;  %s3659_s7 = inlined_call_operand.hbm [shape: f32[64,896], index: 7, kind: output, shape index: {}]  }
   0x1   :  { %13 = vsyncpa [#allocation4], 0 }
   0x2   :  { %15 = vsyncpa [#allocation4 + $0x1], 0  ;;  %s3035_s24 = smov 0   ;;  %s3037_s25 = smov 0  }
   0x3   :  { %s3039_s26 = smov 0   ;;  %s3041_s27 = smov 0  }
   0x4 LB: > { %s3056_s28 = sadd.s32 4294967295, %s2988_s27   ;;  %s2075_s29 = sadd.s32 4294967294, %s2988_s27   ;;  %s2988_s27 = sphi %s3041_s27, %s3705_s27   ;;  %s2984_s26 = sphi %s3039_s26, %s3704_s26   ;;  %s2980_s25 = sphi %s3037_s25, %s3703_s25   ;;  %s2976_s24 = sphi %s3035_s24, %s3702_s24  }
   0x5   : > { %s3060_s30 = sadd.s32 1, %s2988_s27   ;;  %s180_s8 = sadd.s32 1, %s2984_s26 }
   0x6   : > { %s177_s9 = ssub.s32 %s2988_s27, %s3060_s30  ;;  %p190_p0 = scmp.ne.s32.totalorder %s2984_s26, %s2980_s25 }
   0x7   : > { %p178_p1 = scmp.eq.s32.totalorder %s177_s9, 0  ;;  %p191_p2 = scmp.eq.s32.totalorder %s3056_s28, 1 }
   0x8   : > { %p196_p3 = scmp.ne.s32.totalorder %s2980_s25, %s2976_s24  ;;  %p197_p4 = scmp.eq.s32.totalorder %s2075_s29, 1 }
   0x9   : > { %s3071_s10 = scalar_select %p178_p1, %s2984_s26, %s180_s8  }
   0xa   : > { %p3073_p5 = por %p191_p2, %p190_p0  ;;  %p3077_p6 = por %p197_p4, %p196_p3 }
   0xb   : > { %p2076_p7 = scmp.ge.s32.totalorder %s2988_s27, 1  ;;  %p204_p8 = scmp.lt.s32.totalorder %s2988_s27, 3 }
   0xc   : > { %p2739_p9 = scmp.eq.s32.totalorder %s3056_s28, 0  ;;  %s227_s15 = sshll.u32 %s3657_s5, 4  ;;  %s228_s15 = int_to_ptr.hbm [resolvable:$true] %s227_s15 }
   0xd   : > { %p205_p10 = pnand %p2076_p7, %p204_p8  ;;  %s2990_s16 = smov [#allocation2]  }
   0xe   : > { %s229_s17 = sshll.u32 %s2990_s16, 4  ;;  %s2991_s18 = smov 448   ;;  %s230_s17 = int_to_ptr.vmem [resolvable:$true] %s229_s17 }
   0xf   : > { %p2731_p11 = pneg %p205_p10  ;;  %s2992_s19 = smov 28  }
  0x10   : > { %257 = sbr.rel (%p205_p10) target bundleno = 594 (0x252), region = 48 }
  0x11   : > { %p2732_p12 = pnand %p2739_p9, %p2731_p11 }
  0x13   : > { %2734 = dma.hbm_to_vmem [thread:$0]  (!%p2732_p12), %s228_s15, 14336, %s230_s17, [#allocation3], %s2991_s18, %s2991_s18, %s2992_s19  }
  0x15   : > { %2967 = dma.done.wait (%p2739_p9), [#allocation3], 14336  }
  0x16   : > { %2969 = vsyncadd (%p2739_p9), [#allocation3], 4294952960  ;;  %s2081_s20 = sshll.u32 %s3056_s28, 2  ;;  %v2085_v0 = vld [vmem:[%s3653_s1] sm:$0xf]  ;;  %vm322_vm0 = vcmask 1044480  }
  0x17   : > { %p291_p13 = scmp.lt.s32.totalorder %s2081_s20, 7  ;;  %v2590_v1 = vld [vmem:[%s3653_s1] sm:$0x10]  ;;  %vm315_vm1 = vcmask 80896   ;;  %v2099_v10 = vld [vmem:[%s3655_s3 + $0x10] sm:$0xf] }
  0x18   : > { %v2086_v3 = vor.u32 %v2590_v1, %v2085_v0  ;;  %v2594_v11 = vld [vmem:[%s3655_s3 + $0x14] sm:$0xf0]  ;;  %v2593_v12 = vld [vmem:[%s3655_s3 + $0x14] sm:$0xf]  ;;  %v2101_v14 = vld [vmem:[%s3655_s3 + $0x18] sm:$0xf0] }
  0x19   : > { %s3707_s20 = smov (!%p291_p13, %s2081_s20), 7  ;;  %v2100_v13 = vor.u32 %v2594_v11, %v2099_v10  ;;  %v2104_v15 = vor.u32 %v2593_v12, %v2101_v14  ;;  %v2091_v16 = vld [vmem:[%s3655_s3] sm:$0xf]  ;;  %v2592_v17 = vld [vmem:[%s3655_s3 + $0x4] sm:$0xf0]  ;;  %vm381_vm2 = vcmask 261120  }
  0x1a   : > { %s2082_s21 = sshll.u32 %s3707_s20, 3  ;;  %v324_v5 = vsel %vm322_vm0, %v2086_v3, 0  ;;  %v2591_v18 = vld [vmem:[%s3655_s3 + $0x4] sm:$0xf]  ;;  %v2092_v19 = vor.u32 %v2592_v17, %v2091_v16  ;;  %v2093_v20 = vld [vmem:[%s3655_s3 + $0x8] sm:$0xf0] }
  0x1b   : > { %s294_s29 = scalar_lea.vmem %s3652_s0, %s2082_s21  ;;  %333 = vmatpush.bf16.msra.mxu0 %v324_v5  ;;  %394 = vmatpush.bf16.msra.mxu1 %v2100_v13  ;;  %v2096_v21 = vor.u32 %v2591_v18, %v2093_v20  ;;  %v2307_v22 = vld [vmem:[#allocation2 + $0x188] sm:$0xf]  ;;  %v2647_v23 = vld [vmem:[#allocation2 + $0x1a0] sm:$0xf0]  ;;  %v2644_v24 = vld [vmem:[#allocation2 + $0x18c] sm:$0xf] }
  0x1c   : > { %v298_v2 = vld [vmem:[%s294_s29] sm:$0xff]  ;;  %v299_v4 = vld [vmem:[%s294_s29 + $0x8] sm:$0xff]  ;;  %v300_v7 = vld [vmem:[%s294_s29 + $0x10] sm:$0xff]  ;;  %413 = vmatpush.bf16.msra.mxu2 %v2104_v15  ;;  %v2308_v26 = vor.u32 %v2647_v23, %v2307_v22  ;;  %s287_s23 = sand.u32 1, %s2980_s25   ;;  %s2724_s9 = smul.u32 224, %s3056_s28 }
  0x1d   : > { %v302_v6 = vpack.c.bf16 %v299_v4, %v298_v2  ;;  %v301_v8 = vld [vmem:[%s294_s29 + $0x18] sm:$0xff]  ;;  %v2309_v27 = vld [vmem:[#allocation2 + $0x1a4] sm:$0xf0]  ;;  %v2279_v28 = vld [vmem:[#allocation2 + $0x150] sm:$0xf]  ;;  %s3221_s29 = smul.u32 224, %s287_s23 }
  0x1e   : > { %v303_v9 = vpack.c.bf16 %v301_v8, %v300_v7  ;;  %v2640_v29 = vld [vmem:[#allocation2 + $0x168] sm:$0xf0]  ;;  %v2312_v30 = vor.u32 %v2644_v24, %v2309_v27  ;;  %v2637_v31 = vld [vmem:[#allocation2 + $0x154] sm:$0xf]  ;;  %v2281_v32 = vld [vmem:[#allocation2 + $0x16c] sm:$0xf0]  ;;  %1158 = vmatpush.bf16.msra.mxu3 %v2308_v26  ;;  %s1997_s14 = scalar_lea.hbm %s3659_s7, %s2724_s9 }
  0x1f   : > { %2087 = vmatmul.msk.bf16.vlgmr.msra.gmra.mxu0 %vm315_vm1, %v302_v6  ;;  %395 = vmatpush.bf16.msra.mxu1 %v2092_v19  ;;  %v2700_v33 = vld [vmem:[#allocation2 + $0x34c] sm:$0xf]  ;;  %v2280_v34 = vor.u32 %v2640_v29, %v2279_v28  ;;  %v2533_v35 = vld [vmem:[#allocation2 + $0x364] sm:$0xf0]  ;;  %v2703_v37 = vld [vmem:[#allocation2 + $0x360] sm:$0xf0]  ;;  %v2284_v39 = vor.u32 %v2637_v31, %v2281_v32 }
  0x20   : > { %414 = vmatpush.bf16.msra.mxu2 %v2096_v21  ;;  %v2531_v36 = vld [vmem:[#allocation2 + $0x348] sm:$0xf]  ;;  %v2779_v38 = vld [vmem:[%s3654_s2] ss:$0 sm:$0xff]  ;;  %v2536_v40 = vor.u32 %v2700_v33, %v2533_v35  ;;  %v2251_v42 = vld [vmem:[#allocation2 + $0x118] sm:$0xf] }
  0x21   : > { %v2532_v41 = vor.u32 %v2703_v37, %v2531_v36  ;;  %v2633_v43 = vld [vmem:[#allocation2 + $0x130] sm:$0xf0]  ;;  %v2630_v44 = vld [vmem:[#allocation2 + $0x11c] sm:$0xf]  ;;  %v2253_v45 = vld [vmem:[#allocation2 + $0x134] sm:$0xf0] }
  0x22   : > { %v2693_v46 = vld [vmem:[#allocation2 + $0x314] sm:$0xf]  ;;  %v2505_v47 = vld [vmem:[#allocation2 + $0x32c] sm:$0xf0]  ;;  %v2696_v49 = vld [vmem:[#allocation2 + $0x328] sm:$0xf0]  ;;  %1159 = vmatpush.bf16.msra.mxu3 %v2280_v34  ;;  %v2252_v50 = vor.u32 %v2633_v43, %v2251_v42  ;;  %v2256_v55 = vor.u32 %v2630_v44, %v2253_v45 }
  0x23   : > { %1196 = vmatpush.bf16.msrb.mxu1 %v2312_v30  ;;  %1177 = vmatpush.bf16.msrb.mxu0 %v2532_v41  ;;  %v2503_v48 = vld [vmem:[#allocation2 + $0x310] sm:$0xf]  ;;  %v2508_v51 = vor.u32 %v2693_v46, %v2505_v47  ;;  %v2223_v53 = vld [vmem:[#allocation2 + $0xe0] sm:$0xf]  ;;  %v2626_v56 = vld [vmem:[#allocation2 + $0xf8] sm:$0xf0] }
  0x24   : > { %1215 = vmatpush.bf16.msrb.mxu2 %v2536_v40  ;;  %v2504_v52 = vor.u32 %v2696_v49, %v2503_v48  ;;  %v2686_v57 = vld [vmem:[#allocation2 + $0x2dc] sm:$0xf]  ;;  %v2477_v58 = vld [vmem:[#allocation2 + $0x2f4] sm:$0xf0]  ;;  %v2689_v61 = vld [vmem:[#allocation2 + $0x2f0] sm:$0xf0]  ;;  %v2224_v3 = vor.u32 %v2626_v56, %v2223_v53 }
  0x25   : > { %v2475_v60 = vld [vmem:[#allocation2 + $0x2d8] sm:$0xf]  ;;  %v2623_v63 = vld [vmem:[#allocation2 + $0xe4] sm:$0xf]  ;;  %v2225_v0 = vld [vmem:[#allocation2 + $0xfc] sm:$0xf0]  ;;  %v2480_v1 = vor.u32 %v2686_v57, %v2477_v58 }
  0x26   : > { %v2476_v2 = vor.u32 %v2689_v61, %v2475_v60  ;;  %1160 = vmatpush.bf16.msra.mxu3 %v2252_v50  ;;  %v2228_v6 = vor.u32 %v2623_v63, %v2225_v0  ;;  %v2195_v15 = vld [vmem:[#allocation2 + $0xa8] sm:$0xf]  ;;  %v2619_v16 = vld [vmem:[#allocation2 + $0xc0] sm:$0xf0]  ;;  %v2616_v17 = vld [vmem:[#allocation2 + $0xac] sm:$0xf] }
  0x27   : > { %1197 = vmatpush.bf16.msrb.mxu1 %v2284_v39  ;;  %1178 = vmatpush.bf16.msrb.mxu0 %v2504_v52  ;;  %v2196_v18 = vor.u32 %v2619_v16, %v2195_v15  ;;  %v2197_v19 = vld [vmem:[#allocation2 + $0xc4] sm:$0xf0]  ;;  %v2679_v21 = vld [vmem:[#allocation2 + $0x2a4] sm:$0xf]  ;;  %v2449_v22 = vld [vmem:[#allocation2 + $0x2bc] sm:$0xf0] }
  0x28   : > { %1216 = vmatpush.bf16.msrb.mxu2 %v2508_v51  ;;  %v2200_v20 = vor.u32 %v2616_v17, %v2197_v19  ;;  %v2447_v23 = vld [vmem:[#allocation2 + $0x2a0] sm:$0xf]  ;;  %v2452_v24 = vor.u32 %v2679_v21, %v2449_v22  ;;  %v2167_v27 = vld [vmem:[#allocation2 + $0x70] sm:$0xf]  ;;  %v2612_v28 = vld [vmem:[#allocation2 + $0x88] sm:$0xf0] }
  0x29   : > { %v2609_v29 = vld [vmem:[#allocation2 + $0x74] sm:$0xf]  ;;  %v2168_v30 = vor.u32 %v2612_v28, %v2167_v27  ;;  %v2169_v31 = vld [vmem:[#allocation2 + $0x8c] sm:$0xf0]  ;;  %v2672_v33 = vld [vmem:[#allocation2 + $0x26c] sm:$0xf] }
  0x2a   : > { %1161 = vmatpush.bf16.msra.mxu3 %v2224_v3  ;;  %v2172_v32 = vor.u32 %v2609_v29, %v2169_v31  ;;  %v2421_v34 = vld [vmem:[#allocation2 + $0x284] sm:$0xf0]  ;;  %v2675_v37 = vld [vmem:[#allocation2 + $0x280] sm:$0xf0]  ;;  %v2139_v39 = vld [vmem:[#allocation2 + $0x38] sm:$0xf] }
  0x2b   : > { %1198 = vmatpush.bf16.msrb.mxu1 %v2256_v55  ;;  %1179 = vmatpush.bf16.msrb.mxu0 %v2476_v2  ;;  %v2424_v35 = vor.u32 %v2672_v33, %v2421_v34  ;;  %v2419_v36 = vld [vmem:[#allocation2 + $0x268] sm:$0xf]  ;;  %v2605_v40 = vld [vmem:[#allocation2 + $0x50] sm:$0xf0]  ;;  %v2602_v41 = vld [vmem:[#allocation2 + $0x3c] sm:$0xf] }
  0x2c   : > { %1217 = vmatpush.bf16.msrb.mxu2 %v2480_v1  ;;  %v2140_v42 = vor.u32 %v2605_v40, %v2139_v39  ;;  %v2141_v43 = vld [vmem:[#allocation2 + $0x54] sm:$0xf0]  ;;  %v2665_v45 = vld [vmem:[#allocation2 + $0x234] sm:$0xf]  ;;  %v2393_v46 = vld [vmem:[#allocation2 + $0x24c] sm:$0xf0] }
  0x2d   : > { %v2144_v44 = vor.u32 %v2602_v41, %v2141_v43  ;;  %v2391_v47 = vld [vmem:[#allocation2 + $0x230] sm:$0xf]  ;;  %v2396_v48 = vor.u32 %v2665_v45, %v2393_v46  ;;  %v2668_v49 = vld [vmem:[#allocation2 + $0x248] sm:$0xf0]  ;;  %v2111_v51 = vld [vmem:[#allocation2] sm:$0xf] }
  0x2e   : > { %1162 = vmatpush.bf16.msra.mxu3 %v2196_v18  ;;  %v2392_v50 = vor.u32 %v2668_v49, %v2391_v47  ;;  %v2598_v52 = vld [vmem:[#allocation2 + $0x18] sm:$0xf0]  ;;  %v2595_v53 = vld [vmem:[#allocation2 + $0x4] sm:$0xf]  ;;  %v2113_v55 = vld [vmem:[#allocation2 + $0x1c] sm:$0xf0] }
  0x2f   : > { %2088 = vmatmul.msk.bf16.gmra.mxu0 %vm315_vm1, %v303_v9  ;;  %1199 = vmatpush.bf16.msrb.mxu1 %v2228_v6  ;;  %v2116_v56 = vor.u32 %v2595_v53, %v2113_v55  ;;  %v2658_v57 = vld [vmem:[#allocation2 + $0x1fc] sm:$0xf]  ;;  %v2365_v58 = vld [vmem:[#allocation2 + $0x214] sm:$0xf0]  ;;  %v2661_v61 = vld [vmem:[#allocation2 + $0x210] sm:$0xf0] }
  0x30   : > { %1218 = vmatpush.bf16.msrb.mxu2 %v2452_v24  ;;  %v2368_v60 = vor.u32 %v2658_v57, %v2365_v58  ;;  %v2315_v63 = vld [vmem:[#allocation2 + $0x190] sm:$0xf]  ;;  %v2648_v0 = vld [vmem:[#allocation2 + $0x1a8] sm:$0xf0]  ;;  %v2645_v1 = vld [vmem:[#allocation2 + $0x194] sm:$0xf] }
  0x31   : > { %v2316_v2 = vor.u32 %v2648_v0, %v2315_v63  ;;  %v2317_v3 = vld [vmem:[#allocation2 + $0x1ac] sm:$0xf0]  ;;  %v2337_v6 = vld [vmem:[#allocation2 + $0x1dc] sm:$0xf0]  ;;  %v2289_v15 = vld [vmem:[#allocation2 + $0x174] sm:$0xf0] }
  0x32   : > { %1163 = vmatpush.bf16.msra.mxu3 %v2168_v30  ;;  %v2701_v17 = vld [vmem:[#allocation2 + $0x354] sm:$0xf]  ;;  %v2541_v18 = vld [vmem:[#allocation2 + $0x36c] sm:$0xf0]  ;;  %v2704_v21 = vld [vmem:[#allocation2 + $0x368] sm:$0xf0] }
  0x33   : > { %1200 = vmatpush.bf16.msrb.mxu1 %v2200_v20  ;;  %v2539_v19 = vld [vmem:[#allocation2 + $0x350] sm:$0xf]  ;;  %v2544_v20 = vor.u32 %v2701_v17, %v2541_v18  ;;  %v2634_v24 = vld [vmem:[#allocation2 + $0x138] sm:$0xf0]  ;;  %v2261_v27 = vld [vmem:[#allocation2 + $0x13c] sm:$0xf0] }
  0x34   : > { %1219 = vmatpush.bf16.msrb.mxu2 %v2424_v35  ;;  %v2540_v22 = vor.u32 %v2704_v21, %v2539_v19  ;;  %v2694_v29 = vld [vmem:[#allocation2 + $0x31c] sm:$0xf]  ;;  %v2513_v30 = vld [vmem:[#allocation2 + $0x334] sm:$0xf0]  ;;  %v2697_v33 = vld [vmem:[#allocation2 + $0x330] sm:$0xf0] }
  0x35   : > { %v2511_v31 = vld [vmem:[#allocation2 + $0x318] sm:$0xf]  ;;  %v2231_v35 = vld [vmem:[#allocation2 + $0xe8] sm:$0xf]  ;;  %v2687_v41 = vld [vmem:[#allocation2 + $0x2e4] sm:$0xf] }
  0x36   : > { %1164 = vmatpush.bf16.msra.mxu3 %v2140_v42  ;;  %v2512_v34 = vor.u32 %v2697_v33, %v2511_v31  ;;  %v2233_v39 = vld [vmem:[#allocation2 + $0x104] sm:$0xf0]  ;;  %v2485_v42 = vld [vmem:[#allocation2 + $0x2fc] sm:$0xf0]  ;;  %v2690_v45 = vld [vmem:[#allocation2 + $0x2f8] sm:$0xf0] }
  0x37   : > { %1201 = vmatpush.bf16.msrb.mxu1 %v2172_v32  ;;  %v2516_v32 = vor.u32 %v2694_v29, %v2513_v30  ;;  %v2483_v43 = vld [vmem:[#allocation2 + $0x2e0] sm:$0xf]  ;;  %v2203_v47 = vld [vmem:[#allocation2 + $0xb0] sm:$0xf]  ;;  %v2617_v49 = vld [vmem:[#allocation2 + $0xb4] sm:$0xf] }
  0x38   : > { %1220 = vmatpush.bf16.msrb.mxu2 %v2396_v48  ;;  %v2484_v46 = vor.u32 %v2690_v45, %v2483_v43  ;;  %v2620_v48 = vld [vmem:[#allocation2 + $0xc8] sm:$0xf0]  ;;  %v2455_v55 = vld [vmem:[#allocation2 + $0x2a8] sm:$0xf]  ;;  %v2610_v63 = vld [vmem:[#allocation2 + $0x7c] sm:$0xf] }
  0x39   : > { %v2680_v53 = vld [vmem:[#allocation2 + $0x2ac] sm:$0xf]  ;;  %v2401_v17 = vld [vmem:[#allocation2 + $0x254] sm:$0xf0]  ;;  %v2659_v33 = vld [vmem:[#allocation2 + $0x204] sm:$0xf] }
  0x3a   : > { %v2399_v21 = vld [vmem:[#allocation2 + $0x238] sm:$0xf]  ;;  %v2646_v45 = vld [vmem:[#allocation2 + $0x19c] sm:$0xf]  ;;  %s3251_s8 = scalar_lea.vmem [#allocation5], %s3221_s29  ;;  %s2000_s16 = sshll.u32 %s1997_s14, 4  ;;  %s2001_s16 = int_to_ptr.hbm [resolvable:$true] %s2000_s16 }
  0x3b   : > { %1202 = vmatpush.bf16.msrb.mxu1 %v2144_v44  ;;  %v2488_v44 = vor.u32 %v2687_v41, %v2485_v42  ;;  %v2323_v43 = vld [vmem:[#allocation2 + $0x198] sm:$0xf]  ;;  %s1998_s15 = sshll.u32 %s3251_s8, 4  ;;  %s1985_s17 = scalar_lea.sflag [#allocation4], %s287_s23  ;;  %s1999_s15 = int_to_ptr.vmem [resolvable:$true] %s1998_s15 }
  0x3c   : > { %1221 = vmatpush.bf16.msrb.mxu2 %v2368_v60  ;;  %s2936_s18 = sshra.s32 %s2001_s16, 4  ;;  %s2942_s22 = scalar_lea.hbm %s3659_s7, 448  ;;  %s2937_s18 = int_to_ptr.hbm [resolvable:$true] %s2936_s18 }
  0x3d   : > { %s2938_s19 = scalar_lea.hbm %s2937_s18, 224  ;;  %p2943_p3 = scmp.lt.s32.totalorder %s2937_s18, %s3659_s7 }
  0x3e   : > { %p2939_p0 = scmp.ne.s32.totalorder %s2937_s18, %s2938_s19  ;;  %p2944_p4 = scmp.lt.s32.totalorder %s2942_s22, %s2938_s19 }
  0x3f   : > { %1203 = vmatpush.bf16.msrb.mxu1 %v2116_v56  ;;  %v355_v56 = vld [vmem:[%s3656_s4] sm:$0x3] }
  0x40   : > { %v3140_v29 = vperm.slane %v355_v56, 1  ;;  %p2940_p1 = pnand %p2939_p0, %p3073_p5  ;;  %p2945_p7 = por %p2944_p4, %p2943_p3 }
  0x42   : > { %p2941_p2 = pneg %p2940_p1 }
  0x44   : > { %p2946_p8 = pnand %p2945_p7, %p2941_p2 }
  0x9c   : > { %v335_v25 = vpop.f32.mrf.mxu0 }
  0x9d   : > { %v336_v54 = vadd.f32 %v2779_v38, %v335_v25  ;;  %v2682_v25 = vld [vmem:[#allocation2 + $0x2b8] sm:$0xf0] }
  0x9e   : > { %v2448_v26 = vor.u32 %v2682_v25, %v2447_v23  ;;  %v2259_v23 = vld [vmem:[#allocation2 + $0x120] sm:$0xf]  ;;  %v2631_v25 = vld [vmem:[#allocation2 + $0x124] sm:$0xf] }
  0x9f   : > { %v345_v4 = vmax.f32 %v336_v54, 0.0  ;;  %v2112_v54 = vor.u32 %v2598_v52, %v2111_v51  ;;  %v2264_v28 = vor.u32 %v2631_v25, %v2261_v27  ;;  %v2205_v51 = vld [vmem:[#allocation2 + $0xcc] sm:$0xf0]  ;;  %v2596_v27 = vld [vmem:[#allocation2 + $0xc] sm:$0xf] }
  0xa0   : > { %1180 = vmatpush.bf16.msrb.mxu0 %v2448_v26  ;;  %v2260_v26 = vor.u32 %v2634_v24, %v2259_v23  ;;  %v2208_v52 = vor.u32 %v2617_v49, %v2205_v51  ;;  %v2119_v23 = vld [vmem:[#allocation2 + $0x8] sm:$0xf]  ;;  %v2652_v51 = vld [vmem:[#allocation2 + $0x1cc] sm:$0xf] }
  0xa1   : > { %1165 = vmatpush.bf16.msra.mxu3 %v2112_v54  ;;  %v2457_v54 = vld [vmem:[#allocation2 + $0x2c4] sm:$0xf0] }
  0xa2   : > { %v2460_v58 = vor.u32 %v2680_v53, %v2457_v54  ;;  %v2343_v53 = vld [vmem:[#allocation2 + $0x1c8] sm:$0xf] }
  0xa4   : > { %v337_v59 = vpop.f32.mrf.mxu0 }
  0xa5   : > { %v338_v62 = vadd.f32 %v2779_v38, %v337_v59  ;;  %v2363_v59 = vld [vmem:[#allocation2 + $0x1f8] sm:$0xf]  ;;  %1234 = vmatpush.bf16.msrb.mxu3 %v2316_v2  ;;  %v3137_v2 = vperm.slane %v355_v56, 0  ;;  %v2655_v56 = vld [vmem:[#allocation2 + $0x1e0] sm:$0xf0] }
  0xa7   : > { %v346_v5 = vmax.f32 %v338_v62, 0.0  ;;  %v2364_v62 = vor.u32 %v2661_v61, %v2363_v59  ;;  %v2683_v59 = vld [vmem:[#allocation2 + $0x2c0] sm:$0xf0]  ;;  %v2175_v61 = vld [vmem:[#allocation2 + $0x78] sm:$0xf] }
  0xa8   : > { %v2456_v60 = vor.u32 %v2683_v59, %v2455_v55 }
  0xa9   : > { %v349_v7 = vpack.c.bf16 %v346_v5, %v345_v4  ;;  %v2320_v4 = vor.u32 %v2645_v1, %v2317_v3  ;;  %v2651_v5 = vld [vmem:[#allocation2 + $0x1c4] sm:$0xf]  ;;  %v2177_v1 = vld [vmem:[#allocation2 + $0x94] sm:$0xf0] }
  0xaa   : > { %v2180_v3 = vor.u32 %v2610_v63, %v2177_v1  ;;  %v2639_v63 = vld [vmem:[#allocation2 + $0x164] sm:$0xf] }
  0xab   : > { %2105 = vmatmul.msk.bf16.vlgmr.msra.gmra.mxu1 %vm381_vm2, %v349_v7  ;;  %2107 = vmatmul.msk.bf16.vlgmr.msra.gmra.mxu2 %vm381_vm2, %v349_v7  ;;  %v2335_v7 = vld [vmem:[#allocation2 + $0x1c0] sm:$0xf] }
  0xac   : > { %v340_v8 = vpop.f32.mrf.mxu0  ;;  %1272 = vmatpush.bf16.msra.mxu1 %v2320_v4  ;;  %v2673_v4 = vld [vmem:[#allocation2 + $0x274] sm:$0xf] }
  0xad   : > { %v341_v9 = vadd.f32 %v2779_v38, %v340_v8  ;;  %v2340_v8 = vor.u32 %v2651_v5, %v2337_v6  ;;  %v2429_v5 = vld [vmem:[#allocation2 + $0x28c] sm:$0xf0] }
  0xae   : > { %v2432_v6 = vor.u32 %v2673_v4, %v2429_v5  ;;  %v2702_v4 = vld [vmem:[#allocation2 + $0x35c] sm:$0xf]  ;;  %v2549_v5 = vld [vmem:[#allocation2 + $0x374] sm:$0xf0] }
  0xaf   : > { %v347_v12 = vmax.f32 %v341_v9, 0.0  ;;  %v2654_v9 = vld [vmem:[#allocation2 + $0x1d8] sm:$0xf0]  ;;  %1222 = vmatpush.bf16.msrb.mxu2 %v2340_v8  ;;  %v2676_v8 = vld [vmem:[#allocation2 + $0x288] sm:$0xf0] }
  0xb3   : > { %1291 = vmatpush.bf16.msra.mxu2 %v2544_v20 }
  0xb4   : > { %v342_v10 = vpop.f32.mrf.mxu0 }
  0xb5   : > { %v343_v11 = vadd.f32 %v2779_v38, %v342_v10  ;;  %v2420_v38 = vor.u32 %v2675_v37, %v2419_v36  ;;  %v2336_v10 = vor.u32 %v2654_v9, %v2335_v7  ;;  %v2627_v36 = vld [vmem:[#allocation2 + $0x100] sm:$0xf0]  ;;  %v2624_v37 = vld [vmem:[#allocation2 + $0xec] sm:$0xf]  ;;  %v2427_v7 = vld [vmem:[#allocation2 + $0x270] sm:$0xf] }
  0xb6   : > { %v2236_v40 = vor.u32 %v2624_v37, %v2233_v39  ;;  %v2428_v9 = vor.u32 %v2676_v8, %v2427_v7  ;;  %v2662_v37 = vld [vmem:[#allocation2 + $0x218] sm:$0xf0]  ;;  %v2547_v7 = vld [vmem:[#allocation2 + $0x358] sm:$0xf]  ;;  %v2705_v8 = vld [vmem:[#allocation2 + $0x370] sm:$0xf0] }
  0xb7   : > { %v348_v13 = vmax.f32 %v343_v11, 0.0  ;;  %1181 = vmatpush.bf16.msrb.mxu0 %v2420_v38  ;;  %v2287_v11 = vld [vmem:[#allocation2 + $0x158] sm:$0xf]  ;;  %1292 = vmatpush.bf16.msra.mxu2 %v2516_v32  ;;  %v2232_v38 = vor.u32 %v2627_v36, %v2231_v35  ;;  %v2371_v36 = vld [vmem:[#allocation2 + $0x200] sm:$0xf] }
  0xb9   : > { %v350_v14 = vpack.c.bf16 %v348_v13, %v347_v12  ;;  %v2641_v12 = vld [vmem:[#allocation2 + $0x170] sm:$0xf0]  ;;  %v2638_v13 = vld [vmem:[#allocation2 + $0x15c] sm:$0xf] }
  0xba   : > { %v2292_v16 = vor.u32 %v2638_v13, %v2289_v15  ;;  %v2149_v15 = vld [vmem:[#allocation2 + $0x5c] sm:$0xf0] }
  0xbb   : > { %2106 = vmatmul.msk.bf16.gmra.mxu1 %vm381_vm2, %v350_v14  ;;  %2108 = vmatmul.msk.bf16.gmra.mxu2 %vm381_vm2, %v350_v14  ;;  %v2288_v14 = vor.u32 %v2641_v12, %v2287_v11  ;;  %v2606_v11 = vld [vmem:[#allocation2 + $0x58] sm:$0xf0]  ;;  %v2603_v12 = vld [vmem:[#allocation2 + $0x44] sm:$0xf] }
  0xbc   : > { %1182 = vmatpush.bf16.msrb.mxu0 %v2392_v50  ;;  %1273 = vmatpush.bf16.msra.mxu1 %v2292_v16  ;;  %v2204_v50 = vor.u32 %v2620_v48, %v2203_v47  ;;  %v2666_v16 = vld [vmem:[#allocation2 + $0x23c] sm:$0xf]  ;;  %v2152_v19 = vor.u32 %v2603_v12, %v2149_v15  ;;  %v2325_v48 = vld [vmem:[#allocation2 + $0x1b4] sm:$0xf0]  ;;  %v2632_v12 = vld [vmem:[#allocation2 + $0x12c] sm:$0xf] }
  0xbd   : > { %1235 = vmatpush.bf16.msrb.mxu3 %v2288_v14  ;;  %1293 = vmatpush.bf16.msra.mxu2 %v2488_v44  ;;  %v2404_v20 = vor.u32 %v2666_v16, %v2401_v17  ;;  %v2649_v44 = vld [vmem:[#allocation2 + $0x1b0] sm:$0xf0]  ;;  %v2269_v15 = vld [vmem:[#allocation2 + $0x144] sm:$0xf0]  ;;  %v2695_v16 = vld [vmem:[#allocation2 + $0x324] sm:$0xf] }
  0xbe   : > { %v2324_v47 = vor.u32 %v2649_v44, %v2323_v43  ;;  %v2521_v17 = vld [vmem:[#allocation2 + $0x33c] sm:$0xf0]  ;;  %v2211_v44 = vld [vmem:[#allocation2 + $0xb8] sm:$0xf] }
  0xc0   : > { %1183 = vmatpush.bf16.msrb.mxu0 %v2364_v62  ;;  %1274 = vmatpush.bf16.msra.mxu1 %v2264_v28  ;;  %v2613_v62 = vld [vmem:[#allocation2 + $0x90] sm:$0xf0]  ;;  %v2121_v28 = vld [vmem:[#allocation2 + $0x24] sm:$0xf0] }
  0xc1   : > { %1236 = vmatpush.bf16.msrb.mxu3 %v2260_v26  ;;  %1294 = vmatpush.bf16.msra.mxu2 %v2460_v58  ;;  %v2176_v0 = vor.u32 %v2613_v62, %v2175_v61  ;;  %v2599_v26 = vld [vmem:[#allocation2 + $0x20] sm:$0xf0]  ;;  %v2124_v32 = vor.u32 %v2596_v27, %v2121_v28  ;;  %v2642_v58 = vld [vmem:[#allocation2 + $0x178] sm:$0xf0]  ;;  %v2344_v61 = vor.u32 %v2655_v56, %v2343_v53  ;;  %v2625_v27 = vld [vmem:[#allocation2 + $0xf4] sm:$0xf] }
  0xc2   : > { %v2120_v31 = vor.u32 %v2599_v26, %v2119_v23  ;;  %v2239_v23 = vld [vmem:[#allocation2 + $0xf0] sm:$0xf]  ;;  %v2628_v26 = vld [vmem:[#allocation2 + $0x108] sm:$0xf0]  ;;  %v2183_v56 = vld [vmem:[#allocation2 + $0x80] sm:$0xf] }
  0xc3   : > { %v2241_v28 = vld [vmem:[#allocation2 + $0x10c] sm:$0xf0] }
  0xc4   : > { %1184 = vmatpush.bf16.msrb.mxu0 %v2336_v10  ;;  %1275 = vmatpush.bf16.msra.mxu1 %v2236_v40  ;;  %v2147_v10 = vld [vmem:[#allocation2 + $0x40] sm:$0xf]  ;;  %v2372_v40 = vor.u32 %v2662_v37, %v2371_v36  ;;  %v2491_v36 = vld [vmem:[#allocation2 + $0x2e8] sm:$0xf]  ;;  %v2691_v37 = vld [vmem:[#allocation2 + $0x300] sm:$0xf0] }
  0xc5   : > { %1237 = vmatpush.bf16.msrb.mxu3 %v2232_v38  ;;  %1295 = vmatpush.bf16.msra.mxu2 %v2432_v6  ;;  %v2148_v14 = vor.u32 %v2606_v11, %v2147_v10  ;;  %v2552_v6 = vor.u32 %v2702_v4, %v2549_v5  ;;  %v2267_v10 = vld [vmem:[#allocation2 + $0x128] sm:$0xf]  ;;  %v2635_v11 = vld [vmem:[#allocation2 + $0x140] sm:$0xf0]  ;;  %v2463_v53 = vld [vmem:[#allocation2 + $0x2b0] sm:$0xf] }
  0xc6   : > { %v2437_v4 = vld [vmem:[#allocation2 + $0x294] sm:$0xf0] }
  0xc7   : > { %v2435_v5 = vld [vmem:[#allocation2 + $0x278] sm:$0xf] }
  0xc8   : > { %1253 = vmatpush.bf16.msra.mxu0 %v2540_v22  ;;  %1276 = vmatpush.bf16.msra.mxu1 %v2208_v52  ;;  %v2669_v22 = vld [vmem:[#allocation2 + $0x250] sm:$0xf0]  ;;  %v2345_v52 = vld [vmem:[#allocation2 + $0x1e4] sm:$0xf0] }
  0xc9   : > { %1238 = vmatpush.bf16.msrb.mxu3 %v2204_v50  ;;  %v2400_v25 = vor.u32 %v2669_v22, %v2399_v21  ;;  %1296 = vmatpush.bf16.msra.mxu2 %v2404_v20  ;;  %v2328_v50 = vor.u32 %v2646_v45, %v2325_v48  ;;  %v2348_v55 = vor.u32 %v2652_v51, %v2345_v52  ;;  %v2519_v21 = vld [vmem:[#allocation2 + $0x320] sm:$0xf]  ;;  %v2698_v22 = vld [vmem:[#allocation2 + $0x338] sm:$0xf0]  ;;  %v2213_v48 = vld [vmem:[#allocation2 + $0xd4] sm:$0xf0] }
  0xca   : > { %v2524_v20 = vor.u32 %v2695_v16, %v2521_v17  ;;  %v2618_v45 = vld [vmem:[#allocation2 + $0xbc] sm:$0xf]  ;;  %v2681_v51 = vld [vmem:[#allocation2 + $0x2b4] sm:$0xf]  ;;  %v2465_v52 = vld [vmem:[#allocation2 + $0x2cc] sm:$0xf0] }
  0xcc   : > { %1254 = vmatpush.bf16.msra.mxu0 %v2512_v34  ;;  %1277 = vmatpush.bf16.msra.mxu1 %v2180_v3  ;;  %v2373_v34 = vld [vmem:[#allocation2 + $0x21c] sm:$0xf0] }
  0xcd   : > { %1239 = vmatpush.bf16.msrb.mxu3 %v2176_v0  ;;  %v2376_v35 = vor.u32 %v2659_v33, %v2373_v34  ;;  %v2297_v0 = vld [vmem:[#allocation2 + $0x17c] sm:$0xf0]  ;;  %v2493_v33 = vld [vmem:[#allocation2 + $0x304] sm:$0xf0]  ;;  %v2244_v34 = vor.u32 %v2625_v27, %v2241_v28 }
  0xce   : > { %v2300_v1 = vor.u32 %v2639_v63, %v2297_v0  ;;  %v2381_v27 = vld [vmem:[#allocation2 + $0x224] sm:$0xf0] }
  0xcf   : > { %1297 = vmatpush.bf16.msra.mxu2 %v2376_v35  ;;  %v2379_v28 = vld [vmem:[#allocation2 + $0x208] sm:$0xf] }
  0xd0   : > { %1255 = vmatpush.bf16.msra.mxu0 %v2484_v46  ;;  %1278 = vmatpush.bf16.msra.mxu1 %v2152_v19  ;;  %v2272_v19 = vor.u32 %v2632_v12, %v2269_v15  ;;  %v2409_v15 = vld [vmem:[#allocation2 + $0x25c] sm:$0xf0] }
  0xd1   : > { %1240 = vmatpush.bf16.msrb.mxu3 %v2148_v14  ;;  %v2268_v14 = vor.u32 %v2635_v11, %v2267_v10  ;;  %v2607_v10 = vld [vmem:[#allocation2 + $0x60] sm:$0xf0]  ;;  %v2604_v11 = vld [vmem:[#allocation2 + $0x4c] sm:$0xf] }
  0xd3   : > { %1298 = vmatpush.bf16.msra.mxu2 %v2348_v55  ;;  %v2684_v55 = vld [vmem:[#allocation2 + $0x2c8] sm:$0xf0] }
  0xd4   : > { %1256 = vmatpush.bf16.msra.mxu0 %v2456_v60  ;;  %1279 = vmatpush.bf16.msra.mxu1 %v2124_v32  ;;  %v2688_v32 = vld [vmem:[#allocation2 + $0x2ec] sm:$0xf] }
  0xd5   : > { %1241 = vmatpush.bf16.msrb.mxu3 %v2120_v31  ;;  %v2240_v31 = vor.u32 %v2628_v26, %v2239_v23  ;;  %v2496_v35 = vor.u32 %v2688_v32, %v2493_v33  ;;  %v2597_v23 = vld [vmem:[#allocation2 + $0x14] sm:$0xf]  ;;  %v2660_v26 = vld [vmem:[#allocation2 + $0x20c] sm:$0xf]  ;;  %v2663_v32 = vld [vmem:[#allocation2 + $0x220] sm:$0xf0] }
  0xd6   : > { %v2380_v33 = vor.u32 %v2663_v32, %v2379_v28  ;;  %v3188_v28 = vld [vmem:[%s3658_s6] sm:$0xff] }
  0xd8   : > { %1257 = vmatpush.bf16.msra.mxu0 %v2428_v9  ;;  %v2548_v9 = vor.u32 %v2705_v8, %v2547_v7  ;;  %v2677_v7 = vld [vmem:[#allocation2 + $0x290] sm:$0xf0] }
  0xd9   : > { %v2436_v8 = vor.u32 %v2677_v7, %v2435_v5  ;;  %v2443_v5 = vld [vmem:[#allocation2 + $0x280] sm:$0xf]  ;;  %v2678_v7 = vld [vmem:[#allocation2 + $0x298] sm:$0xf0] }
  0xdc   : > { %1258 = vmatpush.bf16.msra.mxu0 %v2400_v25  ;;  %v2520_v25 = vor.u32 %v2698_v22, %v2519_v21  ;;  %v2600_v22 = vld [vmem:[#allocation2 + $0x28] sm:$0xf0] }
  0xe0   : > { %1259 = vmatpush.bf16.msra.mxu0 %v2372_v40  ;;  %v2492_v40 = vor.u32 %v2691_v37, %v2491_v36  ;;  %v2555_v36 = vld [vmem:[#allocation2 + $0x360] sm:$0xf] }
  0xe4   : > { %1260 = vmatpush.bf16.msra.mxu0 %v2344_v61 }
 0x128   : > { %v397_v57 = vpop.f32.mrf.mxu1 }
 0x129   : > { %v398_v18 = vadd.f32 %v397_v57, %v3137_v2  ;;  %v2295_v57 = vld [vmem:[#allocation2 + $0x160] sm:$0xf] }
 0x12a   : > { %v2296_v62 = vor.u32 %v2642_v58, %v2295_v57  ;;  %v2614_v57 = vld [vmem:[#allocation2 + $0x98] sm:$0xf0] }
 0x12b   : > { %v426_v38 = vmax.f32 %v398_v18, 0.0  ;;  %v2184_v61 = vor.u32 %v2614_v57, %v2183_v56  ;;  %v2692_v57 = vld [vmem:[#allocation2 + $0x308] sm:$0xf0] }
 0x12e   : > { %v416_v13 = vpop.f32.mrf.mxu2 }
 0x12f   : > { %v417_v41 = vadd.f32 %v416_v13, %v3140_v29 }
 0x130   : > { %v399_v24 = vpop.f32.mrf.mxu1 }
 0x131   : > { %v400_v30 = vadd.f32 %v399_v24, %v3137_v2  ;;  %v427_v59 = vmax.f32 %v417_v41, 0.0 }
 0x133   : > { %v428_v39 = vmax.f32 %v400_v30, 0.0 }
 0x135   : > { %v3144_v42 = vpack.c.bf16 %v428_v39, %v426_v38 }
 0x136   : > { %v418_v46 = vpop.f32.mrf.mxu2 }
 0x137   : > { %v419_v49 = vadd.f32 %v418_v46, %v3140_v29  ;;  %1166 = vmatmul.bf16.vlgmr.msra.gmra.mxu3 %v3144_v42  ;;  %1204 = vmatmul.bf16.vlgmr.msrb.gmra.mxu1 %v3144_v42 }
 0x138   : > { %v402_v54 = vpop.f32.mrf.mxu1  ;;  %1310 = vmatpush.bf16.msra.mxu3 %v2324_v47  ;;  %1348 = vmatpush.bf16.msrb.mxu1 %v2328_v50  ;;  %v2216_v50 = vor.u32 %v2618_v45, %v2213_v48  ;;  %v2656_v45 = vld [vmem:[#allocation2 + $0x1e8] sm:$0xf0] }
 0x139   : > { %v429_v60 = vmax.f32 %v419_v49, 0.0  ;;  %v403_v18 = vadd.f32 %v402_v54, %v3137_v2  ;;  %v2468_v54 = vor.u32 %v2681_v51, %v2465_v52  ;;  %v2699_v51 = vld [vmem:[#allocation2 + $0x340] sm:$0xf0] }
 0x13b   : > { %v3149_v3 = vpack.c.bf16 %v429_v60, %v427_v59  ;;  %v430_v38 = vmax.f32 %v403_v18, 0.0  ;;  %v2464_v60 = vor.u32 %v2684_v55, %v2463_v53  ;;  %v2407_v18 = vld [vmem:[#allocation2 + $0x240] sm:$0xf]  ;;  %v2275_v53 = vld [vmem:[#allocation2 + $0x130] sm:$0xf] }
 0x13c   : > { %1311 = vmatpush.bf16.msra.mxu3 %v2296_v62  ;;  %1349 = vmatpush.bf16.msrb.mxu1 %v2300_v1  ;;  %v2611_v62 = vld [vmem:[#allocation2 + $0x84] sm:$0xf]  ;;  %v2674_v1 = vld [vmem:[#allocation2 + $0x27c] sm:$0xf]  ;;  %v2499_v55 = vld [vmem:[#allocation2 + $0x2f0] sm:$0xf] }
 0x13d   : > { %1185 = vmatmul.bf16.vlgmr.msrb.gmra.mxu0 %v3149_v3  ;;  %1223 = vmatmul.bf16.vlgmr.msrb.gmra.mxu2 %v3149_v3 }
 0x13e   : > { %v421_v13 = vpop.f32.mrf.mxu2  ;;  %1367 = vmatpush.bf16.msrb.mxu2 %v2552_v6  ;;  %1329 = vmatpush.bf16.msrb.mxu0 %v2548_v9  ;;  %v2440_v6 = vor.u32 %v2674_v1, %v2437_v4  ;;  %v2155_v9 = vld [vmem:[#allocation2 + $0x48] sm:$0xf]  ;;  %v2219_v1 = vld [vmem:[#allocation2 + $0xc0] sm:$0xf]  ;;  %v2622_v4 = vld [vmem:[#allocation2 + $0xd8] sm:$0xf0] }
 0x13f   : > { %v422_v41 = vadd.f32 %v421_v13, %v3140_v29  ;;  %v2156_v12 = vor.u32 %v2607_v10, %v2155_v9  ;;  %v2157_v13 = vld [vmem:[#allocation2 + $0x64] sm:$0xf0]  ;;  %v2615_v10 = vld [vmem:[#allocation2 + $0xa0] sm:$0xf0] }
 0x140   : > { %v404_v24 = vpop.f32.mrf.mxu1  ;;  %1312 = vmatpush.bf16.msra.mxu3 %v2268_v14  ;;  %1350 = vmatpush.bf16.msrb.mxu1 %v2272_v19  ;;  %v2667_v14 = vld [vmem:[#allocation2 + $0x244] sm:$0xf]  ;;  %v2160_v16 = vor.u32 %v2604_v11, %v2157_v13  ;;  %v2670_v19 = vld [vmem:[#allocation2 + $0x258] sm:$0xf0]  ;;  %v2191_v9 = vld [vmem:[#allocation2 + $0x88] sm:$0xf] }
 0x141   : > { %v405_v30 = vadd.f32 %v404_v24, %v3137_v2  ;;  %v2621_v2 = vld [vmem:[#allocation2 + $0xd0] sm:$0xf0]  ;;  %v431_v58 = vmax.f32 %v422_v41, 0.0  ;;  %v2412_v17 = vor.u32 %v2667_v14, %v2409_v15  ;;  %v2408_v21 = vor.u32 %v2670_v19, %v2407_v18  ;;  %v2129_v24 = vld [vmem:[#allocation2 + $0x2c] sm:$0xf0] }
 0x142   : > { %1368 = vmatpush.bf16.msrb.mxu2 %v2524_v20  ;;  %1330 = vmatpush.bf16.msrb.mxu0 %v2520_v25  ;;  %v2212_v47 = vor.u32 %v2621_v2, %v2211_v44  ;;  %v2127_v20 = vld [vmem:[#allocation2 + $0x10] sm:$0xf]  ;;  %v2415_v11 = vld [vmem:[#allocation2 + $0x248] sm:$0xf]  ;;  %v2671_v13 = vld [vmem:[#allocation2 + $0x260] sm:$0xf0] }
 0x143   : > { %v432_v39 = vmax.f32 %v405_v30, 0.0  ;;  %v2128_v25 = vor.u32 %v2600_v22, %v2127_v20  ;;  %v2132_v30 = vor.u32 %v2597_v23, %v2129_v24  ;;  %v2353_v41 = vld [vmem:[#allocation2 + $0x1ec] sm:$0xf0]  ;;  %v2416_v14 = vor.u32 %v2671_v13, %v2415_v11  ;;  %v2664_v19 = vld [vmem:[#allocation2 + $0x228] sm:$0xf0] }
 0x144   : > { %1313 = vmatpush.bf16.msra.mxu3 %v2240_v31  ;;  %1351 = vmatpush.bf16.msrb.mxu1 %v2244_v34  ;;  %v2384_v31 = vor.u32 %v2660_v26, %v2381_v27  ;;  %v2331_v34 = vld [vmem:[#allocation2 + $0x1a0] sm:$0xf]  ;;  %v2351_v44 = vld [vmem:[#allocation2 + $0x1d0] sm:$0xf]  ;;  %v2135_v20 = vld [vmem:[#allocation2 + $0x18] sm:$0xf] }
 0x145   : > { %v3156_v43 = vpack.c.bf16 %v432_v39, %v430_v38  ;;  %v2706_v38 = vld [vmem:[#allocation2 + $0x378] sm:$0xf0]  ;;  %v2352_v48 = vor.u32 %v2656_v45, %v2351_v44  ;;  %v2163_v15 = vld [vmem:[#allocation2 + $0x50] sm:$0xf]  ;;  %v2359_v23 = vld [vmem:[#allocation2 + $0x1d8] sm:$0xf] }
 0x146   : > { %v423_v46 = vpop.f32.mrf.mxu2  ;;  %1369 = vmatpush.bf16.msrb.mxu2 %v2496_v35  ;;  %1331 = vmatpush.bf16.msrb.mxu0 %v2492_v40  ;;  %v2650_v35 = vld [vmem:[#allocation2 + $0x1b8] sm:$0xf0]  ;;  %v2556_v39 = vor.u32 %v2706_v38, %v2555_v36  ;;  %v2653_v40 = vld [vmem:[#allocation2 + $0x1d4] sm:$0xf] }
 0x147   : > { %v424_v49 = vadd.f32 %v423_v46, %v3140_v29  ;;  %1171 = vmatmul.bf16.gmra.mxu3 %v3156_v43  ;;  %1209 = vmatmul.bf16.gmra.mxu1 %v3156_v43  ;;  %v2185_v29 = vld [vmem:[#allocation2 + $0x9c] sm:$0xf0]  ;;  %v2332_v37 = vor.u32 %v2650_v35, %v2331_v34  ;;  %v2356_v2 = vor.u32 %v2653_v40, %v2353_v41  ;;  %v2303_v46 = vld [vmem:[#allocation2 + $0x168] sm:$0xf]  ;;  %v2657_v24 = vld [vmem:[#allocation2 + $0x1f0] sm:$0xf0] }
 0x148   : > { %1314 = vmatpush.bf16.msra.mxu3 %v2212_v47  ;;  %1352 = vmatpush.bf16.msrb.mxu1 %v2216_v50  ;;  %v2188_v63 = vor.u32 %v2611_v62, %v2185_v29  ;;  %v2643_v47 = vld [vmem:[#allocation2 + $0x180] sm:$0xf0]  ;;  %v2527_v50 = vld [vmem:[#allocation2 + $0x328] sm:$0xf]  ;;  %v2685_v62 = vld [vmem:[#allocation2 + $0x2d0] sm:$0xf0]  ;;  %v2360_v26 = vor.u32 %v2657_v24, %v2359_v23 }
 0x149   : > { %v433_v59 = vmax.f32 %v424_v49, 0.0  ;;  %v2304_v49 = vor.u32 %v2643_v47, %v2303_v46  ;;  %v2528_v52 = vor.u32 %v2699_v51, %v2527_v50 }
 0x14a   : > { %1370 = vmatpush.bf16.msrb.mxu2 %v2468_v54  ;;  %1332 = vmatpush.bf16.msrb.mxu0 %v2464_v60  ;;  %v2636_v54 = vld [vmem:[#allocation2 + $0x148] sm:$0xf0]  ;;  %v2500_v60 = vor.u32 %v2692_v57, %v2499_v55 }
 0x14b   : > { %v3161_v0 = vpack.c.bf16 %v433_v59, %v431_v58  ;;  %v2276_v56 = vor.u32 %v2636_v54, %v2275_v53  ;;  %v2247_v58 = vld [vmem:[#allocation2 + $0xf8] sm:$0xf]  ;;  %v2629_v59 = vld [vmem:[#allocation2 + $0x110] sm:$0xf0] }
 0x14c   : > { %1315 = vmatpush.bf16.msra.mxu3 %v2184_v61  ;;  %1353 = vmatpush.bf16.msrb.mxu1 %v2188_v63  ;;  %v2471_v61 = vld [vmem:[#allocation2 + $0x2b8] sm:$0xf]  ;;  %v2248_v29 = vor.u32 %v2629_v59, %v2247_v58 }
 0x14d   : > { %1190 = vmatmul.bf16.gmra.mxu0 %v3161_v0  ;;  %1228 = vmatmul.bf16.gmra.mxu2 %v3161_v0  ;;  %v2472_v63 = vor.u32 %v2685_v62, %v2471_v61 }
 0x14e   : > { %1371 = vmatpush.bf16.msrb.mxu2 %v2440_v6  ;;  %1333 = vmatpush.bf16.msrb.mxu0 %v2436_v8  ;;  %v2220_v6 = vor.u32 %v2622_v4, %v2219_v1  ;;  %v2444_v8 = vor.u32 %v2678_v7, %v2443_v5 }
 0x150   : > { %1316 = vmatpush.bf16.msra.mxu3 %v2156_v12  ;;  %1354 = vmatpush.bf16.msrb.mxu1 %v2160_v16  ;;  %v2192_v12 = vor.u32 %v2615_v10, %v2191_v9  ;;  %v2608_v16 = vld [vmem:[#allocation2 + $0x68] sm:$0xf0]  ;;  %v3213_v9 = vperm.slane %v3188_v28, 2 }
 0x151   : > { %v2164_v18 = vor.u32 %v2608_v16, %v2163_v15 }
 0x152   : > { %1372 = vmatpush.bf16.msrb.mxu2 %v2412_v17  ;;  %1334 = vmatpush.bf16.msrb.mxu0 %v2408_v21  ;;  %v2387_v17 = vld [vmem:[#allocation2 + $0x210] sm:$0xf]  ;;  %v2601_v21 = vld [vmem:[#allocation2 + $0x30] sm:$0xf0] }
 0x153   : > { %v2388_v22 = vor.u32 %v2664_v19, %v2387_v17 }
 0x154   : > { %1317 = vmatpush.bf16.msra.mxu3 %v2128_v25  ;;  %1355 = vmatpush.bf16.msrb.mxu1 %v2132_v30  ;;  %v2136_v25 = vor.u32 %v2601_v21, %v2135_v20  ;;  %v3191_v30 = vperm.slane %v3188_v28, 0 }
 0x156   : > { %1373 = vmatpush.bf16.msrb.mxu2 %v2384_v31  ;;  %1335 = vmatpush.bf16.msrb.mxu0 %v2380_v33  ;;  %v3194_v33 = vperm.slane %v3188_v28, 1 }
 0x157   : > { %1242 = vmatmul.bf16.vlgmr.msrb.gmra.mxu3 %v3144_v42  ;;  %1280 = vmatmul.bf16.vlgmr.msra.gmra.mxu1 %v3144_v42 }
 0x158   : > { %2707 = vmatpush.bf16.msrb.mxu3 %v2332_v37  ;;  %2715 = vmatpush.bf16.msra.mxu1 %v2556_v39 }
 0x15a   : > { %1374 = vmatpush.bf16.msrb.mxu2 %v2356_v2  ;;  %1336 = vmatpush.bf16.msrb.mxu0 %v2352_v48 }
 0x15c   : > { %2708 = vmatpush.bf16.msrb.mxu3 %v2304_v49  ;;  %2716 = vmatpush.bf16.msra.mxu1 %v2528_v52 }
 0x15d   : > { %1261 = vmatmul.bf16.vlgmr.msra.gmra.mxu0 %v3149_v3  ;;  %1299 = vmatmul.bf16.vlgmr.msra.gmra.mxu2 %v3149_v3 }
 0x15e   : > { %1386 = vmatpush.bf16.msra.mxu2 %v2332_v37  ;;  %1405 = vmatpush.bf16.msra.mxu0 %v2556_v39 }
 0x160   : > { %2709 = vmatpush.bf16.msrb.mxu3 %v2276_v56  ;;  %2717 = vmatpush.bf16.msra.mxu1 %v2500_v60 }
 0x162   : > { %1387 = vmatpush.bf16.msra.mxu2 %v2304_v49  ;;  %1406 = vmatpush.bf16.msra.mxu0 %v2528_v52 }
 0x164   : > { %2710 = vmatpush.bf16.msrb.mxu3 %v2248_v29  ;;  %2718 = vmatpush.bf16.msra.mxu1 %v2472_v63 }
 0x166   : > { %1388 = vmatpush.bf16.msra.mxu2 %v2276_v56  ;;  %1407 = vmatpush.bf16.msra.mxu0 %v2500_v60 }
 0x167   : > { %1247 = vmatmul.bf16.gmra.mxu3 %v3156_v43  ;;  %1285 = vmatmul.bf16.gmra.mxu1 %v3156_v43 }
 0x168   : > { %2711 = vmatpush.bf16.msrb.mxu3 %v2220_v6  ;;  %2719 = vmatpush.bf16.msra.mxu1 %v2444_v8 }
 0x16a   : > { %1389 = vmatpush.bf16.msra.mxu2 %v2248_v29  ;;  %1408 = vmatpush.bf16.msra.mxu0 %v2472_v63 }
 0x16c   : > { %2712 = vmatpush.bf16.msrb.mxu3 %v2192_v12  ;;  %2720 = vmatpush.bf16.msra.mxu1 %v2416_v14 }
 0x16d   : > { %1266 = vmatmul.bf16.gmra.mxu0 %v3161_v0  ;;  %1304 = vmatmul.bf16.gmra.mxu2 %v3161_v0 }
 0x16e   : > { %1390 = vmatpush.bf16.msra.mxu2 %v2220_v6  ;;  %1409 = vmatpush.bf16.msra.mxu0 %v2444_v8  ;;  %v3210_v8 = vperm.slane %v3188_v28, 3 }
 0x170   : > { %2713 = vmatpush.bf16.msrb.mxu3 %v2164_v18  ;;  %2721 = vmatpush.bf16.msra.mxu1 %v2388_v22 }
 0x172   : > { %1391 = vmatpush.bf16.msra.mxu2 %v2192_v12  ;;  %1410 = vmatpush.bf16.msra.mxu0 %v2416_v14 }
 0x174   : > { %2714 = vmatpush.bf16.msrb.mxu3 %v2136_v25  ;;  %2722 = vmatpush.bf16.msra.mxu1 %v2360_v26 }
 0x176   : > { %1392 = vmatpush.bf16.msra.mxu2 %v2164_v18  ;;  %1411 = vmatpush.bf16.msra.mxu0 %v2388_v22 }
 0x177   : > { %1318 = vmatmul.bf16.vlgmr.msra.gmra.mxu3 %v3144_v42  ;;  %1356 = vmatmul.bf16.vlgmr.msrb.gmra.mxu1 %v3144_v42 }
 0x17a   : > { %1393 = vmatpush.bf16.msra.mxu2 %v2136_v25  ;;  %1412 = vmatpush.bf16.msra.mxu0 %v2360_v26 }
 0x17d   : > { %1337 = vmatmul.bf16.vlgmr.msrb.gmra.mxu0 %v3149_v3  ;;  %1375 = vmatmul.bf16.vlgmr.msrb.gmra.mxu2 %v3149_v3 }
 0x187   : > { %1323 = vmatmul.bf16.gmra.mxu3 %v3156_v43  ;;  %1361 = vmatmul.bf16.gmra.mxu1 %v3156_v43 }
 0x18d   : > { %1342 = vmatmul.bf16.gmra.mxu0 %v3161_v0  ;;  %1380 = vmatmul.bf16.gmra.mxu2 %v3161_v0 }
 0x197   : > { %1399 = vmatmul.bf16.vlgmr.msrb.gmra.mxu3 %v3156_v43  ;;  %1418 = vmatmul.bf16.vlgmr.msra.gmra.mxu1 %v3161_v0 }
 0x19d   : > { %1394 = vmatmul.bf16.vlgmr.msra.gmra.mxu2 %v3144_v42  ;;  %1413 = vmatmul.bf16.vlgmr.msra.gmra.mxu0 %v3149_v3 }
 0x1b4   : > { %v1205_v27 = vpop.f32.mrf.mxu1 }
 0x1b5   : > { %v1206_v3 = vadd.f32 %v1205_v27, %v3194_v33 }
 0x1ba   : > { %v1167_v31 = vpop.f32.mrf.mxu3  ;;  %v1186_v32 = vpop.f32.mrf.mxu0 }
 0x1bb   : > { %v1168_v43 = vadd.f32 %v1167_v31, %v3191_v30 }
 0x1bc   : > { %v1207_v0 = vpop.f32.mrf.mxu1 }
 0x1bd   : > { %v1187_v42 = vadd.f32 %v1186_v32, %v1168_v43  ;;  %v1208_v45 = vadd.f32 %v1207_v0, %v3194_v33 }
 0x1bf   : > { %v2557_v34 = vmul.f32 -1.442695, %v1187_v42 }
 0x1c0   : > { %v1224_v35 = vpop.f32.mrf.mxu2 }
 0x1c1   : > { %2780 = vpow2.f32 %v2557_v34  ;;  %v1225_v36 = vadd.f32 %v1224_v35, %v1206_v3 }
 0x1c2   : > { %v1169_v37 = vpop.f32.mrf.mxu3  ;;  %v1188_v38 = vpop.f32.mrf.mxu0 }
 0x1c3   : > { %v2558_v39 = vmul.f32 -1.442695, %v1225_v36  ;;  %v1170_v40 = vadd.f32 %v1169_v37, %v3191_v30 }
 0x1c4   : > { %v1210_v41 = vpop.f32.mrf.mxu1 }
 0x1c5   : > { %2782 = vpow2.f32 %v2558_v39  ;;  %v1189_v44 = vadd.f32 %v1188_v38, %v1170_v40  ;;  %v1211_v60 = vadd.f32 %v1210_v41, %v3194_v33 }
 0x1c7   : > { %v2781_v2 = vpop.eup %2780  ;;  %v2564_v46 = vmul.f32 -1.442695, %v1189_v44 }
 0x1c8   : > { %v1508_v47 = vadd.f32 1.0, %v2781_v2  ;;  %v1226_v48 = vpop.f32.mrf.mxu2 }
 0x1c9   : > { %2784 = vpow2.f32 %v2564_v46  ;;  %v1227_v49 = vadd.f32 %v1226_v48, %v1208_v45 }
 0x1ca   : > { %2786 = vrcp.f32 %v1508_v47  ;;  %v1172_v50 = vpop.f32.mrf.mxu3  ;;  %v1191_v51 = vpop.f32.mrf.mxu0  ;;  %v1545_v59 = vand.u32 2147483647, %v1508_v47  ;;  %v1547_v5 = vand.u32 2147483648, %v1508_v47  ;;  %vm1541_vm3 = vweird.f32 %v1508_v47 }
 0x1cb   : > { %v2783_v52 = vpop.eup %2782  ;;  %v2565_v53 = vmul.f32 -1.442695, %v1227_v49  ;;  %v1173_v54 = vadd.f32 %v1172_v50, %v3191_v30 }
 0x1cc   : > { %v3201_v55 = vadd.f32 1.0, %v2783_v52  ;;  %v1212_v56 = vpop.f32.mrf.mxu1  ;;  %vm3215_vm4 = vcmp.eq.f32.partialorder %v1545_v59, 8.507059e+37  ;;  %v1548_v22 = vor.u32 1.1754944e-38, %v1547_v5 }
 0x1cd   : > { %2788 = vpow2.f32 %v2565_v53  ;;  %v1192_v57 = vadd.f32 %v1191_v51, %v1173_v54  ;;  %v1213_v24 = vadd.f32 %v1212_v56, %v3194_v33 }
 0x1ce   : > { %2790 = vrcp.f32 %v3201_v55  ;;  %v1560_v15 = vand.u32 2147483647, %v3201_v55  ;;  %v1562_v16 = vand.u32 2147483648, %v3201_v55  ;;  %vm1556_vm6 = vweird.f32 %v3201_v55 }
 0x1cf   : > { %v2785_v58 = vpop.eup %2784  ;;  %v2571_v61 = vmul.f32 -1.442695, %v1192_v57 }
 0x1d0   : > { %v2787_v62 = vpop.eup %2786  ;;  %v3205_v29 = vadd.f32 1.0, %v2785_v58  ;;  %v1229_v63 = vpop.f32.mrf.mxu2  ;;  %vm3235_vm8 = vcmp.eq.f32.partialorder %v1560_v15, 8.507059e+37  ;;  %v1563_v43 = vor.u32 1.1754944e-38, %v1562_v16 }
 0x1d1   : > { %v1537_v1 = vmul.f32 %v2787_v62, %v1508_v47  ;;  %2792 = vpow2.f32 %v2571_v61  ;;  %v1230_v4 = vadd.f32 %v1229_v63, %v1211_v60  ;;  %vm1542_vm5 = vweird.f32 %v2787_v62 }
 0x1d2   : > { %2794 = vrcp.f32 %v3205_v29  ;;  %v1174_v6 = vpop.f32.mrf.mxu3  ;;  %v1193_v7 = vpop.f32.mrf.mxu0  ;;  %v1650_v23 = vand.u32 2147483647, %v3205_v29  ;;  %vm1543_vm7 = vmor %vm1541_vm3, %vm1542_vm5  ;;  %vm1646_vm10 = vweird.f32 %v3205_v29 }
 0x1d3   : > { %v2789_v10 = vpop.eup %2788  ;;  %v1538_v11 = vsub.f32 1.0, %v1537_v1  ;;  %v2572_v13 = vmul.f32 -1.442695, %v1230_v4  ;;  %v1175_v18 = vadd.f32 %v1174_v6, %v3191_v30  ;;  %v1652_v30 = vand.u32 2147483648, %v3205_v29 }
 0x1d4   : > { %v2791_v14 = vpop.eup %2790  ;;  %v3225_v17 = vadd.f32 1.0, %v2789_v10  ;;  %v1281_v19 = vpop.f32.mrf.mxu1  ;;  %vm3245_vm11 = vcmp.eq.f32.partialorder %v1650_v23, 8.507059e+37 }
 0x1d5   : > { %v1539_v20 = vmul.f32 %v2787_v62, %v1538_v11  ;;  %v1552_v21 = vmul.f32 %v2791_v14, %v3201_v55  ;;  %2796 = vpow2.f32 %v2572_v13  ;;  %v1194_v42 = vadd.f32 %v1193_v7, %v1175_v18 }
 0x1d6   : > { %2798 = vrcp.f32 %v3225_v17  ;;  %vm1557_vm9 = vweird.f32 %v2791_v14  ;;  %v1653_v2 = vor.u32 1.1754944e-38, %v1652_v30  ;;  %vm1661_vm12 = vweird.f32 %v3225_v17 }
 0x1d7   : > { %v2793_v25 = vpop.eup %2792  ;;  %v1540_v26 = vadd.f32 %v2787_v62, %v1539_v20  ;;  %v1553_v27 = vsub.f32 1.0, %v1552_v21  ;;  %vm1558_vm13 = vmor %vm1556_vm6, %vm1557_vm9  ;;  %v2578_v47 = vmul.f32 -1.442695, %v1194_v42  ;;  %v1665_v56 = vand.u32 2147483647, %v3225_v17 }
 0x1d8   : > { %v2795_v31 = vpop.eup %2794  ;;  %v3239_v0 = vadd.f32 1.0, %v2793_v25  ;;  %v1231_v33 = vpop.f32.mrf.mxu2  ;;  %v1667_v55 = vand.u32 2147483648, %v3225_v17  ;;  %v1282_v60 = vadd.f32 %v1281_v19, %v3210_v8 }
 0x1d9   : > { %v1544_v3 = vsel %vm1543_vm7, %v2787_v62, %v1540_v26  ;;  %v1554_v34 = vmul.f32 %v2791_v14, %v1553_v27  ;;  %v1642_v35 = vmul.f32 %v2795_v31, %v3205_v29  ;;  %v1232_v48 = vadd.f32 %v1231_v33, %v1213_v24 }
 0x1da   : > { %v1549_v36 = vsel %vm3215_vm4, %v1548_v22, %v1544_v3  ;;  %2800 = vrcp.f32 %v3239_v0  ;;  %v1243_v38 = vpop.f32.mrf.mxu3  ;;  %v1262_v39 = vpop.f32.mrf.mxu0  ;;  %vm1647_vm14 = vweird.f32 %v2795_v31  ;;  %v1755_v59 = vand.u32 2147483647, %v3239_v0 }
 0x1db   : > { %v2797_v40 = vpop.eup %2796  ;;  %1956 = vst [vmem:[%s3251_s8] sm:$0xff] %v1549_v36  ;;  %v1555_v41 = vadd.f32 %v2791_v14, %v1554_v34  ;;  %v1643_v44 = vsub.f32 1.0, %v1642_v35  ;;  %v1244_v49 = vadd.f32 %v1243_v38, %v3213_v9  ;;  %vm1648_vm15 = vmor %vm1646_vm10, %vm1647_vm14  ;;  %v1757_v62 = vand.u32 2147483648, %v3239_v0 }
 0x1dc   : > { %v2799_v45 = vpop.eup %2798  ;;  %v3258_v46 = vadd.f32 1.0, %v2797_v40  ;;  %v1283_v50 = vpop.f32.mrf.mxu1  ;;  %v2579_v63 = vmul.f32 -1.442695, %v1232_v48  ;;  %vm3276_vm1 = vcmp.eq.f32.partialorder %v1665_v56, 8.507059e+37  ;;  %v1668_v29 = vor.u32 1.1754944e-38, %v1667_v55 }
 0x1dd   : > { %v1559_v51 = vsel %vm1558_vm13, %v2791_v14, %v1555_v41  ;;  %v1644_v52 = vmul.f32 %v2795_v31, %v1643_v44  ;;  %v1657_v53 = vmul.f32 %v2799_v45, %v3225_v17  ;;  %v1263_v1 = vadd.f32 %v1262_v39, %v1244_v49 }
 0x1de   : > { %v1564_v54 = vsel %vm3235_vm8, %v1563_v43, %v1559_v51  ;;  %2802 = vrcp.f32 %v3258_v46  ;;  %vm1662_vm0 = vweird.f32 %v2799_v45  ;;  %vm1751_vm3 = vweird.f32 %v3239_v0 }
 0x1df   : > { %1957 = vst [vmem:[%s3251_s8 + $0x8] sm:$0xff] %v1564_v54  ;;  %v1645_v57 = vadd.f32 %v2795_v31, %v1644_v52  ;;  %v1658_v58 = vsub.f32 1.0, %v1657_v53  ;;  %2804 = vpow2.f32 %v2578_v47  ;;  %v2559_v16 = vmul.f32 -1.442695, %v1263_v1  ;;  %vm1663_vm2 = vmor %vm1661_vm12, %vm1662_vm0 }
 0x1e0   : > { %v2801_v61 = vpop.eup %2800  ;;  %v1300_v4 = vpop.f32.mrf.mxu2  ;;  %2806 = vpow2.f32 %v2579_v63  ;;  %vm3284_vm4 = vcmp.eq.f32.partialorder %v1755_v59, 8.507059e+37  ;;  %v1758_v21 = vor.u32 1.1754944e-38, %v1757_v62  ;;  %v1772_v42 = vand.u32 2147483648, %v3258_v46 }
 0x1e1   : > { %v1649_v5 = vsel %vm1648_vm15, %v2795_v31, %v1645_v57  ;;  %v1659_v6 = vmul.f32 %v2799_v45, %v1658_v58  ;;  %v1747_v7 = vmul.f32 %v2801_v61, %v3239_v0  ;;  %v1301_v18 = vadd.f32 %v1300_v4, %v1282_v60 }
 0x1e2   : > { %v1654_v10 = vsel %vm3245_vm11, %v1653_v2, %v1649_v5  ;;  %v1245_v12 = vpop.f32.mrf.mxu3  ;;  %v1264_v13 = vpop.f32.mrf.mxu0  ;;  %vm1752_vm5 = vweird.f32 %v2801_v61  ;;  %2808 = vpow2.f32 %v2559_v16  ;;  %v1770_v34 = vand.u32 2147483647, %v3258_v46 }
 0x1e3   : > { %1963 = vst [vmem:[%s3251_s8 + $0x38] sm:$0xff] %v1654_v10  ;;  %v1660_v14 = vadd.f32 %v2799_v45, %v1659_v6  ;;  %v1748_v15 = vsub.f32 1.0, %v1747_v7  ;;  %v1246_v22 = vadd.f32 %v1245_v12, %v3213_v9  ;;  %v2560_v27 = vmul.f32 -1.442695, %v1301_v18  ;;  %vm1753_vm6 = vmor %vm1751_vm3, %vm1752_vm5 }
 0x1e4   : > { %v2803_v19 = vpop.eup %2802  ;;  %v1286_v31 = vpop.f32.mrf.mxu1  ;;  %v1284_v35 = vadd.f32 %v1283_v50, %v3210_v8  ;;  %vm1766_vm8 = vweird.f32 %v3258_v46  ;;  %vm1771_vm10 = vcmp.eq.f32.partialorder %v1770_v34, 8.507059e+37  ;;  %v3314_v55 = vperm.slane %v3188_v28, 5 }
 0x1e5   : > { %v1664_v23 = vsel %vm1663_vm2, %v2799_v45, %v1660_v14  ;;  %v1749_v24 = vmul.f32 %v2801_v61, %v1748_v15  ;;  %v1762_v25 = vmul.f32 %v2803_v19, %v3258_v46  ;;  %v2805_v26 = vpop.eup %2804  ;;  %v1265_v30 = vadd.f32 %v1264_v13, %v1246_v22 }
 0x1e6   : > { %v1669_v17 = vsel %vm3276_vm1, %v1668_v29, %v1664_v23  ;;  %v3294_v33 = vadd.f32 1.0, %v2805_v26  ;;  %v2807_v3 = vpop.eup %2806  ;;  %2810 = vpow2.f32 %v2560_v27  ;;  %vm1767_vm7 = vweird.f32 %v2803_v19 }
 0x1e7   : > { %1964 = vst [vmem:[%s3251_s8 + $0x40] sm:$0xff] %v1669_v17  ;;  %v1750_v32 = vadd.f32 %v2801_v61, %v1749_v24  ;;  %v1763_v43 = vsub.f32 1.0, %v1762_v25  ;;  %v2566_v36 = vmul.f32 -1.442695, %v1265_v30  ;;  %v3304_v0 = vadd.f32 1.0, %v2807_v3  ;;  %vm1768_vm9 = vmor %vm1766_vm8, %vm1767_vm7 }
 0x1e8   : > { %v1302_v37 = vpop.f32.mrf.mxu2  ;;  %2812 = vrcp.f32 %v3294_v33  ;;  %v1773_v45 = vor.u32 1.1754944e-38, %v1772_v42  ;;  %v2809_v48 = vpop.eup %2808  ;;  %v1860_v49 = vand.u32 2147483647, %v3294_v33  ;;  %v1862_v50 = vand.u32 2147483648, %v3294_v33 }
 0x1e9   : > { %v1754_v38 = vsel %vm1753_vm6, %v2801_v61, %v1750_v32  ;;  %v1764_v39 = vmul.f32 %v2803_v19, %v1763_v43  ;;  %2814 = vpow2.f32 %v2566_v36  ;;  %v1303_v47 = vadd.f32 %v1302_v37, %v1284_v35 }
 0x1ea   : > { %v1759_v40 = vsel %vm3284_vm4, %v1758_v21, %v1754_v38  ;;  %v1248_v41 = vpop.f32.mrf.mxu3  ;;  %v1267_v44 = vpop.f32.mrf.mxu0  ;;  %2816 = vrcp.f32 %v3304_v0  ;;  %v3311_v52 = vadd.f32 1.0, %v2809_v48  ;;  %v3317_v57 = vperm.slane %v3188_v28, 4 }
 0x1eb   : > { %1970 = vst [vmem:[%s3251_s8 + $0x70] sm:$0xff] %v1759_v40  ;;  %v1765_v2 = vadd.f32 %v2803_v19, %v1764_v39  ;;  %v1249_v46 = vadd.f32 %v1248_v41, %v3213_v9  ;;  %v2567_v56 = vmul.f32 -1.442695, %v1303_v47  ;;  %vm1856_vm11 = vweird.f32 %v3294_v33 }
 0x1ec   : > { %v2811_v53 = vpop.eup %2810  ;;  %v1875_v59 = vand.u32 2147483647, %v3304_v0  ;;  %2818 = vrcp.f32 %v3311_v52  ;;  %v1287_v60 = vadd.f32 %v1286_v31, %v3210_v8  ;;  %vm3325_vm12 = vcmp.eq.f32.partialorder %v1860_v49, 8.507059e+37  ;;  %v1288_v4 = vpop.f32.mrf.mxu1 }
 0x1ed   : > { %v1769_v51 = vsel %vm1768_vm9, %v2803_v19, %v1765_v2  ;;  %v1863_v63 = vor.u32 1.1754944e-38, %v1862_v50  ;;  %v1268_v1 = vadd.f32 %v1267_v44, %v1249_v46  ;;  %vm1871_vm13 = vweird.f32 %v3304_v0 }
 0x1ee   : > { %v1774_v54 = vsel %vm1771_vm10, %v1773_v45, %v1769_v51  ;;  %v2813_v58 = vpop.eup %2812  ;;  %v1877_v7 = vand.u32 2147483648, %v3304_v0  ;;  %v3331_v10 = vadd.f32 1.0, %v2811_v53  ;;  %2820 = vpow2.f32 %v2567_v56 }
 0x1ef   : > { %1971 = vst [vmem:[%s3251_s8 + $0x78] sm:$0xff] %v1774_v54  ;;  %v1852_v61 = vmul.f32 %v2813_v58, %v3294_v33  ;;  %v2815_v6 = vpop.eup %2814  ;;  %v1575_v12 = vand.u32 2147483647, %v3311_v52  ;;  %v1577_v13 = vand.u32 2147483648, %v3311_v52  ;;  %vm3338_vm14 = vcmp.eq.f32.partialorder %v1875_v59, 8.507059e+37 }
 0x1f0   : > { %v1305_v5 = vpop.f32.mrf.mxu2  ;;  %v2817_v11 = vpop.eup %2816  ;;  %v3335_v14 = vadd.f32 1.0, %v2815_v6  ;;  %2822 = vrcp.f32 %v3331_v10  ;;  %v3344_v20 = vadd.f32 %v1288_v4, %v3210_v8  ;;  %vm1857_vm15 = vweird.f32 %v2813_v58 }
 0x1f1   : > { %v1853_v29 = vsub.f32 1.0, %v1852_v61  ;;  %v1867_v18 = vmul.f32 %v2817_v11, %v3304_v0  ;;  %v2573_v22 = vmul.f32 -1.442695, %v1268_v1  ;;  %v1878_v25 = vor.u32 1.1754944e-38, %v1877_v7  ;;  %vm1858_vm2 = vmor %vm1856_vm11, %vm1857_vm15 }
 0x1f2   : > { %v1250_v15 = vpop.f32.mrf.mxu3  ;;  %v1269_v16 = vpop.f32.mrf.mxu0  ;;  %2824 = vrcp.f32 %v3335_v14  ;;  %vm1571_vm0 = vweird.f32 %v3311_v52  ;;  %v1306_v26 = vadd.f32 %v1305_v5, %v1287_v60  ;;  %vm3349_vm1 = vcmp.eq.f32.partialorder %v1575_v12, 8.507059e+37 }
 0x1f3   : > { %v1854_v21 = vmul.f32 %v2813_v58, %v1853_v29  ;;  %v2819_v23 = vpop.eup %2818  ;;  %v1868_v24 = vsub.f32 1.0, %v1867_v18  ;;  %v1578_v8 = vor.u32 1.1754944e-38, %v1577_v13  ;;  %vm1872_vm3 = vweird.f32 %v2817_v11 }
 0x1f4   : > { %v1567_v27 = vmul.f32 %v2819_v23, %v3311_v52  ;;  %v2821_v31 = vpop.eup %2820  ;;  %v1590_v43 = vand.u32 2147483647, %v3331_v10  ;;  %v1592_v42 = vand.u32 2147483648, %v3331_v10  ;;  %vm1586_vm4 = vweird.f32 %v3331_v10  ;;  %vm1873_vm5 = vmor %vm1871_vm13, %vm1872_vm3  ;;  %v1357_v49 = vpop.f32.mrf.mxu1 }
 0x1f5   : > { %v1855_v17 = vadd.f32 %v2813_v58, %v1854_v21  ;;  %v1869_v32 = vmul.f32 %v2817_v11, %v1868_v24  ;;  %v3358_v35 = vadd.f32 1.0, %v2821_v31  ;;  %2826 = vpow2.f32 %v2573_v22 }
 0x1f6   : > { %v1568_v34 = vsub.f32 1.0, %v1567_v27  ;;  %v2823_v37 = vpop.eup %2822  ;;  %v2574_v39 = vmul.f32 -1.442695, %v1306_v26  ;;  %v1251_v40 = vadd.f32 %v1250_v15, %v3213_v9  ;;  %vm1572_vm6 = vweird.f32 %v2819_v23 }
 0x1f7   : > { %v1859_v3 = vsel %vm1858_vm2, %v2813_v58, %v1855_v17  ;;  %v1870_v38 = vadd.f32 %v2817_v11, %v1869_v32  ;;  %v1582_v2 = vmul.f32 %v2823_v37, %v3331_v10  ;;  %2828 = vrcp.f32 %v3358_v35  ;;  %vm1573_vm8 = vmor %vm1571_vm0, %vm1572_vm6 }
 0x1f8   : > { %v1307_v36 = vpop.f32.mrf.mxu2  ;;  %v1864_v33 = vsel %vm3325_vm12, %v1863_v63, %v1859_v3  ;;  %v2825_v41 = vpop.eup %2824  ;;  %v1569_v44 = vmul.f32 %v2819_v23, %v1568_v34  ;;  %vm1676_vm7 = vweird.f32 %v3335_v14  ;;  %v1680_v9 = vand.u32 2147483647, %v3335_v14 }
 0x1f9   : > { %1977 = vst [vmem:[%s3251_s8 + $0xa8] sm:$0xff] %v1864_v33  ;;  %v1874_v47 = vsel %vm1873_vm5, %v2817_v11, %v1870_v38  ;;  %v1672_v48 = vmul.f32 %v2825_v41, %v3335_v14  ;;  %v1583_v51 = vsub.f32 1.0, %v1582_v2  ;;  %v1682_v53 = vand.u32 2147483648, %v3335_v14 }
 0x1fa   : > { %v1319_v45 = vpop.f32.mrf.mxu3  ;;  %v1338_v50 = vpop.f32.mrf.mxu0  ;;  %v1879_v0 = vsel %vm3338_vm14, %v1878_v25, %v1874_v47  ;;  %v1570_v46 = vadd.f32 %v2819_v23, %v1569_v44  ;;  %vm3379_vm9 = vcmp.eq.f32.partialorder %v1590_v43, 8.507059e+37  ;;  %2830 = vpow2.f32 %v2574_v39 }
 0x1fb   : > { %1978 = vst [vmem:[%s3251_s8 + $0xb0] sm:$0xff] %v1879_v0  ;;  %v1673_v56 = vsub.f32 1.0, %v1672_v48  ;;  %v1270_v58 = vadd.f32 %v1269_v16, %v1251_v40  ;;  %v2827_v59 = vpop.eup %2826  ;;  %v1584_v61 = vmul.f32 %v2823_v37, %v1583_v51  ;;  %vm1587_vm10 = vweird.f32 %v2823_v37 }
 0x1fc   : > { %v1574_v60 = vsel %vm1573_vm8, %v2819_v23, %v1570_v46  ;;  %v1593_v62 = vor.u32 1.1754944e-38, %v1592_v42  ;;  %vm1677_vm11 = vweird.f32 %v2825_v41  ;;  %v3385_v52 = vadd.f32 1.0, %v2827_v59  ;;  %vm1588_vm13 = vmor %vm1586_vm4, %vm1587_vm10 }
 0x1fd   : > { %v1579_v63 = vsel %vm3349_vm1, %v1578_v8, %v1574_v60  ;;  %v1674_v1 = vmul.f32 %v2825_v41, %v1673_v56  ;;  %v2829_v4 = vpop.eup %2828  ;;  %v1585_v5 = vadd.f32 %v2823_v37, %v1584_v61  ;;  %vm3388_vm12 = vcmp.eq.f32.partialorder %v1680_v9, 8.507059e+37  ;;  %vm1678_vm14 = vmor %vm1676_vm7, %vm1677_vm11  ;;  %v1359_v8 = vpop.f32.mrf.mxu1 }
 0x1fe   : > { %1958 = vst [vmem:[%s3251_s8 + $0x10] sm:$0xff] %v1579_v63  ;;  %v2580_v7 = vmul.f32 -1.442695, %v1270_v58  ;;  %v1308_v11 = vadd.f32 %v1307_v36, %v3344_v20  ;;  %v1687_v13 = vmul.f32 %v2829_v4, %v3358_v35  ;;  %2832 = vrcp.f32 %v3385_v52 }
 0x1ff   : > { %v1675_v12 = vadd.f32 %v2825_v41, %v1674_v1  ;;  %v1320_v15 = vadd.f32 %v1319_v45, %v3317_v57  ;;  %v1589_v16 = vsel %vm1588_vm13, %v2823_v37, %v1585_v5  ;;  %v1683_v18 = vor.u32 1.1754944e-38, %v1682_v53 }
 0x200   : > { %v1376_v29 = vpop.f32.mrf.mxu2  ;;  %v1695_v19 = vand.u32 2147483647, %v3358_v35  ;;  %v1697_v10 = vand.u32 2147483648, %v3358_v35  ;;  %v2831_v21 = vpop.eup %2830  ;;  %v1594_v22 = vsel %vm3379_vm9, %v1593_v62, %v1589_v16  ;;  %v1688_v24 = vsub.f32 1.0, %v1687_v13 }
 0x201   : > { %v1679_v23 = vsel %vm1678_vm14, %v2825_v41, %v1675_v12  ;;  %2834 = vpow2.f32 %v2580_v7  ;;  %1959 = vst [vmem:[%s3251_s8 + $0x18] sm:$0xff] %v1594_v22  ;;  %v3408_v26 = vadd.f32 1.0, %v2831_v21  ;;  %v1358_v14 = vadd.f32 %v1357_v49, %v3314_v55 }
 0x202   : > { %v1321_v20 = vpop.f32.mrf.mxu3  ;;  %v1684_v25 = vsel %vm3388_vm12, %v1683_v18, %v1679_v23  ;;  %v1689_v17 = vmul.f32 %v2829_v4, %v1688_v24  ;;  %vm1692_vm15 = vweird.f32 %v2829_v4  ;;  %v2581_v27 = vmul.f32 -1.442695, %v1308_v11  ;;  %v1340_v31 = vpop.f32.mrf.mxu0 }
 0x203   : > { %1965 = vst [vmem:[%s3251_s8 + $0x48] sm:$0xff] %v1684_v25  ;;  %v1339_v30 = vadd.f32 %v1338_v50, %v1320_v15  ;;  %vm1691_vm0 = vweird.f32 %v3358_v35  ;;  %vm3413_vm1 = vcmp.eq.f32.partialorder %v1695_v19, 8.507059e+37  ;;  %v1698_v43 = vor.u32 1.1754944e-38, %v1697_v10 }
 0x204   : > { %2836 = vrcp.f32 %v3408_v26  ;;  %v2833_v42 = vpop.eup %2832  ;;  %v1690_v3 = vadd.f32 %v2829_v4, %v1689_v17  ;;  %v1377_v36 = vadd.f32 %v1376_v29, %v1358_v14  ;;  %vm1693_vm2 = vmor %vm1691_vm0, %vm1692_vm15  ;;  %v1785_v33 = vand.u32 2147483647, %v3385_v52 }
 0x205   : > { %2838 = vpow2.f32 %v2581_v27  ;;  %v2561_v34 = vmul.f32 -1.442695, %v1339_v30  ;;  %v1777_v37 = vmul.f32 %v2833_v42, %v3385_v52  ;;  %v1787_v35 = vand.u32 2147483648, %v3385_v52  ;;  %v1362_v7 = vpop.f32.mrf.mxu1 }
 0x206   : > { %v1360_v38 = vadd.f32 %v1359_v8, %v3314_v55  ;;  %v1694_v41 = vsel %vm1693_vm2, %v2829_v4, %v1690_v3  ;;  %v2562_v44 = vmul.f32 -1.442695, %v1377_v36  ;;  %v1322_v2 = vadd.f32 %v1321_v20, %v3317_v57 }
 0x207   : > { %v2835_v40 = vpop.eup %2834  ;;  %2840 = vpow2.f32 %v2561_v34  ;;  %v1699_v45 = vsel %vm3413_vm1, %v1698_v43, %v1694_v41  ;;  %v1778_v47 = vsub.f32 1.0, %v1777_v37  ;;  %vm1781_vm3 = vweird.f32 %v3385_v52 }
 0x208   : > { %v1378_v39 = vpop.f32.mrf.mxu2  ;;  %v3426_v48 = vadd.f32 1.0, %v2835_v40  ;;  %1966 = vst [vmem:[%s3251_s8 + $0x50] sm:$0xff] %v1699_v45  ;;  %v1800_v49 = vand.u32 2147483647, %v3408_v26  ;;  %2842 = vpow2.f32 %v2562_v44  ;;  %v1341_v50 = vadd.f32 %v1340_v31, %v1322_v2 }
 0x209   : > { %v1379_v0 = vadd.f32 %v1378_v39, %v1360_v38  ;;  %v1779_v51 = vmul.f32 %v2833_v42, %v1778_v47  ;;  %vm1782_vm4 = vweird.f32 %v2833_v42  ;;  %vm3432_vm5 = vcmp.eq.f32.partialorder %v1785_v33, 8.507059e+37 }
 0x20a   : > { %v1324_v9 = vpop.f32.mrf.mxu3  ;;  %v2837_v46 = vpop.eup %2836  ;;  %2844 = vrcp.f32 %v3426_v48  ;;  %v1788_v58 = vor.u32 1.1754944e-38, %v1787_v35  ;;  %v2568_v60 = vmul.f32 -1.442695, %v1341_v50  ;;  %v1802_v62 = vand.u32 2147483648, %v3408_v26  ;;  %vm1783_vm6 = vmor %vm1781_vm3, %vm1782_vm4 }
 0x20b   : > { %v1325_v53 = vadd.f32 %v1324_v9, %v3317_v57  ;;  %v2839_v54 = vpop.eup %2838  ;;  %v1792_v59 = vmul.f32 %v2837_v46, %v3408_v26  ;;  %v1780_v61 = vadd.f32 %v2833_v42, %v1779_v51  ;;  %v2569_v1 = vmul.f32 -1.442695, %v1379_v0  ;;  %v1343_v11 = vpop.f32.mrf.mxu0 }
 0x20c   : > { %v3438_v63 = vadd.f32 1.0, %v2839_v54  ;;  %vm1796_vm7 = vweird.f32 %v3408_v26  ;;  %vm3443_vm8 = vcmp.eq.f32.partialorder %v1800_v49, 8.507059e+37  ;;  %2846 = vpow2.f32 %v2568_v60 }
 0x20d   : > { %v2841_v4 = vpop.eup %2840  ;;  %v1793_v5 = vsub.f32 1.0, %v1792_v59  ;;  %v1784_v29 = vsel %vm1783_vm6, %v2833_v42, %v1780_v61  ;;  %v1890_v12 = vand.u32 2147483647, %v3426_v48  ;;  %v1344_v13 = vadd.f32 %v1343_v11, %v1325_v53  ;;  %v1364_v49 = vpop.f32.mrf.mxu1 }
 0x20e   : > { %2848 = vrcp.f32 %v3438_v63  ;;  %v2843_v52 = vpop.eup %2842  ;;  %v1789_v16 = vsel %vm3432_vm5, %v1788_v58, %v1784_v29  ;;  %vm1797_vm9 = vweird.f32 %v2837_v46  ;;  %v3453_v19 = vadd.f32 1.0, %v2841_v4 }
 0x20f   : > { %v1794_v18 = vmul.f32 %v2837_v46, %v1793_v5  ;;  %1972 = vst [vmem:[%s3251_s8 + $0x80] sm:$0xff] %v1789_v16  ;;  %v1803_v20 = vor.u32 1.1754944e-38, %v1802_v62  ;;  %v1892_v21 = vand.u32 2147483648, %v3426_v48  ;;  %v3457_v22 = vadd.f32 1.0, %v2843_v52  ;;  %vm1798_vm10 = vmor %vm1796_vm7, %vm1797_vm9 }
 0x210   : > { %v3449_v15 = vpop.f32.mrf.mxu2  ;;  %v2845_v10 = vpop.eup %2844  ;;  %2850 = vpow2.f32 %v2569_v1  ;;  %v1905_v25 = vand.u32 2147483647, %v3438_v63  ;;  %v3462_v14 = vadd.f32 %v1362_v7, %v3314_v55  ;;  %vm1886_vm11 = vweird.f32 %v3426_v48 }
 0x211   : > { %v1795_v23 = vadd.f32 %v2837_v46, %v1794_v18  ;;  %v1882_v24 = vmul.f32 %v2845_v10, %v3426_v48  ;;  %v1907_v17 = vand.u32 2147483648, %v3438_v63  ;;  %2852 = vrcp.f32 %v3453_v19 }
 0x212   : > { %v2575_v27 = vmul.f32 -1.442695, %v1344_v13  ;;  %v3469_v30 = vpop.f32.mrf.mxu3  ;;  %v2847_v8 = vpop.eup %2846  ;;  %vm3471_vm12 = vcmp.eq.f32.partialorder %v1890_v12, 8.507059e+37  ;;  %2854 = vrcp.f32 %v3457_v22  ;;  %v1893_v3 = vor.u32 1.1754944e-38, %v1892_v21 }
 0x213   : > { %v1799_v31 = vsel %vm1798_vm10, %v2837_v46, %v1795_v23  ;;  %v1883_v32 = vsub.f32 1.0, %v1882_v24  ;;  %vm1901_vm13 = vweird.f32 %v3438_v63  ;;  %v1607_v34 = vand.u32 2147483648, %v3453_v19  ;;  %v3501_v46 = vpop.f32.mrf.mxu0 }
 0x214   : > { %v2849_v26 = vpop.eup %2848  ;;  %v1804_v42 = vsel %vm3443_vm8, %v1803_v20, %v1799_v31  ;;  %vm1887_vm14 = vweird.f32 %v2845_v10  ;;  %vm3482_vm15 = vcmp.eq.f32.partialorder %v1905_v25, 8.507059e+37  ;;  %v1605_v35 = vand.u32 2147483647, %v3453_v19 }
 0x215   : > { %1973 = vst [vmem:[%s3251_s8 + $0x88] sm:$0xff] %v1804_v42  ;;  %v1884_v36 = vmul.f32 %v2845_v10, %v1883_v32  ;;  %v1897_v37 = vmul.f32 %v2849_v26, %v3438_v63  ;;  %v1908_v39 = vor.u32 1.1754944e-38, %v1907_v17  ;;  %v1620_v40 = vand.u32 2147483647, %v3457_v22  ;;  %vm1888_vm0 = vmor %vm1886_vm11, %vm1887_vm14  ;;  %v1419_v32 = vpop.f32.mrf.mxu1 }
 0x216   : > { %v2851_v38 = vpop.eup %2850  ;;  %v3488_v41 = vadd.f32 1.0, %v2847_v8  ;;  %2856 = vpow2.f32 %v2575_v27  ;;  %v1622_v47 = vand.u32 2147483648, %v3457_v22  ;;  %vm1601_vm1 = vweird.f32 %v3453_v19 }
 0x217   : > { %v1885_v2 = vadd.f32 %v2845_v10, %v1884_v36  ;;  %v1898_v45 = vsub.f32 1.0, %v1897_v37  ;;  %v3493_v9 = vadd.f32 1.0, %v2851_v38  ;;  %v2853_v50 = vpop.eup %2852  ;;  %v1608_v0 = vor.u32 1.1754944e-38, %v1607_v34 }
 0x218   : > { %v3490_v44 = vpop.f32.mrf.mxu2  ;;  %vm1616_vm2 = vweird.f32 %v3457_v22  ;;  %2858 = vrcp.f32 %v3488_v41  ;;  %v2855_v51 = vpop.eup %2854  ;;  %vm1902_vm3 = vweird.f32 %v2849_v26  ;;  %v1597_v56 = vmul.f32 %v2853_v50, %v3453_v19 }
 0x219   : > { %v1889_v53 = vsel %vm1888_vm0, %v2845_v10, %v1885_v2  ;;  %v1899_v54 = vmul.f32 %v2849_v26, %v1898_v45  ;;  %vm3504_vm4 = vcmp.eq.f32.partialorder %v1605_v35, 8.507059e+37  ;;  %v1612_v59 = vmul.f32 %v2855_v51, %v3457_v22  ;;  %vm1903_vm6 = vmor %vm1901_vm13, %vm1902_vm3 }
 0x21a   : > { %v1894_v48 = vsel %vm3471_vm12, %v1893_v3, %v1889_v53  ;;  %vm3511_vm5 = vcmp.eq.f32.partialorder %v1620_v40, 8.507059e+37  ;;  %v1365_v61 = vadd.f32 %v1364_v49, %v3314_v55  ;;  %v1598_v1 = vsub.f32 1.0, %v1597_v56  ;;  %v1400_v29 = vpop.f32.mrf.mxu3 }
 0x21b   : > { %1979 = vst [vmem:[%s3251_s8 + $0xb8] sm:$0xff] %v1894_v48  ;;  %v1900_v62 = vadd.f32 %v2849_v26, %v1899_v54  ;;  %v1623_v4 = vor.u32 1.1754944e-38, %v1622_v47  ;;  %2860 = vrcp.f32 %v3493_v9  ;;  %vm1602_vm7 = vweird.f32 %v2853_v50  ;;  %v1414_v34 = vpop.f32.mrf.mxu0 }
 0x21c   : > { %v2857_v5 = vpop.eup %2856  ;;  %v1613_v6 = vsub.f32 1.0, %v1612_v59  ;;  %v1710_v7 = vand.u32 2147483647, %v3488_v41  ;;  %v1712_v11 = vand.u32 2147483648, %v3488_v41  ;;  %v1599_v55 = vmul.f32 %v2853_v50, %v1598_v1  ;;  %vm1603_vm10 = vmor %vm1601_vm1, %vm1602_vm7 }
 0x21d   : > { %v1904_v12 = vsel %vm1903_vm6, %v2849_v26, %v1900_v62  ;;  %vm1706_vm8 = vweird.f32 %v3488_v41  ;;  %v3523_v13 = vadd.f32 1.0, %v2857_v5  ;;  %v1382_v52 = vadd.f32 %v3449_v15, %v3462_v14 }
 0x21e   : > { %v2859_v16 = vpop.eup %2858  ;;  %v1909_v63 = vsel %vm3482_vm15, %v1908_v39, %v1904_v12  ;;  %v1614_v18 = vmul.f32 %v2855_v51, %v1613_v6  ;;  %vm1617_vm9 = vweird.f32 %v2855_v51  ;;  %v1725_v10 = vand.u32 2147483647, %v3493_v9  ;;  %v1421_v6 = vpop.f32.mrf.mxu1 }
 0x21f   : > { %1980 = vst [vmem:[%s3251_s8 + $0xc0] sm:$0xff] %v1909_v63  ;;  %v1600_v21 = vadd.f32 %v2853_v50, %v1599_v55  ;;  %v1702_v23 = vmul.f32 %v2859_v16, %v3488_v41  ;;  %v1727_v24 = vand.u32 2147483648, %v3493_v9  ;;  %2862 = vrcp.f32 %v3523_v13  ;;  %vm1618_vm13 = vmor %vm1616_vm2, %vm1617_vm9 }
 0x220   : > { %v1395_v20 = vpop.f32.mrf.mxu2  ;;  %v1615_v15 = vadd.f32 %v2855_v51, %v1614_v18  ;;  %vm3537_vm11 = vcmp.eq.f32.partialorder %v1710_v7, 8.507059e+37  ;;  %v1713_v14 = vor.u32 1.1754944e-38, %v1712_v11  ;;  %vm1721_vm12 = vweird.f32 %v3493_v9 }
 0x221   : > { %v2861_v17 = vpop.eup %2860  ;;  %v1604_v27 = vsel %vm1603_vm10, %v2853_v50, %v1600_v21  ;;  %v1703_v8 = vsub.f32 1.0, %v1702_v23  ;;  %v2576_v31 = vmul.f32 -1.442695, %v1382_v52  ;;  %v1327_v19 = vadd.f32 %v3469_v30, %v3317_v57 }
 0x222   : > { %v1609_v43 = vsel %vm3504_vm4, %v1608_v0, %v1604_v27  ;;  %v1619_v26 = vsel %vm1618_vm13, %v2855_v51, %v1615_v15  ;;  %v1717_v42 = vmul.f32 %v2861_v17, %v3493_v9  ;;  %vm3550_vm14 = vcmp.eq.f32.partialorder %v1725_v10, 8.507059e+37  ;;  %v1402_v50 = vpop.f32.mrf.mxu3 }
 0x223   : > { %1960 = vst [vmem:[%s3251_s8 + $0x20] sm:$0xff] %v1609_v43  ;;  %v1624_v22 = vsel %vm3511_vm5, %v1623_v4, %v1619_v26  ;;  %v1704_v36 = vmul.f32 %v2859_v16, %v1703_v8  ;;  %vm1707_vm15 = vweird.f32 %v2859_v16  ;;  %v1728_v37 = vor.u32 1.1754944e-38, %v1727_v24 }
 0x224   : > { %1961 = vst [vmem:[%s3251_s8 + $0x28] sm:$0xff] %v1624_v22  ;;  %v1718_v57 = vsub.f32 1.0, %v1717_v42  ;;  %2864 = vpow2.f32 %v2576_v31  ;;  %v1346_v30 = vadd.f32 %v3501_v46, %v1327_v19  ;;  %v1384_v33 = vadd.f32 %v3490_v44, %v1365_v61  ;;  %vm1708_vm0 = vmor %vm1706_vm8, %vm1707_vm15 }
 0x225   : > { %v2863_v35 = vpop.eup %2862  ;;  %v1705_v38 = vadd.f32 %v2859_v16, %v1704_v36  ;;  %v1815_v39 = vand.u32 2147483647, %v3523_v13  ;;  %v1817_v40 = vand.u32 2147483648, %v3523_v13  ;;  %v574_v2 = vperm.slane %v3188_v28, 6 }
 0x226   : > { %v1719_v45 = vmul.f32 %v2861_v17, %v1718_v57  ;;  %vm1722_vm1 = vweird.f32 %v2861_v17  ;;  %v1807_v47 = vmul.f32 %v2863_v35, %v3523_v13  ;;  %v2582_v49 = vmul.f32 -1.442695, %v1346_v30 }
 0x227   : > { %v1709_v0 = vsel %vm1708_vm0, %v2859_v16, %v1705_v38  ;;  %v2583_v44 = vmul.f32 -1.442695, %v1384_v33  ;;  %v1401_v46 = vadd.f32 %v1400_v29, %v574_v2  ;;  %v1396_v51 = vadd.f32 %v1395_v20, %v574_v2  ;;  %vm1723_vm2 = vmor %vm1721_vm12, %vm1722_vm1  ;;  %v1416_v29 = vpop.f32.mrf.mxu0 }
 0x228   : > { %v1397_v53 = vpop.f32.mrf.mxu2  ;;  %v1714_v54 = vsel %vm3537_vm11, %v1713_v14, %v1709_v0  ;;  %v1720_v56 = vadd.f32 %v2861_v17, %v1719_v45  ;;  %v1808_v28 = vsub.f32 1.0, %v1807_v47  ;;  %2866 = vpow2.f32 %v2582_v49 }
 0x229   : > { %1967 = vst [vmem:[%s3251_s8 + $0x58] sm:$0xff] %v1714_v54  ;;  %2868 = vpow2.f32 %v2583_v44  ;;  %v1420_v41 = vadd.f32 %v1419_v32, %v1401_v46  ;;  %v1415_v58 = vadd.f32 %v1414_v34, %v1396_v51  ;;  %v1403_v48 = vadd.f32 %v1402_v50, %v574_v2 }
 0x22a   : > { %v2865_v59 = vpop.eup %2864  ;;  %v1724_v60 = vsel %vm1723_vm2, %v2861_v17, %v1720_v56  ;;  %v1809_v61 = vmul.f32 %v2863_v35, %v1808_v28  ;;  %vm1812_vm3 = vweird.f32 %v2863_v35  ;;  %v1398_v62 = vadd.f32 %v1397_v53, %v574_v2 }
 0x22b   : > { %v1729_v1 = vsel %vm3550_vm14, %v1728_v37, %v1724_v60  ;;  %v1527_v4 = vadd.f32 1.0, %v2865_v59  ;;  %v2577_v5 = vmul.f32 -1.442695, %v1420_v41  ;;  %vm1811_vm4 = vweird.f32 %v3523_v13 }
 0x22c   : > { %1968 = vst [vmem:[%s3251_s8 + $0x60] sm:$0xff] %v1729_v1  ;;  %v1810_v7 = vadd.f32 %v2863_v35, %v1809_v61  ;;  %v2563_v9 = vmul.f32 -1.442695, %v1415_v58  ;;  %v1422_v11 = vadd.f32 %v1421_v6, %v1403_v48  ;;  %vm1813_vm5 = vmor %vm1811_vm4, %vm1812_vm3  ;;  %v1818_v12 = vor.u32 1.1754944e-38, %v1817_v40 }
 0x22d   : > { %2870 = vrcp.f32 %v1527_v4  ;;  %v1417_v55 = vadd.f32 %v1416_v29, %v1398_v62  ;;  %vm1816_vm6 = vcmp.eq.f32.partialorder %v1815_v39, 8.507059e+37  ;;  %v1830_v25 = vand.u32 2147483647, %v1527_v4 }
 0x22e   : > { %v2867_v52 = vpop.eup %2866  ;;  %v1814_v16 = vsel %vm1813_vm5, %v2863_v35, %v1810_v7  ;;  %2872 = vpow2.f32 %v2577_v5  ;;  %v2584_v20 = vmul.f32 -1.442695, %v1422_v11  ;;  %v1832_v14 = vand.u32 2147483648, %v1527_v4 }
 0x22f   : > { %v2869_v63 = vpop.eup %2868  ;;  %v1819_v18 = vsel %vm1816_vm6, %v1818_v12, %v1814_v16  ;;  %v1533_v10 = vadd.f32 1.0, %v2867_v52  ;;  %2874 = vpow2.f32 %v2563_v9  ;;  %v2570_v13 = vmul.f32 -1.442695, %v1417_v55 }
 0x230   : > { %1974 = vst [vmem:[%s3251_s8 + $0x90] sm:$0xff] %v1819_v18  ;;  %v1534_v21 = vadd.f32 1.0, %v2869_v63  ;;  %vm1826_vm7 = vweird.f32 %v1527_v4  ;;  %vm3581_vm9 = vcmp.eq.f32.partialorder %v1830_v25, 8.507059e+37  ;;  %v1833_v34 = vor.u32 1.1754944e-38, %v1832_v14 }
 0x231   : > { %2876 = vrcp.f32 %v1533_v10  ;;  %v1920_v22 = vand.u32 2147483647, %v1533_v10  ;;  %v1922_v30 = vand.u32 2147483648, %v1533_v10  ;;  %vm1916_vm12 = vweird.f32 %v1533_v10 }
 0x232   : > { %2878 = vrcp.f32 %v1534_v21  ;;  %v1935_v38 = vand.u32 2147483647, %v1534_v21  ;;  %v1937_v39 = vand.u32 2147483648, %v1534_v21  ;;  %vm1931_vm14 = vweird.f32 %v1534_v21 }
 0x233   : > { %v2871_v23 = vpop.eup %2870  ;;  %2880 = vpow2.f32 %v2584_v20  ;;  %vm1921_vm0 = vcmp.eq.f32.partialorder %v1920_v22, 8.507059e+37  ;;  %v1923_v51 = vor.u32 1.1754944e-38, %v1922_v30 }
 0x234   : > { %v2873_v24 = vpop.eup %2872  ;;  %v1822_v15 = vmul.f32 %v2871_v23, %v1527_v4  ;;  %2882 = vpow2.f32 %v2570_v13  ;;  %vm1827_vm8 = vweird.f32 %v2871_v23  ;;  %vm1936_vm1 = vcmp.eq.f32.partialorder %v1935_v38, 8.507059e+37 }
 0x235   : > { %v3576_v17 = vadd.f32 1.0, %v2873_v24  ;;  %v2875_v27 = vpop.eup %2874  ;;  %vm1828_vm10 = vmor %vm1826_vm7, %vm1827_vm8  ;;  %v1938_v28 = vor.u32 1.1754944e-38, %v1937_v39 }
 0x236   : > { %v1823_v8 = vsub.f32 1.0, %v1822_v15  ;;  %v3579_v26 = vadd.f32 1.0, %v2875_v27 }
 0x237   : > { %v2877_v31 = vpop.eup %2876  ;;  %2884 = vrcp.f32 %v3576_v17  ;;  %v1847_v59 = vand.u32 2147483648, %v3576_v17  ;;  %v1845_v1 = vand.u32 2147483647, %v3576_v17  ;;  %vm1841_vm4 = vweird.f32 %v3576_v17 }
 0x238   : > { %v2879_v19 = vpop.eup %2878  ;;  %v1824_v32 = vmul.f32 %v2871_v23, %v1823_v8  ;;  %v1912_v43 = vmul.f32 %v2877_v31, %v1533_v10  ;;  %2886 = vrcp.f32 %v3579_v26  ;;  %vm1917_vm11 = vweird.f32 %v2877_v31 }
 0x239   : > { %v2881_v42 = vpop.eup %2880  ;;  %v1927_v36 = vmul.f32 %v2879_v19, %v1534_v21  ;;  %vm1932_vm13 = vweird.f32 %v2879_v19  ;;  %vm1918_vm15 = vmor %vm1916_vm12, %vm1917_vm11  ;;  %v1635_v7 = vand.u32 2147483647, %v3579_v26  ;;  %v1637_v9 = vand.u32 2147483648, %v3579_v26 }
 0x23a   : > { %v1825_v37 = vadd.f32 %v2871_v23, %v1824_v32  ;;  %v1913_v57 = vsub.f32 1.0, %v1912_v43  ;;  %v2883_v33 = vpop.eup %2882  ;;  %v3587_v40 = vadd.f32 1.0, %v2881_v42  ;;  %vm1933_vm2 = vmor %vm1931_vm14, %vm1932_vm13  ;;  %v1848_v11 = vor.u32 1.1754944e-38, %v1847_v59 }
 0x23b   : > { %v1928_v35 = vsub.f32 1.0, %v1927_v36  ;;  %v3589_v47 = vadd.f32 1.0, %v2883_v33  ;;  %vm1846_vm7 = vcmp.eq.f32.partialorder %v1845_v1, 8.507059e+37  ;;  %vm1631_vm8 = vweird.f32 %v3579_v26 }
 0x23c   : > { %v1829_v2 = vsel %vm1828_vm10, %v2871_v23, %v1825_v37  ;;  %v1914_v45 = vmul.f32 %v2877_v31, %v1913_v57  ;;  %2888 = vrcp.f32 %v3587_v40  ;;  %vm1636_vm10 = vcmp.eq.f32.partialorder %v1635_v7, 8.507059e+37 }
 0x23d   : > { %v2885_v49 = vpop.eup %2884  ;;  %v1834_v50 = vsel %vm3581_vm9, %v1833_v34, %v1829_v2  ;;  %v1929_v0 = vmul.f32 %v2879_v19, %v1928_v35  ;;  %2890 = vrcp.f32 %v3589_v47  ;;  %v1638_v20 = vor.u32 1.1754944e-38, %v1637_v9 }
 0x23e   : > { %1975 = vst [vmem:[%s3251_s8 + $0x98] sm:$0xff] %v1834_v50  ;;  %v1915_v44 = vadd.f32 %v2877_v31, %v1914_v45  ;;  %v1837_v46 = vmul.f32 %v2885_v49, %v3576_v17  ;;  %v2887_v54 = vpop.eup %2886  ;;  %vm1842_vm3 = vweird.f32 %v2885_v49  ;;  %v1950_v21 = vand.u32 2147483647, %v3587_v40 }
 0x23f   : > { %v1930_v53 = vadd.f32 %v2879_v19, %v1929_v0  ;;  %v1627_v60 = vmul.f32 %v2887_v54, %v3579_v26  ;;  %vm1843_vm5 = vmor %vm1841_vm4, %vm1842_vm3  ;;  %vm1632_vm6 = vweird.f32 %v2887_v54  ;;  %v1952_v13 = vand.u32 2147483648, %v3587_v40 }
 0x240   : > { %v1919_v56 = vsel %vm1918_vm15, %v2877_v31, %v1915_v44  ;;  %v1838_v41 = vsub.f32 1.0, %v1837_v46  ;;  %vm1633_vm9 = vmor %vm1631_vm8, %vm1632_vm6  ;;  %vm1946_vm12 = vweird.f32 %v3587_v40  ;;  %v1742_v14 = vand.u32 2147483648, %v3589_v47 }
 0x241   : > { %v1924_v58 = vsel %vm1921_vm0, %v1923_v51, %v1919_v56  ;;  %v1934_v48 = vsel %vm1933_vm2, %v2879_v19, %v1930_v53  ;;  %v1628_v4 = vsub.f32 1.0, %v1627_v60  ;;  %v1740_v8 = vand.u32 2147483647, %v3589_v47 }
 0x242   : > { %1981 = vst [vmem:[%s3251_s8 + $0xc8] sm:$0xff] %v1924_v58  ;;  %v1939_v61 = vsel %vm1936_vm1, %v1938_v28, %v1934_v48  ;;  %v1839_v62 = vmul.f32 %v2885_v49, %v1838_v41  ;;  %v2889_v5 = vpop.eup %2888  ;;  %v1953_v31 = vor.u32 1.1754944e-38, %v1952_v13  ;;  %vm1951_vm15 = vcmp.eq.f32.partialorder %v1950_v21, 8.507059e+37 }
 0x243   : > { %1982 = vst [vmem:[%s3251_s8 + $0xd0] sm:$0xff] %v1939_v61  ;;  %v1629_v29 = vmul.f32 %v2887_v54, %v1628_v4  ;;  %v1942_v12 = vmul.f32 %v2889_v5, %v3587_v40  ;;  %v2891_v55 = vpop.eup %2890  ;;  %vm1947_vm11 = vweird.f32 %v2889_v5  ;;  %vm1736_vm0 = vweird.f32 %v3589_v47 }
 0x244   : > { %v1840_v6 = vadd.f32 %v2885_v49, %v1839_v62  ;;  %v1732_v10 = vmul.f32 %v2891_v55, %v3589_v47  ;;  %vm1737_vm13 = vweird.f32 %v2891_v55  ;;  %vm1948_vm14 = vmor %vm1946_vm12, %vm1947_vm11  ;;  %v1743_v26 = vor.u32 1.1754944e-38, %v1742_v14 }
 0x245   : > { %v1630_v63 = vadd.f32 %v2887_v54, %v1629_v29  ;;  %v1943_v18 = vsub.f32 1.0, %v1942_v12  ;;  %vm1738_vm1 = vmor %vm1736_vm0, %vm1737_vm13  ;;  %vm1741_vm2 = vcmp.eq.f32.partialorder %v1740_v8, 8.507059e+37 }
 0x246   : > { %v1844_v52 = vsel %vm1843_vm5, %v2885_v49, %v1840_v6  ;;  %v1733_v15 = vsub.f32 1.0, %v1732_v10 }
 0x247   : > { %v1849_v16 = vsel %vm1846_vm7, %v1848_v11, %v1844_v52  ;;  %v1634_v23 = vsel %vm1633_vm9, %v2887_v54, %v1630_v63  ;;  %v1944_v24 = vmul.f32 %v2889_v5, %v1943_v18 }
 0x248   : > { %1976 = vst [vmem:[%s3251_s8 + $0xa0] sm:$0xff] %v1849_v16  ;;  %v1639_v25 = vsel %vm1636_vm10, %v1638_v20, %v1634_v23  ;;  %v1734_v27 = vmul.f32 %v2891_v55, %v1733_v15 }
 0x249   : > { %1962 = vst [vmem:[%s3251_s8 + $0x30] sm:$0xff] %v1639_v25  ;;  %v1945_v17 = vadd.f32 %v2889_v5, %v1944_v24 }
 0x24a   : > { %v1735_v32 = vadd.f32 %v2891_v55, %v1734_v27 }
 0x24b   : > { %v1949_v19 = vsel %vm1948_vm14, %v2889_v5, %v1945_v17 }
 0x24c   : > { %v1954_v43 = vsel %vm1951_vm15, %v1953_v31, %v1949_v19  ;;  %v1739_v42 = vsel %vm1738_vm1, %v2891_v55, %v1735_v32 }
 0x24d   : > { %1983 = vst [vmem:[%s3251_s8 + $0xd8] sm:$0xff] %v1954_v43  ;;  %v1744_v3 = vsel %vm1741_vm2, %v1743_v26, %v1739_v42 }
 0x24e   : > { %1969 = vst [vmem:[%s3251_s8 + $0x68] sm:$0xff] %v1744_v3 }
 0x24f   : > { %2949 = shalt.err (!%p2946_p8)
}
 0x250   : > { %s2993_s23 = smov 896   ;;  %s2994_s8 = smov 56  }
 0x251   : > { %2729 = dma.vmem_to_hbm [thread:$0]  (%p3073_p5), %s1999_s15, 3584, %s2001_s16, %s1985_s17, %s2993_s23, %s2993_s23, %s2994_s8  }
 0x252 PF: > { %p2741_p9 = scmp.ge.s32.totalorder %s2988_s27, 2  ;;  %s2015_s28 = sand.u32 1, %s2976_s24  }
 0x253   : > { %s2016_s13 = scalar_lea.sflag [#allocation4], %s2015_s28 }
 0x254   : > { %p2736_p10 = pnand %p2741_p9, %p3077_p6 }
 0x256   : > { %p2737_p11 = pneg %p2736_p10 }
 0x258   : > { %2971 = dma.done.wait (%p2737_p11), %s2016_s13, 3584  }
 0x259   : > { %2973 = vsyncadd (%p2737_p11), %s2016_s13, 4294963712  ;;  %p18_p12 = scmp.ge.s32.totalorder %s3060_s30, 4   ;;  %s3702_s24 = smov %s2980_s25 }
 0x25a   : > { %s3703_s25 = smov %s2984_s26  ;;  %s3704_s26 = smov %s3071_s10 }
 0x25b   : > { %s3705_s27 = smov %s3060_s30  ;;  %20 = sbr.rel (!%p18_p12) target bundleno = 4 (0x4), region = 88 }
 0x260   :  { %2022 = vsyncpa [#allocation3], 1 }
 0x261   :  { %2024 = vsyncpa [#allocation3 + $0x1], 1 }
 0x262   :  { %2025 = vsyncpa [#allocation4], 1 }
 0x263   :  { %2027 = vsyncpa [#allocation4 + $0x1], 1 }

// kernel: tpu_custom_call.1
= control target key start
LH: loop header
LB: loop body
LE: loop exit
PB: predicated region body
PF: predicated region fallthrough
CT: control target
= control target key end

     0   :  { %12 = vsyncpa [#allocation3], 0  ;;  %s3652_s0 = inlined_call_operand.vmem [shape: f32[64,10], index: 0, kind: input, shape index: {}]   ;;  %s3653_s1 = inlined_call_operand.vmem [shape: bf16[10,32], index: 1, kind: input, shape index: {}]   ;;  %s3654_s2 = inlined_call_operand.vmem [shape: f32[1,32], index: 2, kind: input, shape index: {}]   ;;  %s3655_s3 = inlined_call_operand.vmem [shape: bf16[32,256], index: 3, kind: input, shape index: {}]   ;;  %s3656_s4 = inlined_call_operand.vmem [shape: f32[1,256], index: 4, kind: input, shape index: {}]   ;;  %s3657_s5 = inlined_call_operand.hbm [shape: bf16[256,896], index: 5, kind: input, shape index: {}]   ;;  %s3658_s6 = inlined_call_operand.vmem [shape: f32[1,896], index: 6, kind: input, shape index: {}]   ;;  %s3659_s7 = inlined_call_operand.hbm [shape: f32[64,896], index: 7, kind: output, shape index: {}]  }
   0x1   :  { %13 = vsyncpa [#allocation4], 0 }
   0x2   :  { %15 = vsyncpa [#allocation4 + $0x1], 0  ;;  %s3035_s24 = smov 0   ;;  %s3037_s25 = smov 0  }
   0x3   :  { %s3039_s26 = smov 0   ;;  %s3041_s27 = smov 0  }
   0x4 LB: > { %s3056_s28 = sadd.s32 4294967295, %s2988_s27   ;;  %s2075_s29 = sadd.s32 4294967294, %s2988_s27   ;;  %s2988_s27 = sphi %s3041_s27, %s3705_s27   ;;  %s2984_s26 = sphi %s3039_s26, %s3704_s26   ;;  %s2980_s25 = sphi %s3037_s25, %s3703_s25   ;;  %s2976_s24 = sphi %s3035_s24, %s3702_s24  }
   0x5   : > { %s3060_s30 = sadd.s32 1, %s2988_s27   ;;  %s180_s8 = sadd.s32 1, %s2984_s26 }
   0x6   : > { %s177_s9 = ssub.s32 %s2988_s27, %s3060_s30  ;;  %p190_p0 = scmp.ne.s32.totalorder %s2984_s26, %s2980_s25 }
   0x7   : > { %p178_p1 = scmp.eq.s32.totalorder %s177_s9, 0  ;;  %p191_p2 = scmp.eq.s32.totalorder %s3056_s28, 1 }
   0x8   : > { %p196_p3 = scmp.ne.s32.totalorder %s2980_s25, %s2976_s24  ;;  %p197_p4 = scmp.eq.s32.totalorder %s2075_s29, 1 }
   0x9   : > { %s3071_s10 = scalar_select %p178_p1, %s2984_s26, %s180_s8  }
   0xa   : > { %p3073_p5 = por %p191_p2, %p190_p0  ;;  %p3077_p6 = por %p197_p4, %p196_p3 }
   0xb   : > { %p2076_p7 = scmp.ge.s32.totalorder %s2988_s27, 1  ;;  %p204_p8 = scmp.lt.s32.totalorder %s2988_s27, 3 }
   0xc   : > { %p2739_p9 = scmp.eq.s32.totalorder %s3056_s28, 0  ;;  %s227_s15 = sshll.u32 %s3657_s5, 4  ;;  %s228_s15 = int_to_ptr.hbm [resolvable:$true] %s227_s15 }
   0xd   : > { %p205_p10 = pnand %p2076_p7, %p204_p8  ;;  %s2990_s16 = smov [#allocation2]  }
   0xe   : > { %s229_s17 = sshll.u32 %s2990_s16, 4  ;;  %s2991_s18 = smov 448   ;;  %s230_s17 = int_to_ptr.vmem [resolvable:$true] %s229_s17 }
   0xf   : > { %p2731_p11 = pneg %p205_p10  ;;  %s2992_s19 = smov 28  }
  0x10   : > { %257 = sbr.rel (%p205_p10) target bundleno = 594 (0x252), region = 48 }
  0x11   : > { %p2732_p12 = pnand %p2739_p9, %p2731_p11 }
  0x13   : > { %2734 = dma.hbm_to_vmem [thread:$0]  (!%p2732_p12), %s228_s15, 14336, %s230_s17, [#allocation3], %s2991_s18, %s2991_s18, %s2992_s19  }
  0x15   : > { %2967 = dma.done.wait (%p2739_p9), [#allocation3], 14336  }
  0x16   : > { %2969 = vsyncadd (%p2739_p9), [#allocation3], 4294952960  ;;  %s2081_s20 = sshll.u32 %s3056_s28, 2  ;;  %v2085_v0 = vld [vmem:[%s3653_s1] sm:$0xf]  ;;  %vm322_vm0 = vcmask 1044480  }
  0x17   : > { %p291_p13 = scmp.lt.s32.totalorder %s2081_s20, 7  ;;  %v2590_v1 = vld [vmem:[%s3653_s1] sm:$0x10]  ;;  %vm315_vm1 = vcmask 80896   ;;  %v2099_v10 = vld [vmem:[%s3655_s3 + $0x10] sm:$0xf] }
  0x18   : > { %v2086_v3 = vor.u32 %v2590_v1, %v2085_v0  ;;  %v2594_v11 = vld [vmem:[%s3655_s3 + $0x14] sm:$0xf0]  ;;  %v2593_v12 = vld [vmem:[%s3655_s3 + $0x14] sm:$0xf]  ;;  %v2101_v14 = vld [vmem:[%s3655_s3 + $0x18] sm:$0xf0] }
  0x19   : > { %s3707_s20 = smov (!%p291_p13, %s2081_s20), 7  ;;  %v2100_v13 = vor.u32 %v2594_v11, %v2099_v10  ;;  %v2104_v15 = vor.u32 %v2593_v12, %v2101_v14  ;;  %v2091_v16 = vld [vmem:[%s3655_s3] sm:$0xf]  ;;  %v2592_v17 = vld [vmem:[%s3655_s3 + $0x4] sm:$0xf0]  ;;  %vm381_vm2 = vcmask 261120  }
  0x1a   : > { %s2082_s21 = sshll.u32 %s3707_s20, 3  ;;  %v324_v5 = vsel %vm322_vm0, %v2086_v3, 0  ;;  %v2591_v18 = vld [vmem:[%s3655_s3 + $0x4] sm:$0xf]  ;;  %v2092_v19 = vor.u32 %v2592_v17, %v2091_v16  ;;  %v2093_v20 = vld [vmem:[%s3655_s3 + $0x8] sm:$0xf0] }
  0x1b   : > { %s294_s29 = scalar_lea.vmem %s3652_s0, %s2082_s21  ;;  %333 = vmatpush.bf16.msra.mxu0 %v324_v5  ;;  %394 = vmatpush.bf16.msra.mxu1 %v2100_v13  ;;  %v2096_v21 = vor.u32 %v2591_v18, %v2093_v20  ;;  %v2307_v22 = vld [vmem:[#allocation2 + $0x188] sm:$0xf]  ;;  %v2647_v23 = vld [vmem:[#allocation2 + $0x1a0] sm:$0xf0]  ;;  %v2644_v24 = vld [vmem:[#allocation2 + $0x18c] sm:$0xf] }
  0x1c   : > { %v298_v2 = vld [vmem:[%s294_s29] sm:$0xff]  ;;  %v299_v4 = vld [vmem:[%s294_s29 + $0x8] sm:$0xff]  ;;  %v300_v7 = vld [vmem:[%s294_s29 + $0x10] sm:$0xff]  ;;  %413 = vmatpush.bf16.msra.mxu2 %v2104_v15  ;;  %v2308_v26 = vor.u32 %v2647_v23, %v2307_v22  ;;  %s287_s23 = sand.u32 1, %s2980_s25   ;;  %s2724_s9 = smul.u32 224, %s3056_s28 }
  0x1d   : > { %v302_v6 = vpack.c.bf16 %v299_v4, %v298_v2  ;;  %v301_v8 = vld [vmem:[%s294_s29 + $0x18] sm:$0xff]  ;;  %v2309_v27 = vld [vmem:[#allocation2 + $0x1a4] sm:$0xf0]  ;;  %v2279_v28 = vld [vmem:[#allocation2 + $0x150] sm:$0xf]  ;;  %s3221_s29 = smul.u32 224, %s287_s23 }
  0x1e   : > { %v303_v9 = vpack.c.bf16 %v301_v8, %v300_v7  ;;  %v2640_v29 = vld [vmem:[#allocation2 + $0x168] sm:$0xf0]  ;;  %v2312_v30 = vor.u32 %v2644_v24, %v2309_v27  ;;  %v2637_v31 = vld [vmem:[#allocation2 + $0x154] sm:$0xf]  ;;  %v2281_v32 = vld [vmem:[#allocation2 + $0x16c] sm:$0xf0]  ;;  %1158 = vmatpush.bf16.msra.mxu3 %v2308_v26  ;;  %s1997_s14 = scalar_lea.hbm %s3659_s7, %s2724_s9 }
  0x1f   : > { %2087 = vmatmul.msk.bf16.vlgmr.msra.gmra.mxu0 %vm315_vm1, %v302_v6  ;;  %395 = vmatpush.bf16.msra.mxu1 %v2092_v19  ;;  %v2700_v33 = vld [vmem:[#allocation2 + $0x34c] sm:$0xf]  ;;  %v2280_v34 = vor.u32 %v2640_v29, %v2279_v28  ;;  %v2533_v35 = vld [vmem:[#allocation2 + $0x364] sm:$0xf0]  ;;  %v2703_v37 = vld [vmem:[#allocation2 + $0x360] sm:$0xf0]  ;;  %v2284_v39 = vor.u32 %v2637_v31, %v2281_v32 }
  0x20   : > { %414 = vmatpush.bf16.msra.mxu2 %v2096_v21  ;;  %v2531_v36 = vld [vmem:[#allocation2 + $0x348] sm:$0xf]  ;;  %v2779_v38 = vld [vmem:[%s3654_s2] ss:$0 sm:$0xff]  ;;  %v2536_v40 = vor.u32 %v2700_v33, %v2533_v35  ;;  %v2251_v42 = vld [vmem:[#allocation2 + $0x118] sm:$0xf] }
  0x21   : > { %v2532_v41 = vor.u32 %v2703_v37, %v2531_v36  ;;  %v2633_v43 = vld [vmem:[#allocation2 + $0x130] sm:$0xf0]  ;;  %v2630_v44 = vld [vmem:[#allocation2 + $0x11c] sm:$0xf]  ;;  %v2253_v45 = vld [vmem:[#allocation2 + $0x134] sm:$0xf0] }
  0x22   : > { %v2693_v46 = vld [vmem:[#allocation2 + $0x314] sm:$0xf]  ;;  %v2505_v47 = vld [vmem:[#allocation2 + $0x32c] sm:$0xf0]  ;;  %v2696_v49 = vld [vmem:[#allocation2 + $0x328] sm:$0xf0]  ;;  %1159 = vmatpush.bf16.msra.mxu3 %v2280_v34  ;;  %v2252_v50 = vor.u32 %v2633_v43, %v2251_v42  ;;  %v2256_v55 = vor.u32 %v2630_v44, %v2253_v45 }
  0x23   : > { %1196 = vmatpush.bf16.msrb.mxu1 %v2312_v30  ;;  %1177 = vmatpush.bf16.msrb.mxu0 %v2532_v41  ;;  %v2503_v48 = vld [vmem:[#allocation2 + $0x310] sm:$0xf]  ;;  %v2508_v51 = vor.u32 %v2693_v46, %v2505_v47  ;;  %v2223_v53 = vld [vmem:[#allocation2 + $0xe0] sm:$0xf]  ;;  %v2626_v56 = vld [vmem:[#allocation2 + $0xf8] sm:$0xf0] }
  0x24   : > { %1215 = vmatpush.bf16.msrb.mxu2 %v2536_v40  ;;  %v2504_v52 = vor.u32 %v2696_v49, %v2503_v48  ;;  %v2686_v57 = vld [vmem:[#allocation2 + $0x2dc] sm:$0xf]  ;;  %v2477_v58 = vld [vmem:[#allocation2 + $0x2f4] sm:$0xf0]  ;;  %v2689_v61 = vld [vmem:[#allocation2 + $0x2f0] sm:$0xf0]  ;;  %v2224_v3 = vor.u32 %v2626_v56, %v2223_v53 }
  0x25   : > { %v2475_v60 = vld [vmem:[#allocation2 + $0x2d8] sm:$0xf]  ;;  %v2623_v63 = vld [vmem:[#allocation2 + $0xe4] sm:$0xf]  ;;  %v2225_v0 = vld [vmem:[#allocation2 + $0xfc] sm:$0xf0]  ;;  %v2480_v1 = vor.u32 %v2686_v57, %v2477_v58 }
  0x26   : > { %v2476_v2 = vor.u32 %v2689_v61, %v2475_v60  ;;  %1160 = vmatpush.bf16.msra.mxu3 %v2252_v50  ;;  %v2228_v6 = vor.u32 %v2623_v63, %v2225_v0  ;;  %v2195_v15 = vld [vmem:[#allocation2 + $0xa8] sm:$0xf]  ;;  %v2619_v16 = vld [vmem:[#allocation2 + $0xc0] sm:$0xf0]  ;;  %v2616_v17 = vld [vmem:[#allocation2 + $0xac] sm:$0xf] }
  0x27   : > { %1197 = vmatpush.bf16.msrb.mxu1 %v2284_v39  ;;  %1178 = vmatpush.bf16.msrb.mxu0 %v2504_v52  ;;  %v2196_v18 = vor.u32 %v2619_v16, %v2195_v15  ;;  %v2197_v19 = vld [vmem:[#allocation2 + $0xc4] sm:$0xf0]  ;;  %v2679_v21 = vld [vmem:[#allocation2 + $0x2a4] sm:$0xf]  ;;  %v2449_v22 = vld [vmem:[#allocation2 + $0x2bc] sm:$0xf0] }
  0x28   : > { %1216 = vmatpush.bf16.msrb.mxu2 %v2508_v51  ;;  %v2200_v20 = vor.u32 %v2616_v17, %v2197_v19  ;;  %v2447_v23 = vld [vmem:[#allocation2 + $0x2a0] sm:$0xf]  ;;  %v2452_v24 = vor.u32 %v2679_v21, %v2449_v22  ;;  %v2167_v27 = vld [vmem:[#allocation2 + $0x70] sm:$0xf]  ;;  %v2612_v28 = vld [vmem:[#allocation2 + $0x88] sm:$0xf0] }
  0x29   : > { %v2609_v29 = vld [vmem:[#allocation2 + $0x74] sm:$0xf]  ;;  %v2168_v30 = vor.u32 %v2612_v28, %v2167_v27  ;;  %v2169_v31 = vld [vmem:[#allocation2 + $0x8c] sm:$0xf0]  ;;  %v2672_v33 = vld [vmem:[#allocation2 + $0x26c] sm:$0xf] }
  0x2a   : > { %1161 = vmatpush.bf16.msra.mxu3 %v2224_v3  ;;  %v2172_v32 = vor.u32 %v2609_v29, %v2169_v31  ;;  %v2421_v34 = vld [vmem:[#allocation2 + $0x284] sm:$0xf0]  ;;  %v2675_v37 = vld [vmem:[#allocation2 + $0x280] sm:$0xf0]  ;;  %v2139_v39 = vld [vmem:[#allocation2 + $0x38] sm:$0xf] }
  0x2b   : > { %1198 = vmatpush.bf16.msrb.mxu1 %v2256_v55  ;;  %1179 = vmatpush.bf16.msrb.mxu0 %v2476_v2  ;;  %v2424_v35 = vor.u32 %v2672_v33, %v2421_v34  ;;  %v2419_v36 = vld [vmem:[#allocation2 + $0x268] sm:$0xf]  ;;  %v2605_v40 = vld [vmem:[#allocation2 + $0x50] sm:$0xf0]  ;;  %v2602_v41 = vld [vmem:[#allocation2 + $0x3c] sm:$0xf] }
  0x2c   : > { %1217 = vmatpush.bf16.msrb.mxu2 %v2480_v1  ;;  %v2140_v42 = vor.u32 %v2605_v40, %v2139_v39  ;;  %v2141_v43 = vld [vmem:[#allocation2 + $0x54] sm:$0xf0]  ;;  %v2665_v45 = vld [vmem:[#allocation2 + $0x234] sm:$0xf]  ;;  %v2393_v46 = vld [vmem:[#allocation2 + $0x24c] sm:$0xf0] }
  0x2d   : > { %v2144_v44 = vor.u32 %v2602_v41, %v2141_v43  ;;  %v2391_v47 = vld [vmem:[#allocation2 + $0x230] sm:$0xf]  ;;  %v2396_v48 = vor.u32 %v2665_v45, %v2393_v46  ;;  %v2668_v49 = vld [vmem:[#allocation2 + $0x248] sm:$0xf0]  ;;  %v2111_v51 = vld [vmem:[#allocation2] sm:$0xf] }
  0x2e   : > { %1162 = vmatpush.bf16.msra.mxu3 %v2196_v18  ;;  %v2392_v50 = vor.u32 %v2668_v49, %v2391_v47  ;;  %v2598_v52 = vld [vmem:[#allocation2 + $0x18] sm:$0xf0]  ;;  %v2595_v53 = vld [vmem:[#allocation2 + $0x4] sm:$0xf]  ;;  %v2113_v55 = vld [vmem:[#allocation2 + $0x1c] sm:$0xf0] }
  0x2f   : > { %2088 = vmatmul.msk.bf16.gmra.mxu0 %vm315_vm1, %v303_v9  ;;  %1199 = vmatpush.bf16.msrb.mxu1 %v2228_v6  ;;  %v2116_v56 = vor.u32 %v2595_v53, %v2113_v55  ;;  %v2658_v57 = vld [vmem:[#allocation2 + $0x1fc] sm:$0xf]  ;;  %v2365_v58 = vld [vmem:[#allocation2 + $0x214] sm:$0xf0]  ;;  %v2661_v61 = vld [vmem:[#allocation2 + $0x210] sm:$0xf0] }
  0x30   : > { %1218 = vmatpush.bf16.msrb.mxu2 %v2452_v24  ;;  %v2368_v60 = vor.u32 %v2658_v57, %v2365_v58  ;;  %v2315_v63 = vld [vmem:[#allocation2 + $0x190] sm:$0xf]  ;;  %v2648_v0 = vld [vmem:[#allocation2 + $0x1a8] sm:$0xf0]  ;;  %v2645_v1 = vld [vmem:[#allocation2 + $0x194] sm:$0xf] }
  0x31   : > { %v2316_v2 = vor.u32 %v2648_v0, %v2315_v63  ;;  %v2317_v3 = vld [vmem:[#allocation2 + $0x1ac] sm:$0xf0]  ;;  %v2337_v6 = vld [vmem:[#allocation2 + $0x1dc] sm:$0xf0]  ;;  %v2289_v15 = vld [vmem:[#allocation2 + $0x174] sm:$0xf0] }
  0x32   : > { %1163 = vmatpush.bf16.msra.mxu3 %v2168_v30  ;;  %v2701_v17 = vld [vmem:[#allocation2 + $0x354] sm:$0xf]  ;;  %v2541_v18 = vld [vmem:[#allocation2 + $0x36c] sm:$0xf0]  ;;  %v2704_v21 = vld [vmem:[#allocation2 + $0x368] sm:$0xf0] }
  0x33   : > { %1200 = vmatpush.bf16.msrb.mxu1 %v2200_v20  ;;  %v2539_v19 = vld [vmem:[#allocation2 + $0x350] sm:$0xf]  ;;  %v2544_v20 = vor.u32 %v2701_v17, %v2541_v18  ;;  %v2634_v24 = vld [vmem:[#allocation2 + $0x138] sm:$0xf0]  ;;  %v2261_v27 = vld [vmem:[#allocation2 + $0x13c] sm:$0xf0] }
  0x34   : > { %1219 = vmatpush.bf16.msrb.mxu2 %v2424_v35  ;;  %v2540_v22 = vor.u32 %v2704_v21, %v2539_v19  ;;  %v2694_v29 = vld [vmem:[#allocation2 + $0x31c] sm:$0xf]  ;;  %v2513_v30 = vld [vmem:[#allocation2 + $0x334] sm:$0xf0]  ;;  %v2697_v33 = vld [vmem:[#allocation2 + $0x330] sm:$0xf0] }
  0x35   : > { %v2511_v31 = vld [vmem:[#allocation2 + $0x318] sm:$0xf]  ;;  %v2231_v35 = vld [vmem:[#allocation2 + $0xe8] sm:$0xf]  ;;  %v2687_v41 = vld [vmem:[#allocation2 + $0x2e4] sm:$0xf] }
  0x36   : > { %1164 = vmatpush.bf16.msra.mxu3 %v2140_v42  ;;  %v2512_v34 = vor.u32 %v2697_v33, %v2511_v31  ;;  %v2233_v39 = vld [vmem:[#allocation2 + $0x104] sm:$0xf0]  ;;  %v2485_v42 = vld [vmem:[#allocation2 + $0x2fc] sm:$0xf0]  ;;  %v2690_v45 = vld [vmem:[#allocation2 + $0x2f8] sm:$0xf0] }
  0x37   : > { %1201 = vmatpush.bf16.msrb.mxu1 %v2172_v32  ;;  %v2516_v32 = vor.u32 %v2694_v29, %v2513_v30  ;;  %v2483_v43 = vld [vmem:[#allocation2 + $0x2e0] sm:$0xf]  ;;  %v2203_v47 = vld [vmem:[#allocation2 + $0xb0] sm:$0xf]  ;;  %v2617_v49 = vld [vmem:[#allocation2 + $0xb4] sm:$0xf] }
  0x38   : > { %1220 = vmatpush.bf16.msrb.mxu2 %v2396_v48  ;;  %v2484_v46 = vor.u32 %v2690_v45, %v2483_v43  ;;  %v2620_v48 = vld [vmem:[#allocation2 + $0xc8] sm:$0xf0]  ;;  %v2455_v55 = vld [vmem:[#allocation2 + $0x2a8] sm:$0xf]  ;;  %v2610_v63 = vld [vmem:[#allocation2 + $0x7c] sm:$0xf] }
  0x39   : > { %v2680_v53 = vld [vmem:[#allocation2 + $0x2ac] sm:$0xf]  ;;  %v2401_v17 = vld [vmem:[#allocation2 + $0x254] sm:$0xf0]  ;;  %v2659_v33 = vld [vmem:[#allocation2 + $0x204] sm:$0xf] }
  0x3a   : > { %v2399_v21 = vld [vmem:[#allocation2 + $0x238] sm:$0xf]  ;;  %v2646_v45 = vld [vmem:[#allocation2 + $0x19c] sm:$0xf]  ;;  %s3251_s8 = scalar_lea.vmem [#allocation5], %s3221_s29  ;;  %s2000_s16 = sshll.u32 %s1997_s14, 4  ;;  %s2001_s16 = int_to_ptr.hbm [resolvable:$true] %s2000_s16 }
  0x3b   : > { %1202 = vmatpush.bf16.msrb.mxu1 %v2144_v44  ;;  %v2488_v44 = vor.u32 %v2687_v41, %v2485_v42  ;;  %v2323_v43 = vld [vmem:[#allocation2 + $0x198] sm:$0xf]  ;;  %s1998_s15 = sshll.u32 %s3251_s8, 4  ;;  %s1985_s17 = scalar_lea.sflag [#allocation4], %s287_s23  ;;  %s1999_s15 = int_to_ptr.vmem [resolvable:$true] %s1998_s15 }
  0x3c   : > { %1221 = vmatpush.bf16.msrb.mxu2 %v2368_v60  ;;  %s2936_s18 = sshra.s32 %s2001_s16, 4  ;;  %s2942_s22 = scalar_lea.hbm %s3659_s7, 448  ;;  %s2937_s18 = int_to_ptr.hbm [resolvable:$true] %s2936_s18 }
  0x3d   : > { %s2938_s19 = scalar_lea.hbm %s2937_s18, 224  ;;  %p2943_p3 = scmp.lt.s32.totalorder %s2937_s18, %s3659_s7 }
  0x3e   : > { %p2939_p0 = scmp.ne.s32.totalorder %s2937_s18, %s2938_s19  ;;  %p2944_p4 = scmp.lt.s32.totalorder %s2942_s22, %s2938_s19 }
  0x3f   : > { %1203 = vmatpush.bf16.msrb.mxu1 %v2116_v56  ;;  %v355_v56 = vld [vmem:[%s3656_s4] sm:$0x3] }
  0x40   : > { %v3140_v29 = vperm.slane %v355_v56, 1  ;;  %p2940_p1 = pnand %p2939_p0, %p3073_p5  ;;  %p2945_p7 = por %p2944_p4, %p2943_p3 }
  0x42   : > { %p2941_p2 = pneg %p2940_p1 }
  0x44   : > { %p2946_p8 = pnand %p2945_p7, %p2941_p2 }
  0x9c   : > { %v335_v25 = vpop.f32.mrf.mxu0 }
  0x9d   : > { %v336_v54 = vadd.f32 %v2779_v38, %v335_v25  ;;  %v2682_v25 = vld [vmem:[#allocation2 + $0x2b8] sm:$0xf0] }
  0x9e   : > { %v2448_v26 = vor.u32 %v2682_v25, %v2447_v23  ;;  %v2259_v23 = vld [vmem:[#allocation2 + $0x120] sm:$0xf]  ;;  %v2631_v25 = vld [vmem:[#allocation2 + $0x124] sm:$0xf] }
  0x9f   : > { %v345_v4 = vmax.f32 %v336_v54, 0.0  ;;  %v2112_v54 = vor.u32 %v2598_v52, %v2111_v51  ;;  %v2264_v28 = vor.u32 %v2631_v25, %v2261_v27  ;;  %v2205_v51 = vld [vmem:[#allocation2 + $0xcc] sm:$0xf0]  ;;  %v2596_v27 = vld [vmem:[#allocation2 + $0xc] sm:$0xf] }
  0xa0   : > { %1180 = vmatpush.bf16.msrb.mxu0 %v2448_v26  ;;  %v2260_v26 = vor.u32 %v2634_v24, %v2259_v23  ;;  %v2208_v52 = vor.u32 %v2617_v49, %v2205_v51  ;;  %v2119_v23 = vld [vmem:[#allocation2 + $0x8] sm:$0xf]  ;;  %v2652_v51 = vld [vmem:[#allocation2 + $0x1cc] sm:$0xf] }
  0xa1   : > { %1165 = vmatpush.bf16.msra.mxu3 %v2112_v54  ;;  %v2457_v54 = vld [vmem:[#allocation2 + $0x2c4] sm:$0xf0] }
  0xa2   : > { %v2460_v58 = vor.u32 %v2680_v53, %v2457_v54  ;;  %v2343_v53 = vld [vmem:[#allocation2 + $0x1c8] sm:$0xf] }
  0xa4   : > { %v337_v59 = vpop.f32.mrf.mxu0 }
  0xa5   : > { %v338_v62 = vadd.f32 %v2779_v38, %v337_v59  ;;  %v2363_v59 = vld [vmem:[#allocation2 + $0x1f8] sm:$0xf]  ;;  %1234 = vmatpush.bf16.msrb.mxu3 %v2316_v2  ;;  %v3137_v2 = vperm.slane %v355_v56, 0  ;;  %v2655_v56 = vld [vmem:[#allocation2 + $0x1e0] sm:$0xf0] }
  0xa7   : > { %v346_v5 = vmax.f32 %v338_v62, 0.0  ;;  %v2364_v62 = vor.u32 %v2661_v61, %v2363_v59  ;;  %v2683_v59 = vld [vmem:[#allocation2 + $0x2c0] sm:$0xf0]  ;;  %v2175_v61 = vld [vmem:[#allocation2 + $0x78] sm:$0xf] }
  0xa8   : > { %v2456_v60 = vor.u32 %v2683_v59, %v2455_v55 }
  0xa9   : > { %v349_v7 = vpack.c.bf16 %v346_v5, %v345_v4  ;;  %v2320_v4 = vor.u32 %v2645_v1, %v2317_v3  ;;  %v2651_v5 = vld [vmem:[#allocation2 + $0x1c4] sm:$0xf]  ;;  %v2177_v1 = vld [vmem:[#allocation2 + $0x94] sm:$0xf0] }
  0xaa   : > { %v2180_v3 = vor.u32 %v2610_v63, %v2177_v1  ;;  %v2639_v63 = vld [vmem:[#allocation2 + $0x164] sm:$0xf] }
  0xab   : > { %2105 = vmatmul.msk.bf16.vlgmr.msra.gmra.mxu1 %vm381_vm2, %v349_v7  ;;  %2107 = vmatmul.msk.bf16.vlgmr.msra.gmra.mxu2 %vm381_vm2, %v349_v7  ;;  %v2335_v7 = vld [vmem:[#allocation2 + $0x1c0] sm:$0xf] }
  0xac   : > { %v340_v8 = vpop.f32.mrf.mxu0  ;;  %1272 = vmatpush.bf16.msra.mxu1 %v2320_v4  ;;  %v2673_v4 = vld [vmem:[#allocation2 + $0x274] sm:$0xf] }
  0xad   : > { %v341_v9 = vadd.f32 %v2779_v38, %v340_v8  ;;  %v2340_v8 = vor.u32 %v2651_v5, %v2337_v6  ;;  %v2429_v5 = vld [vmem:[#allocation2 + $0x28c] sm:$0xf0] }
  0xae   : > { %v2432_v6 = vor.u32 %v2673_v4, %v2429_v5  ;;  %v2702_v4 = vld [vmem:[#allocation2 + $0x35c] sm:$0xf]  ;;  %v2549_v5 = vld [vmem:[#allocation2 + $0x374] sm:$0xf0] }
  0xaf   : > { %v347_v12 = vmax.f32 %v341_v9, 0.0  ;;  %v2654_v9 = vld [vmem:[#allocation2 + $0x1d8] sm:$0xf0]  ;;  %1222 = vmatpush.bf16.msrb.mxu2 %v2340_v8  ;;  %v2676_v8 = vld [vmem:[#allocation2 + $0x288] sm:$0xf0] }
  0xb3   : > { %1291 = vmatpush.bf16.msra.mxu2 %v2544_v20 }
  0xb4   : > { %v342_v10 = vpop.f32.mrf.mxu0 }
  0xb5   : > { %v343_v11 = vadd.f32 %v2779_v38, %v342_v10  ;;  %v2420_v38 = vor.u32 %v2675_v37, %v2419_v36  ;;  %v2336_v10 = vor.u32 %v2654_v9, %v2335_v7  ;;  %v2627_v36 = vld [vmem:[#allocation2 + $0x100] sm:$0xf0]  ;;  %v2624_v37 = vld [vmem:[#allocation2 + $0xec] sm:$0xf]  ;;  %v2427_v7 = vld [vmem:[#allocation2 + $0x270] sm:$0xf] }
  0xb6   : > { %v2236_v40 = vor.u32 %v2624_v37, %v2233_v39  ;;  %v2428_v9 = vor.u32 %v2676_v8, %v2427_v7  ;;  %v2662_v37 = vld [vmem:[#allocation2 + $0x218] sm:$0xf0]  ;;  %v2547_v7 = vld [vmem:[#allocation2 + $0x358] sm:$0xf]  ;;  %v2705_v8 = vld [vmem:[#allocation2 + $0x370] sm:$0xf0] }
  0xb7   : > { %v348_v13 = vmax.f32 %v343_v11, 0.0  ;;  %1181 = vmatpush.bf16.msrb.mxu0 %v2420_v38  ;;  %v2287_v11 = vld [vmem:[#allocation2 + $0x158] sm:$0xf]  ;;  %1292 = vmatpush.bf16.msra.mxu2 %v2516_v32  ;;  %v2232_v38 = vor.u32 %v2627_v36, %v2231_v35  ;;  %v2371_v36 = vld [vmem:[#allocation2 + $0x200] sm:$0xf] }
  0xb9   : > { %v350_v14 = vpack.c.bf16 %v348_v13, %v347_v12  ;;  %v2641_v12 = vld [vmem:[#allocation2 + $0x170] sm:$0xf0]  ;;  %v2638_v13 = vld [vmem:[#allocation2 + $0x15c] sm:$0xf] }
  0xba   : > { %v2292_v16 = vor.u32 %v2638_v13, %v2289_v15  ;;  %v2149_v15 = vld [vmem:[#allocation2 + $0x5c] sm:$0xf0] }
  0xbb   : > { %2106 = vmatmul.msk.bf16.gmra.mxu1 %vm381_vm2, %v350_v14  ;;  %2108 = vmatmul.msk.bf16.gmra.mxu2 %vm381_vm2, %v350_v14  ;;  %v2288_v14 = vor.u32 %v2641_v12, %v2287_v11  ;;  %v2606_v11 = vld [vmem:[#allocation2 + $0x58] sm:$0xf0]  ;;  %v2603_v12 = vld [vmem:[#allocation2 + $0x44] sm:$0xf] }
  0xbc   : > { %1182 = vmatpush.bf16.msrb.mxu0 %v2392_v50  ;;  %1273 = vmatpush.bf16.msra.mxu1 %v2292_v16  ;;  %v2204_v50 = vor.u32 %v2620_v48, %v2203_v47  ;;  %v2666_v16 = vld [vmem:[#allocation2 + $0x23c] sm:$0xf]  ;;  %v2152_v19 = vor.u32 %v2603_v12, %v2149_v15  ;;  %v2325_v48 = vld [vmem:[#allocation2 + $0x1b4] sm:$0xf0]  ;;  %v2632_v12 = vld [vmem:[#allocation2 + $0x12c] sm:$0xf] }
  0xbd   : > { %1235 = vmatpush.bf16.msrb.mxu3 %v2288_v14  ;;  %1293 = vmatpush.bf16.msra.mxu2 %v2488_v44  ;;  %v2404_v20 = vor.u32 %v2666_v16, %v2401_v17  ;;  %v2649_v44 = vld [vmem:[#allocation2 + $0x1b0] sm:$0xf0]  ;;  %v2269_v15 = vld [vmem:[#allocation2 + $0x144] sm:$0xf0]  ;;  %v2695_v16 = vld [vmem:[#allocation2 + $0x324] sm:$0xf] }
  0xbe   : > { %v2324_v47 = vor.u32 %v2649_v44, %v2323_v43  ;;  %v2521_v17 = vld [vmem:[#allocation2 + $0x33c] sm:$0xf0]  ;;  %v2211_v44 = vld [vmem:[#allocation2 + $0xb8] sm:$0xf] }
  0xc0   : > { %1183 = vmatpush.bf16.msrb.mxu0 %v2364_v62  ;;  %1274 = vmatpush.bf16.msra.mxu1 %v2264_v28  ;;  %v2613_v62 = vld [vmem:[#allocation2 + $0x90] sm:$0xf0]  ;;  %v2121_v28 = vld [vmem:[#allocation2 + $0x24] sm:$0xf0] }
  0xc1   : > { %1236 = vmatpush.bf16.msrb.mxu3 %v2260_v26  ;;  %1294 = vmatpush.bf16.msra.mxu2 %v2460_v58  ;;  %v2176_v0 = vor.u32 %v2613_v62, %v2175_v61  ;;  %v2599_v26 = vld [vmem:[#allocation2 + $0x20] sm:$0xf0]  ;;  %v2124_v32 = vor.u32 %v2596_v27, %v2121_v28  ;;  %v2642_v58 = vld [vmem:[#allocation2 + $0x178] sm:$0xf0]  ;;  %v2344_v61 = vor.u32 %v2655_v56, %v2343_v53  ;;  %v2625_v27 = vld [vmem:[#allocation2 + $0xf4] sm:$0xf] }
  0xc2   : > { %v2120_v31 = vor.u32 %v2599_v26, %v2119_v23  ;;  %v2239_v23 = vld [vmem:[#allocation2 + $0xf0] sm:$0xf]  ;;  %v2628_v26 = vld [vmem:[#allocation2 + $0x108] sm:$0xf0]  ;;  %v2183_v56 = vld [vmem:[#allocation2 + $0x80] sm:$0xf] }
  0xc3   : > { %v2241_v28 = vld [vmem:[#allocation2 + $0x10c] sm:$0xf0] }
  0xc4   : > { %1184 = vmatpush.bf16.msrb.mxu0 %v2336_v10  ;;  %1275 = vmatpush.bf16.msra.mxu1 %v2236_v40  ;;  %v2147_v10 = vld [vmem:[#allocation2 + $0x40] sm:$0xf]  ;;  %v2372_v40 = vor.u32 %v2662_v37, %v2371_v36  ;;  %v2491_v36 = vld [vmem:[#allocation2 + $0x2e8] sm:$0xf]  ;;  %v2691_v37 = vld [vmem:[#allocation2 + $0x300] sm:$0xf0] }
  0xc5   : > { %1237 = vmatpush.bf16.msrb.mxu3 %v2232_v38  ;;  %1295 = vmatpush.bf16.msra.mxu2 %v2432_v6  ;;  %v2148_v14 = vor.u32 %v2606_v11, %v2147_v10  ;;  %v2552_v6 = vor.u32 %v2702_v4, %v2549_v5  ;;  %v2267_v10 = vld [vmem:[#allocation2 + $0x128] sm:$0xf]  ;;  %v2635_v11 = vld [vmem:[#allocation2 + $0x140] sm:$0xf0]  ;;  %v2463_v53 = vld [vmem:[#allocation2 + $0x2b0] sm:$0xf] }
  0xc6   : > { %v2437_v4 = vld [vmem:[#allocation2 + $0x294] sm:$0xf0] }
  0xc7   : > { %v2435_v5 = vld [vmem:[#allocation2 + $0x278] sm:$0xf] }
  0xc8   : > { %1253 = vmatpush.bf16.msra.mxu0 %v2540_v22  ;;  %1276 = vmatpush.bf16.msra.mxu1 %v2208_v52  ;;  %v2669_v22 = vld [vmem:[#allocation2 + $0x250] sm:$0xf0]  ;;  %v2345_v52 = vld [vmem:[#allocation2 + $0x1e4] sm:$0xf0] }
  0xc9   : > { %1238 = vmatpush.bf16.msrb.mxu3 %v2204_v50  ;;  %v2400_v25 = vor.u32 %v2669_v22, %v2399_v21  ;;  %1296 = vmatpush.bf16.msra.mxu2 %v2404_v20  ;;  %v2328_v50 = vor.u32 %v2646_v45, %v2325_v48  ;;  %v2348_v55 = vor.u32 %v2652_v51, %v2345_v52  ;;  %v2519_v21 = vld [vmem:[#allocation2 + $0x320] sm:$0xf]  ;;  %v2698_v22 = vld [vmem:[#allocation2 + $0x338] sm:$0xf0]  ;;  %v2213_v48 = vld [vmem:[#allocation2 + $0xd4] sm:$0xf0] }
  0xca   : > { %v2524_v20 = vor.u32 %v2695_v16, %v2521_v17  ;;  %v2618_v45 = vld [vmem:[#allocation2 + $0xbc] sm:$0xf]  ;;  %v2681_v51 = vld [vmem:[#allocation2 + $0x2b4] sm:$0xf]  ;;  %v2465_v52 = vld [vmem:[#allocation2 + $0x2cc] sm:$0xf0] }
  0xcc   : > { %1254 = vmatpush.bf16.msra.mxu0 %v2512_v34  ;;  %1277 = vmatpush.bf16.msra.mxu1 %v2180_v3  ;;  %v2373_v34 = vld [vmem:[#allocation2 + $0x21c] sm:$0xf0] }
  0xcd   : > { %1239 = vmatpush.bf16.msrb.mxu3 %v2176_v0  ;;  %v2376_v35 = vor.u32 %v2659_v33, %v2373_v34  ;;  %v2297_v0 = vld [vmem:[#allocation2 + $0x17c] sm:$0xf0]  ;;  %v2493_v33 = vld [vmem:[#allocation2 + $0x304] sm:$0xf0]  ;;  %v2244_v34 = vor.u32 %v2625_v27, %v2241_v28 }
  0xce   : > { %v2300_v1 = vor.u32 %v2639_v63, %v2297_v0  ;;  %v2381_v27 = vld [vmem:[#allocation2 + $0x224] sm:$0xf0] }
  0xcf   : > { %1297 = vmatpush.bf16.msra.mxu2 %v2376_v35  ;;  %v2379_v28 = vld [vmem:[#allocation2 + $0x208] sm:$0xf] }
  0xd0   : > { %1255 = vmatpush.bf16.msra.mxu0 %v2484_v46  ;;  %1278 = vmatpush.bf16.msra.mxu1 %v2152_v19  ;;  %v2272_v19 = vor.u32 %v2632_v12, %v2269_v15  ;;  %v2409_v15 = vld [vmem:[#allocation2 + $0x25c] sm:$0xf0] }
  0xd1   : > { %1240 = vmatpush.bf16.msrb.mxu3 %v2148_v14  ;;  %v2268_v14 = vor.u32 %v2635_v11, %v2267_v10  ;;  %v2607_v10 = vld [vmem:[#allocation2 + $0x60] sm:$0xf0]  ;;  %v2604_v11 = vld [vmem:[#allocation2 + $0x4c] sm:$0xf] }
  0xd3   : > { %1298 = vmatpush.bf16.msra.mxu2 %v2348_v55  ;;  %v2684_v55 = vld [vmem:[#allocation2 + $0x2c8] sm:$0xf0] }
  0xd4   : > { %1256 = vmatpush.bf16.msra.mxu0 %v2456_v60  ;;  %1279 = vmatpush.bf16.msra.mxu1 %v2124_v32  ;;  %v2688_v32 = vld [vmem:[#allocation2 + $0x2ec] sm:$0xf] }
  0xd5   : > { %1241 = vmatpush.bf16.msrb.mxu3 %v2120_v31  ;;  %v2240_v31 = vor.u32 %v2628_v26, %v2239_v23  ;;  %v2496_v35 = vor.u32 %v2688_v32, %v2493_v33  ;;  %v2597_v23 = vld [vmem:[#allocation2 + $0x14] sm:$0xf]  ;;  %v2660_v26 = vld [vmem:[#allocation2 + $0x20c] sm:$0xf]  ;;  %v2663_v32 = vld [vmem:[#allocation2 + $0x220] sm:$0xf0] }
  0xd6   : > { %v2380_v33 = vor.u32 %v2663_v32, %v2379_v28  ;;  %v3188_v28 = vld [vmem:[%s3658_s6] sm:$0xff] }
  0xd8   : > { %1257 = vmatpush.bf16.msra.mxu0 %v2428_v9  ;;  %v2548_v9 = vor.u32 %v2705_v8, %v2547_v7  ;;  %v2677_v7 = vld [vmem:[#allocation2 + $0x290] sm:$0xf0] }
  0xd9   : > { %v2436_v8 = vor.u32 %v2677_v7, %v2435_v5  ;;  %v2443_v5 = vld [vmem:[#allocation2 + $0x280] sm:$0xf]  ;;  %v2678_v7 = vld [vmem:[#allocation2 + $0x298] sm:$0xf0] }
  0xdc   : > { %1258 = vmatpush.bf16.msra.mxu0 %v2400_v25  ;;  %v2520_v25 = vor.u32 %v2698_v22, %v2519_v21  ;;  %v2600_v22 = vld [vmem:[#allocation2 + $0x28] sm:$0xf0] }
  0xe0   : > { %1259 = vmatpush.bf16.msra.mxu0 %v2372_v40  ;;  %v2492_v40 = vor.u32 %v2691_v37, %v2491_v36  ;;  %v2555_v36 = vld [vmem:[#allocation2 + $0x360] sm:$0xf] }
  0xe4   : > { %1260 = vmatpush.bf16.msra.mxu0 %v2344_v61 }
 0x128   : > { %v397_v57 = vpop.f32.mrf.mxu1 }
 0x129   : > { %v398_v18 = vadd.f32 %v397_v57, %v3137_v2  ;;  %v2295_v57 = vld [vmem:[#allocation2 + $0x160] sm:$0xf] }
 0x12a   : > { %v2296_v62 = vor.u32 %v2642_v58, %v2295_v57  ;;  %v2614_v57 = vld [vmem:[#allocation2 + $0x98] sm:$0xf0] }
 0x12b   : > { %v426_v38 = vmax.f32 %v398_v18, 0.0  ;;  %v2184_v61 = vor.u32 %v2614_v57, %v2183_v56  ;;  %v2692_v57 = vld [vmem:[#allocation2 + $0x308] sm:$0xf0] }
 0x12e   : > { %v416_v13 = vpop.f32.mrf.mxu2 }
 0x12f   : > { %v417_v41 = vadd.f32 %v416_v13, %v3140_v29 }
 0x130   : > { %v399_v24 = vpop.f32.mrf.mxu1 }
 0x131   : > { %v400_v30 = vadd.f32 %v399_v24, %v3137_v2  ;;  %v427_v59 = vmax.f32 %v417_v41, 0.0 }
 0x133   : > { %v428_v39 = vmax.f32 %v400_v30, 0.0 }
 0x135   : > { %v3144_v42 = vpack.c.bf16 %v428_v39, %v426_v38 }
 0x136   : > { %v418_v46 = vpop.f32.mrf.mxu2 }
 0x137   : > { %v419_v49 = vadd.f32 %v418_v46, %v3140_v29  ;;  %1166 = vmatmul.bf16.vlgmr.msra.gmra.mxu3 %v3144_v42  ;;  %1204 = vmatmul.bf16.vlgmr.msrb.gmra.mxu1 %v3144_v42 }
 0x138   : > { %v402_v54 = vpop.f32.mrf.mxu1  ;;  %1310 = vmatpush.bf16.msra.mxu3 %v2324_v47  ;;  %1348 = vmatpush.bf16.msrb.mxu1 %v2328_v50  ;;  %v2216_v50 = vor.u32 %v2618_v45, %v2213_v48  ;;  %v2656_v45 = vld [vmem:[#allocation2 + $0x1e8] sm:$0xf0] }
 0x139   : > { %v429_v60 = vmax.f32 %v419_v49, 0.0  ;;  %v403_v18 = vadd.f32 %v402_v54, %v3137_v2  ;;  %v2468_v54 = vor.u32 %v2681_v51, %v2465_v52  ;;  %v2699_v51 = vld [vmem:[#allocation2 + $0x340] sm:$0xf0] }
 0x13b   : > { %v3149_v3 = vpack.c.bf16 %v429_v60, %v427_v59  ;;  %v430_v38 = vmax.f32 %v403_v18, 0.0  ;;  %v2464_v60 = vor.u32 %v2684_v55, %v2463_v53  ;;  %v2407_v18 = vld [vmem:[#allocation2 + $0x240] sm:$0xf]  ;;  %v2275_v53 = vld [vmem:[#allocation2 + $0x130] sm:$0xf] }
 0x13c   : > { %1311 = vmatpush.bf16.msra.mxu3 %v2296_v62  ;;  %1349 = vmatpush.bf16.msrb.mxu1 %v2300_v1  ;;  %v2611_v62 = vld [vmem:[#allocation2 + $0x84] sm:$0xf]  ;;  %v2674_v1 = vld [vmem:[#allocation2 + $0x27c] sm:$0xf]  ;;  %v2499_v55 = vld [vmem:[#allocation2 + $0x2f0] sm:$0xf] }
 0x13d   : > { %1185 = vmatmul.bf16.vlgmr.msrb.gmra.mxu0 %v3149_v3  ;;  %1223 = vmatmul.bf16.vlgmr.msrb.gmra.mxu2 %v3149_v3 }
 0x13e   : > { %v421_v13 = vpop.f32.mrf.mxu2  ;;  %1367 = vmatpush.bf16.msrb.mxu2 %v2552_v6  ;;  %1329 = vmatpush.bf16.msrb.mxu0 %v2548_v9  ;;  %v2440_v6 = vor.u32 %v2674_v1, %v2437_v4  ;;  %v2155_v9 = vld [vmem:[#allocation2 + $0x48] sm:$0xf]  ;;  %v2219_v1 = vld [vmem:[#allocation2 + $0xc0] sm:$0xf]  ;;  %v2622_v4 = vld [vmem:[#allocation2 + $0xd8] sm:$0xf0] }
 0x13f   : > { %v422_v41 = vadd.f32 %v421_v13, %v3140_v29  ;;  %v2156_v12 = vor.u32 %v2607_v10, %v2155_v9  ;;  %v2157_v13 = vld [vmem:[#allocation2 + $0x64] sm:$0xf0]  ;;  %v2615_v10 = vld [vmem:[#allocation2 + $0xa0] sm:$0xf0] }
 0x140   : > { %v404_v24 = vpop.f32.mrf.mxu1  ;;  %1312 = vmatpush.bf16.msra.mxu3 %v2268_v14  ;;  %1350 = vmatpush.bf16.msrb.mxu1 %v2272_v19  ;;  %v2667_v14 = vld [vmem:[#allocation2 + $0x244] sm:$0xf]  ;;  %v2160_v16 = vor.u32 %v2604_v11, %v2157_v13  ;;  %v2670_v19 = vld [vmem:[#allocation2 + $0x258] sm:$0xf0]  ;;  %v2191_v9 = vld [vmem:[#allocation2 + $0x88] sm:$0xf] }
 0x141   : > { %v405_v30 = vadd.f32 %v404_v24, %v3137_v2  ;;  %v2621_v2 = vld [vmem:[#allocation2 + $0xd0] sm:$0xf0]  ;;  %v431_v58 = vmax.f32 %v422_v41, 0.0  ;;  %v2412_v17 = vor.u32 %v2667_v14, %v2409_v15  ;;  %v2408_v21 = vor.u32 %v2670_v19, %v2407_v18  ;;  %v2129_v24 = vld [vmem:[#allocation2 + $0x2c] sm:$0xf0] }
 0x142   : > { %1368 = vmatpush.bf16.msrb.mxu2 %v2524_v20  ;;  %1330 = vmatpush.bf16.msrb.mxu0 %v2520_v25  ;;  %v2212_v47 = vor.u32 %v2621_v2, %v2211_v44  ;;  %v2127_v20 = vld [vmem:[#allocation2 + $0x10] sm:$0xf]  ;;  %v2415_v11 = vld [vmem:[#allocation2 + $0x248] sm:$0xf]  ;;  %v2671_v13 = vld [vmem:[#allocation2 + $0x260] sm:$0xf0] }
 0x143   : > { %v432_v39 = vmax.f32 %v405_v30, 0.0  ;;  %v2128_v25 = vor.u32 %v2600_v22, %v2127_v20  ;;  %v2132_v30 = vor.u32 %v2597_v23, %v2129_v24  ;;  %v2353_v41 = vld [vmem:[#allocation2 + $0x1ec] sm:$0xf0]  ;;  %v2416_v14 = vor.u32 %v2671_v13, %v2415_v11  ;;  %v2664_v19 = vld [vmem:[#allocation2 + $0x228] sm:$0xf0] }
 0x144   : > { %1313 = vmatpush.bf16.msra.mxu3 %v2240_v31  ;;  %1351 = vmatpush.bf16.msrb.mxu1 %v2244_v34  ;;  %v2384_v31 = vor.u32 %v2660_v26, %v2381_v27  ;;  %v2331_v34 = vld [vmem:[#allocation2 + $0x1a0] sm:$0xf]  ;;  %v2351_v44 = vld [vmem:[#allocation2 + $0x1d0] sm:$0xf]  ;;  %v2135_v20 = vld [vmem:[#allocation2 + $0x18] sm:$0xf] }
 0x145   : > { %v3156_v43 = vpack.c.bf16 %v432_v39, %v430_v38  ;;  %v2706_v38 = vld [vmem:[#allocation2 + $0x378] sm:$0xf0]  ;;  %v2352_v48 = vor.u32 %v2656_v45, %v2351_v44  ;;  %v2163_v15 = vld [vmem:[#allocation2 + $0x50] sm:$0xf]  ;;  %v2359_v23 = vld [vmem:[#allocation2 + $0x1d8] sm:$0xf] }
 0x146   : > { %v423_v46 = vpop.f32.mrf.mxu2  ;;  %1369 = vmatpush.bf16.msrb.mxu2 %v2496_v35  ;;  %1331 = vmatpush.bf16.msrb.mxu0 %v2492_v40  ;;  %v2650_v35 = vld [vmem:[#allocation2 + $0x1b8] sm:$0xf0]  ;;  %v2556_v39 = vor.u32 %v2706_v38, %v2555_v36  ;;  %v2653_v40 = vld [vmem:[#allocation2 + $0x1d4] sm:$0xf] }
 0x147   : > { %v424_v49 = vadd.f32 %v423_v46, %v3140_v29  ;;  %1171 = vmatmul.bf16.gmra.mxu3 %v3156_v43  ;;  %1209 = vmatmul.bf16.gmra.mxu1 %v3156_v43  ;;  %v2185_v29 = vld [vmem:[#allocation2 + $0x9c] sm:$0xf0]  ;;  %v2332_v37 = vor.u32 %v2650_v35, %v2331_v34  ;;  %v2356_v2 = vor.u32 %v2653_v40, %v2353_v41  ;;  %v2303_v46 = vld [vmem:[#allocation2 + $0x168] sm:$0xf]  ;;  %v2657_v24 = vld [vmem:[#allocation2 + $0x1f0] sm:$0xf0] }
 0x148   : > { %1314 = vmatpush.bf16.msra.mxu3 %v2212_v47  ;;  %1352 = vmatpush.bf16.msrb.mxu1 %v2216_v50  ;;  %v2188_v63 = vor.u32 %v2611_v62, %v2185_v29  ;;  %v2643_v47 = vld [vmem:[#allocation2 + $0x180] sm:$0xf0]  ;;  %v2527_v50 = vld [vmem:[#allocation2 + $0x328] sm:$0xf]  ;;  %v2685_v62 = vld [vmem:[#allocation2 + $0x2d0] sm:$0xf0]  ;;  %v2360_v26 = vor.u32 %v2657_v24, %v2359_v23 }
 0x149   : > { %v433_v59 = vmax.f32 %v424_v49, 0.0  ;;  %v2304_v49 = vor.u32 %v2643_v47, %v2303_v46  ;;  %v2528_v52 = vor.u32 %v2699_v51, %v2527_v50 }
 0x14a   : > { %1370 = vmatpush.bf16.msrb.mxu2 %v2468_v54  ;;  %1332 = vmatpush.bf16.msrb.mxu0 %v2464_v60  ;;  %v2636_v54 = vld [vmem:[#allocation2 + $0x148] sm:$0xf0]  ;;  %v2500_v60 = vor.u32 %v2692_v57, %v2499_v55 }
 0x14b   : > { %v3161_v0 = vpack.c.bf16 %v433_v59, %v431_v58  ;;  %v2276_v56 = vor.u32 %v2636_v54, %v2275_v53  ;;  %v2247_v58 = vld [vmem:[#allocation2 + $0xf8] sm:$0xf]  ;;  %v2629_v59 = vld [vmem:[#allocation2 + $0x110] sm:$0xf0] }
 0x14c   : > { %1315 = vmatpush.bf16.msra.mxu3 %v2184_v61  ;;  %1353 = vmatpush.bf16.msrb.mxu1 %v2188_v63  ;;  %v2471_v61 = vld [vmem:[#allocation2 + $0x2b8] sm:$0xf]  ;;  %v2248_v29 = vor.u32 %v2629_v59, %v2247_v58 }
 0x14d   : > { %1190 = vmatmul.bf16.gmra.mxu0 %v3161_v0  ;;  %1228 = vmatmul.bf16.gmra.mxu2 %v3161_v0  ;;  %v2472_v63 = vor.u32 %v2685_v62, %v2471_v61 }
 0x14e   : > { %1371 = vmatpush.bf16.msrb.mxu2 %v2440_v6  ;;  %1333 = vmatpush.bf16.msrb.mxu0 %v2436_v8  ;;  %v2220_v6 = vor.u32 %v2622_v4, %v2219_v1  ;;  %v2444_v8 = vor.u32 %v2678_v7, %v2443_v5 }
 0x150   : > { %1316 = vmatpush.bf16.msra.mxu3 %v2156_v12  ;;  %1354 = vmatpush.bf16.msrb.mxu1 %v2160_v16  ;;  %v2192_v12 = vor.u32 %v2615_v10, %v2191_v9  ;;  %v2608_v16 = vld [vmem:[#allocation2 + $0x68] sm:$0xf0]  ;;  %v3213_v9 = vperm.slane %v3188_v28, 2 }
 0x151   : > { %v2164_v18 = vor.u32 %v2608_v16, %v2163_v15 }
 0x152   : > { %1372 = vmatpush.bf16.msrb.mxu2 %v2412_v17  ;;  %1334 = vmatpush.bf16.msrb.mxu0 %v2408_v21  ;;  %v2387_v17 = vld [vmem:[#allocation2 + $0x210] sm:$0xf]  ;;  %v2601_v21 = vld [vmem:[#allocation2 + $0x30] sm:$0xf0] }
 0x153   : > { %v2388_v22 = vor.u32 %v2664_v19, %v2387_v17 }
 0x154   : > { %1317 = vmatpush.bf16.msra.mxu3 %v2128_v25  ;;  %1355 = vmatpush.bf16.msrb.mxu1 %v2132_v30  ;;  %v2136_v25 = vor.u32 %v2601_v21, %v2135_v20  ;;  %v3191_v30 = vperm.slane %v3188_v28, 0 }
 0x156   : > { %1373 = vmatpush.bf16.msrb.mxu2 %v2384_v31  ;;  %1335 = vmatpush.bf16.msrb.mxu0 %v2380_v33  ;;  %v3194_v33 = vperm.slane %v3188_v28, 1 }
 0x157   : > { %1242 = vmatmul.bf16.vlgmr.msrb.gmra.mxu3 %v3144_v42  ;;  %1280 = vmatmul.bf16.vlgmr.msra.gmra.mxu1 %v3144_v42 }
 0x158   : > { %2707 = vmatpush.bf16.msrb.mxu3 %v2332_v37  ;;  %2715 = vmatpush.bf16.msra.mxu1 %v2556_v39 }
 0x15a   : > { %1374 = vmatpush.bf16.msrb.mxu2 %v2356_v2  ;;  %1336 = vmatpush.bf16.msrb.mxu0 %v2352_v48 }
 0x15c   : > { %2708 = vmatpush.bf16.msrb.mxu3 %v2304_v49  ;;  %2716 = vmatpush.bf16.msra.mxu1 %v2528_v52 }
 0x15d   : > { %1261 = vmatmul.bf16.vlgmr.msra.gmra.mxu0 %v3149_v3  ;;  %1299 = vmatmul.bf16.vlgmr.msra.gmra.mxu2 %v3149_v3 }
 0x15e   : > { %1386 = vmatpush.bf16.msra.mxu2 %v2332_v37  ;;  %1405 = vmatpush.bf16.msra.mxu0 %v2556_v39 }
 0x160   : > { %2709 = vmatpush.bf16.msrb.mxu3 %v2276_v56  ;;  %2717 = vmatpush.bf16.msra.mxu1 %v2500_v60 }
 0x162   : > { %1387 = vmatpush.bf16.msra.mxu2 %v2304_v49  ;;  %1406 = vmatpush.bf16.msra.mxu0 %v2528_v52 }
 0x164   : > { %2710 = vmatpush.bf16.msrb.mxu3 %v2248_v29  ;;  %2718 = vmatpush.bf16.msra.mxu1 %v2472_v63 }
 0x166   : > { %1388 = vmatpush.bf16.msra.mxu2 %v2276_v56  ;;  %1407 = vmatpush.bf16.msra.mxu0 %v2500_v60 }
 0x167   : > { %1247 = vmatmul.bf16.gmra.mxu3 %v3156_v43  ;;  %1285 = vmatmul.bf16.gmra.mxu1 %v3156_v43 }
 0x168   : > { %2711 = vmatpush.bf16.msrb.mxu3 %v2220_v6  ;;  %2719 = vmatpush.bf16.msra.mxu1 %v2444_v8 }
 0x16a   : > { %1389 = vmatpush.bf16.msra.mxu2 %v2248_v29  ;;  %1408 = vmatpush.bf16.msra.mxu0 %v2472_v63 }
 0x16c   : > { %2712 = vmatpush.bf16.msrb.mxu3 %v2192_v12  ;;  %2720 = vmatpush.bf16.msra.mxu1 %v2416_v14 }
 0x16d   : > { %1266 = vmatmul.bf16.gmra.mxu0 %v3161_v0  ;;  %1304 = vmatmul.bf16.gmra.mxu2 %v3161_v0 }
 0x16e   : > { %1390 = vmatpush.bf16.msra.mxu2 %v2220_v6  ;;  %1409 = vmatpush.bf16.msra.mxu0 %v2444_v8  ;;  %v3210_v8 = vperm.slane %v3188_v28, 3 }
 0x170   : > { %2713 = vmatpush.bf16.msrb.mxu3 %v2164_v18  ;;  %2721 = vmatpush.bf16.msra.mxu1 %v2388_v22 }
 0x172   : > { %1391 = vmatpush.bf16.msra.mxu2 %v2192_v12  ;;  %1410 = vmatpush.bf16.msra.mxu0 %v2416_v14 }
 0x174   : > { %2714 = vmatpush.bf16.msrb.mxu3 %v2136_v25  ;;  %2722 = vmatpush.bf16.msra.mxu1 %v2360_v26 }
 0x176   : > { %1392 = vmatpush.bf16.msra.mxu2 %v2164_v18  ;;  %1411 = vmatpush.bf16.msra.mxu0 %v2388_v22 }
 0x177   : > { %1318 = vmatmul.bf16.vlgmr.msra.gmra.mxu3 %v3144_v42  ;;  %1356 = vmatmul.bf16.vlgmr.msrb.gmra.mxu1 %v3144_v42 }
 0x17a   : > { %1393 = vmatpush.bf16.msra.mxu2 %v2136_v25  ;;  %1412 = vmatpush.bf16.msra.mxu0 %v2360_v26 }
 0x17d   : > { %1337 = vmatmul.bf16.vlgmr.msrb.gmra.mxu0 %v3149_v3  ;;  %1375 = vmatmul.bf16.vlgmr.msrb.gmra.mxu2 %v3149_v3 }
 0x187   : > { %1323 = vmatmul.bf16.gmra.mxu3 %v3156_v43  ;;  %1361 = vmatmul.bf16.gmra.mxu1 %v3156_v43 }
 0x18d   : > { %1342 = vmatmul.bf16.gmra.mxu0 %v3161_v0  ;;  %1380 = vmatmul.bf16.gmra.mxu2 %v3161_v0 }
 0x197   : > { %1399 = vmatmul.bf16.vlgmr.msrb.gmra.mxu3 %v3156_v43  ;;  %1418 = vmatmul.bf16.vlgmr.msra.gmra.mxu1 %v3161_v0 }
 0x19d   : > { %1394 = vmatmul.bf16.vlgmr.msra.gmra.mxu2 %v3144_v42  ;;  %1413 = vmatmul.bf16.vlgmr.msra.gmra.mxu0 %v3149_v3 }
 0x1b4   : > { %v1205_v27 = vpop.f32.mrf.mxu1 }
 0x1b5   : > { %v1206_v3 = vadd.f32 %v1205_v27, %v3194_v33 }
 0x1ba   : > { %v1167_v31 = vpop.f32.mrf.mxu3  ;;  %v1186_v32 = vpop.f32.mrf.mxu0 }
 0x1bb   : > { %v1168_v43 = vadd.f32 %v1167_v31, %v3191_v30 }
 0x1bc   : > { %v1207_v0 = vpop.f32.mrf.mxu1 }
 0x1bd   : > { %v1187_v42 = vadd.f32 %v1186_v32, %v1168_v43  ;;  %v1208_v45 = vadd.f32 %v1207_v0, %v3194_v33 }
 0x1bf   : > { %v2557_v34 = vmul.f32 -1.442695, %v1187_v42 }
 0x1c0   : > { %v1224_v35 = vpop.f32.mrf.mxu2 }
 0x1c1   : > { %2780 = vpow2.f32 %v2557_v34  ;;  %v1225_v36 = vadd.f32 %v1224_v35, %v1206_v3 }
 0x1c2   : > { %v1169_v37 = vpop.f32.mrf.mxu3  ;;  %v1188_v38 = vpop.f32.mrf.mxu0 }
 0x1c3   : > { %v2558_v39 = vmul.f32 -1.442695, %v1225_v36  ;;  %v1170_v40 = vadd.f32 %v1169_v37, %v3191_v30 }
 0x1c4   : > { %v1210_v41 = vpop.f32.mrf.mxu1 }
 0x1c5   : > { %2782 = vpow2.f32 %v2558_v39  ;;  %v1189_v44 = vadd.f32 %v1188_v38, %v1170_v40  ;;  %v1211_v60 = vadd.f32 %v1210_v41, %v3194_v33 }
 0x1c7   : > { %v2781_v2 = vpop.eup %2780  ;;  %v2564_v46 = vmul.f32 -1.442695, %v1189_v44 }
 0x1c8   : > { %v1508_v47 = vadd.f32 1.0, %v2781_v2  ;;  %v1226_v48 = vpop.f32.mrf.mxu2 }
 0x1c9   : > { %2784 = vpow2.f32 %v2564_v46  ;;  %v1227_v49 = vadd.f32 %v1226_v48, %v1208_v45 }
 0x1ca   : > { %2786 = vrcp.f32 %v1508_v47  ;;  %v1172_v50 = vpop.f32.mrf.mxu3  ;;  %v1191_v51 = vpop.f32.mrf.mxu0  ;;  %v1545_v59 = vand.u32 2147483647, %v1508_v47  ;;  %v1547_v5 = vand.u32 2147483648, %v1508_v47  ;;  %vm1541_vm3 = vweird.f32 %v1508_v47 }
 0x1cb   : > { %v2783_v52 = vpop.eup %2782  ;;  %v2565_v53 = vmul.f32 -1.442695, %v1227_v49  ;;  %v1173_v54 = vadd.f32 %v1172_v50, %v3191_v30 }
 0x1cc   : > { %v3201_v55 = vadd.f32 1.0, %v2783_v52  ;;  %v1212_v56 = vpop.f32.mrf.mxu1  ;;  %vm3215_vm4 = vcmp.eq.f32.partialorder %v1545_v59, 8.507059e+37  ;;  %v1548_v22 = vor.u32 1.1754944e-38, %v1547_v5 }
 0x1cd   : > { %2788 = vpow2.f32 %v2565_v53  ;;  %v1192_v57 = vadd.f32 %v1191_v51, %v1173_v54  ;;  %v1213_v24 = vadd.f32 %v1212_v56, %v3194_v33 }
 0x1ce   : > { %2790 = vrcp.f32 %v3201_v55  ;;  %v1560_v15 = vand.u32 2147483647, %v3201_v55  ;;  %v1562_v16 = vand.u32 2147483648, %v3201_v55  ;;  %vm1556_vm6 = vweird.f32 %v3201_v55 }
 0x1cf   : > { %v2785_v58 = vpop.eup %2784  ;;  %v2571_v61 = vmul.f32 -1.442695, %v1192_v57 }
 0x1d0   : > { %v2787_v62 = vpop.eup %2786  ;;  %v3205_v29 = vadd.f32 1.0, %v2785_v58  ;;  %v1229_v63 = vpop.f32.mrf.mxu2  ;;  %vm3235_vm8 = vcmp.eq.f32.partialorder %v1560_v15, 8.507059e+37  ;;  %v1563_v43 = vor.u32 1.1754944e-38, %v1562_v16 }
 0x1d1   : > { %v1537_v1 = vmul.f32 %v2787_v62, %v1508_v47  ;;  %2792 = vpow2.f32 %v2571_v61  ;;  %v1230_v4 = vadd.f32 %v1229_v63, %v1211_v60  ;;  %vm1542_vm5 = vweird.f32 %v2787_v62 }
 0x1d2   : > { %2794 = vrcp.f32 %v3205_v29  ;;  %v1174_v6 = vpop.f32.mrf.mxu3  ;;  %v1193_v7 = vpop.f32.mrf.mxu0  ;;  %v1650_v23 = vand.u32 2147483647, %v3205_v29  ;;  %vm1543_vm7 = vmor %vm1541_vm3, %vm1542_vm5  ;;  %vm1646_vm10 = vweird.f32 %v3205_v29 }
 0x1d3   : > { %v2789_v10 = vpop.eup %2788  ;;  %v1538_v11 = vsub.f32 1.0, %v1537_v1  ;;  %v2572_v13 = vmul.f32 -1.442695, %v1230_v4  ;;  %v1175_v18 = vadd.f32 %v1174_v6, %v3191_v30  ;;  %v1652_v30 = vand.u32 2147483648, %v3205_v29 }
 0x1d4   : > { %v2791_v14 = vpop.eup %2790  ;;  %v3225_v17 = vadd.f32 1.0, %v2789_v10  ;;  %v1281_v19 = vpop.f32.mrf.mxu1  ;;  %vm3245_vm11 = vcmp.eq.f32.partialorder %v1650_v23, 8.507059e+37 }
 0x1d5   : > { %v1539_v20 = vmul.f32 %v2787_v62, %v1538_v11  ;;  %v1552_v21 = vmul.f32 %v2791_v14, %v3201_v55  ;;  %2796 = vpow2.f32 %v2572_v13  ;;  %v1194_v42 = vadd.f32 %v1193_v7, %v1175_v18 }
 0x1d6   : > { %2798 = vrcp.f32 %v3225_v17  ;;  %vm1557_vm9 = vweird.f32 %v2791_v14  ;;  %v1653_v2 = vor.u32 1.1754944e-38, %v1652_v30  ;;  %vm1661_vm12 = vweird.f32 %v3225_v17 }
 0x1d7   : > { %v2793_v25 = vpop.eup %2792  ;;  %v1540_v26 = vadd.f32 %v2787_v62, %v1539_v20  ;;  %v1553_v27 = vsub.f32 1.0, %v1552_v21  ;;  %vm1558_vm13 = vmor %vm1556_vm6, %vm1557_vm9  ;;  %v2578_v47 = vmul.f32 -1.442695, %v1194_v42  ;;  %v1665_v56 = vand.u32 2147483647, %v3225_v17 }
 0x1d8   : > { %v2795_v31 = vpop.eup %2794  ;;  %v3239_v0 = vadd.f32 1.0, %v2793_v25  ;;  %v1231_v33 = vpop.f32.mrf.mxu2  ;;  %v1667_v55 = vand.u32 2147483648, %v3225_v17  ;;  %v1282_v60 = vadd.f32 %v1281_v19, %v3210_v8 }
 0x1d9   : > { %v1544_v3 = vsel %vm1543_vm7, %v2787_v62, %v1540_v26  ;;  %v1554_v34 = vmul.f32 %v2791_v14, %v1553_v27  ;;  %v1642_v35 = vmul.f32 %v2795_v31, %v3205_v29  ;;  %v1232_v48 = vadd.f32 %v1231_v33, %v1213_v24 }
 0x1da   : > { %v1549_v36 = vsel %vm3215_vm4, %v1548_v22, %v1544_v3  ;;  %2800 = vrcp.f32 %v3239_v0  ;;  %v1243_v38 = vpop.f32.mrf.mxu3  ;;  %v1262_v39 = vpop.f32.mrf.mxu0  ;;  %vm1647_vm14 = vweird.f32 %v2795_v31  ;;  %v1755_v59 = vand.u32 2147483647, %v3239_v0 }
 0x1db   : > { %v2797_v40 = vpop.eup %2796  ;;  %1956 = vst [vmem:[%s3251_s8] sm:$0xff] %v1549_v36  ;;  %v1555_v41 = vadd.f32 %v2791_v14, %v1554_v34  ;;  %v1643_v44 = vsub.f32 1.0, %v1642_v35  ;;  %v1244_v49 = vadd.f32 %v1243_v38, %v3213_v9  ;;  %vm1648_vm15 = vmor %vm1646_vm10, %vm1647_vm14  ;;  %v1757_v62 = vand.u32 2147483648, %v3239_v0 }
 0x1dc   : > { %v2799_v45 = vpop.eup %2798  ;;  %v3258_v46 = vadd.f32 1.0, %v2797_v40  ;;  %v1283_v50 = vpop.f32.mrf.mxu1  ;;  %v2579_v63 = vmul.f32 -1.442695, %v1232_v48  ;;  %vm3276_vm1 = vcmp.eq.f32.partialorder %v1665_v56, 8.507059e+37  ;;  %v1668_v29 = vor.u32 1.1754944e-38, %v1667_v55 }
 0x1dd   : > { %v1559_v51 = vsel %vm1558_vm13, %v2791_v14, %v1555_v41  ;;  %v1644_v52 = vmul.f32 %v2795_v31, %v1643_v44  ;;  %v1657_v53 = vmul.f32 %v2799_v45, %v3225_v17  ;;  %v1263_v1 = vadd.f32 %v1262_v39, %v1244_v49 }
 0x1de   : > { %v1564_v54 = vsel %vm3235_vm8, %v1563_v43, %v1559_v51  ;;  %2802 = vrcp.f32 %v3258_v46  ;;  %vm1662_vm0 = vweird.f32 %v2799_v45  ;;  %vm1751_vm3 = vweird.f32 %v3239_v0 }
 0x1df   : > { %1957 = vst [vmem:[%s3251_s8 + $0x8] sm:$0xff] %v1564_v54  ;;  %v1645_v57 = vadd.f32 %v2795_v31, %v1644_v52  ;;  %v1658_v58 = vsub.f32 1.0, %v1657_v53  ;;  %2804 = vpow2.f32 %v2578_v47  ;;  %v2559_v16 = vmul.f32 -1.442695, %v1263_v1  ;;  %vm1663_vm2 = vmor %vm1661_vm12, %vm1662_vm0 }
 0x1e0   : > { %v2801_v61 = vpop.eup %2800  ;;  %v1300_v4 = vpop.f32.mrf.mxu2  ;;  %2806 = vpow2.f32 %v2579_v63  ;;  %vm3284_vm4 = vcmp.eq.f32.partialorder %v1755_v59, 8.507059e+37  ;;  %v1758_v21 = vor.u32 1.1754944e-38, %v1757_v62  ;;  %v1772_v42 = vand.u32 2147483648, %v3258_v46 }
 0x1e1   : > { %v1649_v5 = vsel %vm1648_vm15, %v2795_v31, %v1645_v57  ;;  %v1659_v6 = vmul.f32 %v2799_v45, %v1658_v58  ;;  %v1747_v7 = vmul.f32 %v2801_v61, %v3239_v0  ;;  %v1301_v18 = vadd.f32 %v1300_v4, %v1282_v60 }
 0x1e2   : > { %v1654_v10 = vsel %vm3245_vm11, %v1653_v2, %v1649_v5  ;;  %v1245_v12 = vpop.f32.mrf.mxu3  ;;  %v1264_v13 = vpop.f32.mrf.mxu0  ;;  %vm1752_vm5 = vweird.f32 %v2801_v61  ;;  %2808 = vpow2.f32 %v2559_v16  ;;  %v1770_v34 = vand.u32 2147483647, %v3258_v46 }
 0x1e3   : > { %1963 = vst [vmem:[%s3251_s8 + $0x38] sm:$0xff] %v1654_v10  ;;  %v1660_v14 = vadd.f32 %v2799_v45, %v1659_v6  ;;  %v1748_v15 = vsub.f32 1.0, %v1747_v7  ;;  %v1246_v22 = vadd.f32 %v1245_v12, %v3213_v9  ;;  %v2560_v27 = vmul.f32 -1.442695, %v1301_v18  ;;  %vm1753_vm6 = vmor %vm1751_vm3, %vm1752_vm5 }
 0x1e4   : > { %v2803_v19 = vpop.eup %2802  ;;  %v1286_v31 = vpop.f32.mrf.mxu1  ;;  %v1284_v35 = vadd.f32 %v1283_v50, %v3210_v8  ;;  %vm1766_vm8 = vweird.f32 %v3258_v46  ;;  %vm1771_vm10 = vcmp.eq.f32.partialorder %v1770_v34, 8.507059e+37  ;;  %v3314_v55 = vperm.slane %v3188_v28, 5 }
 0x1e5   : > { %v1664_v23 = vsel %vm1663_vm2, %v2799_v45, %v1660_v14  ;;  %v1749_v24 = vmul.f32 %v2801_v61, %v1748_v15  ;;  %v1762_v25 = vmul.f32 %v2803_v19, %v3258_v46  ;;  %v2805_v26 = vpop.eup %2804  ;;  %v1265_v30 = vadd.f32 %v1264_v13, %v1246_v22 }
 0x1e6   : > { %v1669_v17 = vsel %vm3276_vm1, %v1668_v29, %v1664_v23  ;;  %v3294_v33 = vadd.f32 1.0, %v2805_v26  ;;  %v2807_v3 = vpop.eup %2806  ;;  %2810 = vpow2.f32 %v2560_v27  ;;  %vm1767_vm7 = vweird.f32 %v2803_v19 }
 0x1e7   : > { %1964 = vst [vmem:[%s3251_s8 + $0x40] sm:$0xff] %v1669_v17  ;;  %v1750_v32 = vadd.f32 %v2801_v61, %v1749_v24  ;;  %v1763_v43 = vsub.f32 1.0, %v1762_v25  ;;  %v2566_v36 = vmul.f32 -1.442695, %v1265_v30  ;;  %v3304_v0 = vadd.f32 1.0, %v2807_v3  ;;  %vm1768_vm9 = vmor %vm1766_vm8, %vm1767_vm7 }
 0x1e8   : > { %v1302_v37 = vpop.f32.mrf.mxu2  ;;  %2812 = vrcp.f32 %v3294_v33  ;;  %v1773_v45 = vor.u32 1.1754944e-38, %v1772_v42  ;;  %v2809_v48 = vpop.eup %2808  ;;  %v1860_v49 = vand.u32 2147483647, %v3294_v33  ;;  %v1862_v50 = vand.u32 2147483648, %v3294_v33 }
 0x1e9   : > { %v1754_v38 = vsel %vm1753_vm6, %v2801_v61, %v1750_v32  ;;  %v1764_v39 = vmul.f32 %v2803_v19, %v1763_v43  ;;  %2814 = vpow2.f32 %v2566_v36  ;;  %v1303_v47 = vadd.f32 %v1302_v37, %v1284_v35 }
 0x1ea   : > { %v1759_v40 = vsel %vm3284_vm4, %v1758_v21, %v1754_v38  ;;  %v1248_v41 = vpop.f32.mrf.mxu3  ;;  %v1267_v44 = vpop.f32.mrf.mxu0  ;;  %2816 = vrcp.f32 %v3304_v0  ;;  %v3311_v52 = vadd.f32 1.0, %v2809_v48  ;;  %v3317_v57 = vperm.slane %v3188_v28, 4 }
 0x1eb   : > { %1970 = vst [vmem:[%s3251_s8 + $0x70] sm:$0xff] %v1759_v40  ;;  %v1765_v2 = vadd.f32 %v2803_v19, %v1764_v39  ;;  %v1249_v46 = vadd.f32 %v1248_v41, %v3213_v9  ;;  %v2567_v56 = vmul.f32 -1.442695, %v1303_v47  ;;  %vm1856_vm11 = vweird.f32 %v3294_v33 }
 0x1ec   : > { %v2811_v53 = vpop.eup %2810  ;;  %v1875_v59 = vand.u32 2147483647, %v3304_v0  ;;  %2818 = vrcp.f32 %v3311_v52  ;;  %v1287_v60 = vadd.f32 %v1286_v31, %v3210_v8  ;;  %vm3325_vm12 = vcmp.eq.f32.partialorder %v1860_v49, 8.507059e+37  ;;  %v1288_v4 = vpop.f32.mrf.mxu1 }
 0x1ed   : > { %v1769_v51 = vsel %vm1768_vm9, %v2803_v19, %v1765_v2  ;;  %v1863_v63 = vor.u32 1.1754944e-38, %v1862_v50  ;;  %v1268_v1 = vadd.f32 %v1267_v44, %v1249_v46  ;;  %vm1871_vm13 = vweird.f32 %v3304_v0 }
 0x1ee   : > { %v1774_v54 = vsel %vm1771_vm10, %v1773_v45, %v1769_v51  ;;  %v2813_v58 = vpop.eup %2812  ;;  %v1877_v7 = vand.u32 2147483648, %v3304_v0  ;;  %v3331_v10 = vadd.f32 1.0, %v2811_v53  ;;  %2820 = vpow2.f32 %v2567_v56 }
 0x1ef   : > { %1971 = vst [vmem:[%s3251_s8 + $0x78] sm:$0xff] %v1774_v54  ;;  %v1852_v61 = vmul.f32 %v2813_v58, %v3294_v33  ;;  %v2815_v6 = vpop.eup %2814  ;;  %v1575_v12 = vand.u32 2147483647, %v3311_v52  ;;  %v1577_v13 = vand.u32 2147483648, %v3311_v52  ;;  %vm3338_vm14 = vcmp.eq.f32.partialorder %v1875_v59, 8.507059e+37 }
 0x1f0   : > { %v1305_v5 = vpop.f32.mrf.mxu2  ;;  %v2817_v11 = vpop.eup %2816  ;;  %v3335_v14 = vadd.f32 1.0, %v2815_v6  ;;  %2822 = vrcp.f32 %v3331_v10  ;;  %v3344_v20 = vadd.f32 %v1288_v4, %v3210_v8  ;;  %vm1857_vm15 = vweird.f32 %v2813_v58 }
 0x1f1   : > { %v1853_v29 = vsub.f32 1.0, %v1852_v61  ;;  %v1867_v18 = vmul.f32 %v2817_v11, %v3304_v0  ;;  %v2573_v22 = vmul.f32 -1.442695, %v1268_v1  ;;  %v1878_v25 = vor.u32 1.1754944e-38, %v1877_v7  ;;  %vm1858_vm2 = vmor %vm1856_vm11, %vm1857_vm15 }
 0x1f2   : > { %v1250_v15 = vpop.f32.mrf.mxu3  ;;  %v1269_v16 = vpop.f32.mrf.mxu0  ;;  %2824 = vrcp.f32 %v3335_v14  ;;  %vm1571_vm0 = vweird.f32 %v3311_v52  ;;  %v1306_v26 = vadd.f32 %v1305_v5, %v1287_v60  ;;  %vm3349_vm1 = vcmp.eq.f32.partialorder %v1575_v12, 8.507059e+37 }
 0x1f3   : > { %v1854_v21 = vmul.f32 %v2813_v58, %v1853_v29  ;;  %v2819_v23 = vpop.eup %2818  ;;  %v1868_v24 = vsub.f32 1.0, %v1867_v18  ;;  %v1578_v8 = vor.u32 1.1754944e-38, %v1577_v13  ;;  %vm1872_vm3 = vweird.f32 %v2817_v11 }
 0x1f4   : > { %v1567_v27 = vmul.f32 %v2819_v23, %v3311_v52  ;;  %v2821_v31 = vpop.eup %2820  ;;  %v1590_v43 = vand.u32 2147483647, %v3331_v10  ;;  %v1592_v42 = vand.u32 2147483648, %v3331_v10  ;;  %vm1586_vm4 = vweird.f32 %v3331_v10  ;;  %vm1873_vm5 = vmor %vm1871_vm13, %vm1872_vm3  ;;  %v1357_v49 = vpop.f32.mrf.mxu1 }
 0x1f5   : > { %v1855_v17 = vadd.f32 %v2813_v58, %v1854_v21  ;;  %v1869_v32 = vmul.f32 %v2817_v11, %v1868_v24  ;;  %v3358_v35 = vadd.f32 1.0, %v2821_v31  ;;  %2826 = vpow2.f32 %v2573_v22 }
 0x1f6   : > { %v1568_v34 = vsub.f32 1.0, %v1567_v27  ;;  %v2823_v37 = vpop.eup %2822  ;;  %v2574_v39 = vmul.f32 -1.442695, %v1306_v26  ;;  %v1251_v40 = vadd.f32 %v1250_v15, %v3213_v9  ;;  %vm1572_vm6 = vweird.f32 %v2819_v23 }
 0x1f7   : > { %v1859_v3 = vsel %vm1858_vm2, %v2813_v58, %v1855_v17  ;;  %v1870_v38 = vadd.f32 %v2817_v11, %v1869_v32  ;;  %v1582_v2 = vmul.f32 %v2823_v37, %v3331_v10  ;;  %2828 = vrcp.f32 %v3358_v35  ;;  %vm1573_vm8 = vmor %vm1571_vm0, %vm1572_vm6 }
 0x1f8   : > { %v1307_v36 = vpop.f32.mrf.mxu2  ;;  %v1864_v33 = vsel %vm3325_vm12, %v1863_v63, %v1859_v3  ;;  %v2825_v41 = vpop.eup %2824  ;;  %v1569_v44 = vmul.f32 %v2819_v23, %v1568_v34  ;;  %vm1676_vm7 = vweird.f32 %v3335_v14  ;;  %v1680_v9 = vand.u32 2147483647, %v3335_v14 }
 0x1f9   : > { %1977 = vst [vmem:[%s3251_s8 + $0xa8] sm:$0xff] %v1864_v33  ;;  %v1874_v47 = vsel %vm1873_vm5, %v2817_v11, %v1870_v38  ;;  %v1672_v48 = vmul.f32 %v2825_v41, %v3335_v14  ;;  %v1583_v51 = vsub.f32 1.0, %v1582_v2  ;;  %v1682_v53 = vand.u32 2147483648, %v3335_v14 }
 0x1fa   : > { %v1319_v45 = vpop.f32.mrf.mxu3  ;;  %v1338_v50 = vpop.f32.mrf.mxu0  ;;  %v1879_v0 = vsel %vm3338_vm14, %v1878_v25, %v1874_v47  ;;  %v1570_v46 = vadd.f32 %v2819_v23, %v1569_v44  ;;  %vm3379_vm9 = vcmp.eq.f32.partialorder %v1590_v43, 8.507059e+37  ;;  %2830 = vpow2.f32 %v2574_v39 }
 0x1fb   : > { %1978 = vst [vmem:[%s3251_s8 + $0xb0] sm:$0xff] %v1879_v0  ;;  %v1673_v56 = vsub.f32 1.0, %v1672_v48  ;;  %v1270_v58 = vadd.f32 %v1269_v16, %v1251_v40  ;;  %v2827_v59 = vpop.eup %2826  ;;  %v1584_v61 = vmul.f32 %v2823_v37, %v1583_v51  ;;  %vm1587_vm10 = vweird.f32 %v2823_v37 }
 0x1fc   : > { %v1574_v60 = vsel %vm1573_vm8, %v2819_v23, %v1570_v46  ;;  %v1593_v62 = vor.u32 1.1754944e-38, %v1592_v42  ;;  %vm1677_vm11 = vweird.f32 %v2825_v41  ;;  %v3385_v52 = vadd.f32 1.0, %v2827_v59  ;;  %vm1588_vm13 = vmor %vm1586_vm4, %vm1587_vm10 }
 0x1fd   : > { %v1579_v63 = vsel %vm3349_vm1, %v1578_v8, %v1574_v60  ;;  %v1674_v1 = vmul.f32 %v2825_v41, %v1673_v56  ;;  %v2829_v4 = vpop.eup %2828  ;;  %v1585_v5 = vadd.f32 %v2823_v37, %v1584_v61  ;;  %vm3388_vm12 = vcmp.eq.f32.partialorder %v1680_v9, 8.507059e+37  ;;  %vm1678_vm14 = vmor %vm1676_vm7, %vm1677_vm11  ;;  %v1359_v8 = vpop.f32.mrf.mxu1 }
 0x1fe   : > { %1958 = vst [vmem:[%s3251_s8 + $0x10] sm:$0xff] %v1579_v63  ;;  %v2580_v7 = vmul.f32 -1.442695, %v1270_v58  ;;  %v1308_v11 = vadd.f32 %v1307_v36, %v3344_v20  ;;  %v1687_v13 = vmul.f32 %v2829_v4, %v3358_v35  ;;  %2832 = vrcp.f32 %v3385_v52 }
 0x1ff   : > { %v1675_v12 = vadd.f32 %v2825_v41, %v1674_v1  ;;  %v1320_v15 = vadd.f32 %v1319_v45, %v3317_v57  ;;  %v1589_v16 = vsel %vm1588_vm13, %v2823_v37, %v1585_v5  ;;  %v1683_v18 = vor.u32 1.1754944e-38, %v1682_v53 }
 0x200   : > { %v1376_v29 = vpop.f32.mrf.mxu2  ;;  %v1695_v19 = vand.u32 2147483647, %v3358_v35  ;;  %v1697_v10 = vand.u32 2147483648, %v3358_v35  ;;  %v2831_v21 = vpop.eup %2830  ;;  %v1594_v22 = vsel %vm3379_vm9, %v1593_v62, %v1589_v16  ;;  %v1688_v24 = vsub.f32 1.0, %v1687_v13 }
 0x201   : > { %v1679_v23 = vsel %vm1678_vm14, %v2825_v41, %v1675_v12  ;;  %2834 = vpow2.f32 %v2580_v7  ;;  %1959 = vst [vmem:[%s3251_s8 + $0x18] sm:$0xff] %v1594_v22  ;;  %v3408_v26 = vadd.f32 1.0, %v2831_v21  ;;  %v1358_v14 = vadd.f32 %v1357_v49, %v3314_v55 }
 0x202   : > { %v1321_v20 = vpop.f32.mrf.mxu3  ;;  %v1684_v25 = vsel %vm3388_vm12, %v1683_v18, %v1679_v23  ;;  %v1689_v17 = vmul.f32 %v2829_v4, %v1688_v24  ;;  %vm1692_vm15 = vweird.f32 %v2829_v4  ;;  %v2581_v27 = vmul.f32 -1.442695, %v1308_v11  ;;  %v1340_v31 = vpop.f32.mrf.mxu0 }
 0x203   : > { %1965 = vst [vmem:[%s3251_s8 + $0x48] sm:$0xff] %v1684_v25  ;;  %v1339_v30 = vadd.f32 %v1338_v50, %v1320_v15  ;;  %vm1691_vm0 = vweird.f32 %v3358_v35  ;;  %vm3413_vm1 = vcmp.eq.f32.partialorder %v1695_v19, 8.507059e+37  ;;  %v1698_v43 = vor.u32 1.1754944e-38, %v1697_v10 }
 0x204   : > { %2836 = vrcp.f32 %v3408_v26  ;;  %v2833_v42 = vpop.eup %2832  ;;  %v1690_v3 = vadd.f32 %v2829_v4, %v1689_v17  ;;  %v1377_v36 = vadd.f32 %v1376_v29, %v1358_v14  ;;  %vm1693_vm2 = vmor %vm1691_vm0, %vm1692_vm15  ;;  %v1785_v33 = vand.u32 2147483647, %v3385_v52 }
 0x205   : > { %2838 = vpow2.f32 %v2581_v27  ;;  %v2561_v34 = vmul.f32 -1.442695, %v1339_v30  ;;  %v1777_v37 = vmul.f32 %v2833_v42, %v3385_v52  ;;  %v1787_v35 = vand.u32 2147483648, %v3385_v52  ;;  %v1362_v7 = vpop.f32.mrf.mxu1 }
 0x206   : > { %v1360_v38 = vadd.f32 %v1359_v8, %v3314_v55  ;;  %v1694_v41 = vsel %vm1693_vm2, %v2829_v4, %v1690_v3  ;;  %v2562_v44 = vmul.f32 -1.442695, %v1377_v36  ;;  %v1322_v2 = vadd.f32 %v1321_v20, %v3317_v57 }
 0x207   : > { %v2835_v40 = vpop.eup %2834  ;;  %2840 = vpow2.f32 %v2561_v34  ;;  %v1699_v45 = vsel %vm3413_vm1, %v1698_v43, %v1694_v41  ;;  %v1778_v47 = vsub.f32 1.0, %v1777_v37  ;;  %vm1781_vm3 = vweird.f32 %v3385_v52 }
 0x208   : > { %v1378_v39 = vpop.f32.mrf.mxu2  ;;  %v3426_v48 = vadd.f32 1.0, %v2835_v40  ;;  %1966 = vst [vmem:[%s3251_s8 + $0x50] sm:$0xff] %v1699_v45  ;;  %v1800_v49 = vand.u32 2147483647, %v3408_v26  ;;  %2842 = vpow2.f32 %v2562_v44  ;;  %v1341_v50 = vadd.f32 %v1340_v31, %v1322_v2 }
 0x209   : > { %v1379_v0 = vadd.f32 %v1378_v39, %v1360_v38  ;;  %v1779_v51 = vmul.f32 %v2833_v42, %v1778_v47  ;;  %vm1782_vm4 = vweird.f32 %v2833_v42  ;;  %vm3432_vm5 = vcmp.eq.f32.partialorder %v1785_v33, 8.507059e+37 }
 0x20a   : > { %v1324_v9 = vpop.f32.mrf.mxu3  ;;  %v2837_v46 = vpop.eup %2836  ;;  %2844 = vrcp.f32 %v3426_v48  ;;  %v1788_v58 = vor.u32 1.1754944e-38, %v1787_v35  ;;  %v2568_v60 = vmul.f32 -1.442695, %v1341_v50  ;;  %v1802_v62 = vand.u32 2147483648, %v3408_v26  ;;  %vm1783_vm6 = vmor %vm1781_vm3, %vm1782_vm4 }
 0x20b   : > { %v1325_v53 = vadd.f32 %v1324_v9, %v3317_v57  ;;  %v2839_v54 = vpop.eup %2838  ;;  %v1792_v59 = vmul.f32 %v2837_v46, %v3408_v26  ;;  %v1780_v61 = vadd.f32 %v2833_v42, %v1779_v51  ;;  %v2569_v1 = vmul.f32 -1.442695, %v1379_v0  ;;  %v1343_v11 = vpop.f32.mrf.mxu0 }
 0x20c   : > { %v3438_v63 = vadd.f32 1.0, %v2839_v54  ;;  %vm1796_vm7 = vweird.f32 %v3408_v26  ;;  %vm3443_vm8 = vcmp.eq.f32.partialorder %v1800_v49, 8.507059e+37  ;;  %2846 = vpow2.f32 %v2568_v60 }
 0x20d   : > { %v2841_v4 = vpop.eup %2840  ;;  %v1793_v5 = vsub.f32 1.0, %v1792_v59  ;;  %v1784_v29 = vsel %vm1783_vm6, %v2833_v42, %v1780_v61  ;;  %v1890_v12 = vand.u32 2147483647, %v3426_v48  ;;  %v1344_v13 = vadd.f32 %v1343_v11, %v1325_v53  ;;  %v1364_v49 = vpop.f32.mrf.mxu1 }
 0x20e   : > { %2848 = vrcp.f32 %v3438_v63  ;;  %v2843_v52 = vpop.eup %2842  ;;  %v1789_v16 = vsel %vm3432_vm5, %v1788_v58, %v1784_v29  ;;  %vm1797_vm9 = vweird.f32 %v2837_v46  ;;  %v3453_v19 = vadd.f32 1.0, %v2841_v4 }
 0x20f   : > { %v1794_v18 = vmul.f32 %v2837_v46, %v1793_v5  ;;  %1972 = vst [vmem:[%s3251_s8 + $0x80] sm:$0xff] %v1789_v16  ;;  %v1803_v20 = vor.u32 1.1754944e-38, %v1802_v62  ;;  %v1892_v21 = vand.u32 2147483648, %v3426_v48  ;;  %v3457_v22 = vadd.f32 1.0, %v2843_v52  ;;  %vm1798_vm10 = vmor %vm1796_vm7, %vm1797_vm9 }
 0x210   : > { %v3449_v15 = vpop.f32.mrf.mxu2  ;;  %v2845_v10 = vpop.eup %2844  ;;  %2850 = vpow2.f32 %v2569_v1  ;;  %v1905_v25 = vand.u32 2147483647, %v3438_v63  ;;  %v3462_v14 = vadd.f32 %v1362_v7, %v3314_v55  ;;  %vm1886_vm11 = vweird.f32 %v3426_v48 }
 0x211   : > { %v1795_v23 = vadd.f32 %v2837_v46, %v1794_v18  ;;  %v1882_v24 = vmul.f32 %v2845_v10, %v3426_v48  ;;  %v1907_v17 = vand.u32 2147483648, %v3438_v63  ;;  %2852 = vrcp.f32 %v3453_v19 }
 0x212   : > { %v2575_v27 = vmul.f32 -1.442695, %v1344_v13  ;;  %v3469_v30 = vpop.f32.mrf.mxu3  ;;  %v2847_v8 = vpop.eup %2846  ;;  %vm3471_vm12 = vcmp.eq.f32.partialorder %v1890_v12, 8.507059e+37  ;;  %2854 = vrcp.f32 %v3457_v22  ;;  %v1893_v3 = vor.u32 1.1754944e-38, %v1892_v21 }
 0x213   : > { %v1799_v31 = vsel %vm1798_vm10, %v2837_v46, %v1795_v23  ;;  %v1883_v32 = vsub.f32 1.0, %v1882_v24  ;;  %vm1901_vm13 = vweird.f32 %v3438_v63  ;;  %v1607_v34 = vand.u32 2147483648, %v3453_v19  ;;  %v3501_v46 = vpop.f32.mrf.mxu0 }
 0x214   : > { %v2849_v26 = vpop.eup %2848  ;;  %v1804_v42 = vsel %vm3443_vm8, %v1803_v20, %v1799_v31  ;;  %vm1887_vm14 = vweird.f32 %v2845_v10  ;;  %vm3482_vm15 = vcmp.eq.f32.partialorder %v1905_v25, 8.507059e+37  ;;  %v1605_v35 = vand.u32 2147483647, %v3453_v19 }
 0x215   : > { %1973 = vst [vmem:[%s3251_s8 + $0x88] sm:$0xff] %v1804_v42  ;;  %v1884_v36 = vmul.f32 %v2845_v10, %v1883_v32  ;;  %v1897_v37 = vmul.f32 %v2849_v26, %v3438_v63  ;;  %v1908_v39 = vor.u32 1.1754944e-38, %v1907_v17  ;;  %v1620_v40 = vand.u32 2147483647, %v3457_v22  ;;  %vm1888_vm0 = vmor %vm1886_vm11, %vm1887_vm14  ;;  %v1419_v32 = vpop.f32.mrf.mxu1 }
 0x216   : > { %v2851_v38 = vpop.eup %2850  ;;  %v3488_v41 = vadd.f32 1.0, %v2847_v8  ;;  %2856 = vpow2.f32 %v2575_v27  ;;  %v1622_v47 = vand.u32 2147483648, %v3457_v22  ;;  %vm1601_vm1 = vweird.f32 %v3453_v19 }
 0x217   : > { %v1885_v2 = vadd.f32 %v2845_v10, %v1884_v36  ;;  %v1898_v45 = vsub.f32 1.0, %v1897_v37  ;;  %v3493_v9 = vadd.f32 1.0, %v2851_v38  ;;  %v2853_v50 = vpop.eup %2852  ;;  %v1608_v0 = vor.u32 1.1754944e-38, %v1607_v34 }
 0x218   : > { %v3490_v44 = vpop.f32.mrf.mxu2  ;;  %vm1616_vm2 = vweird.f32 %v3457_v22  ;;  %2858 = vrcp.f32 %v3488_v41  ;;  %v2855_v51 = vpop.eup %2854  ;;  %vm1902_vm3 = vweird.f32 %v2849_v26  ;;  %v1597_v56 = vmul.f32 %v2853_v50, %v3453_v19 }
 0x219   : > { %v1889_v53 = vsel %vm1888_vm0, %v2845_v10, %v1885_v2  ;;  %v1899_v54 = vmul.f32 %v2849_v26, %v1898_v45  ;;  %vm3504_vm4 = vcmp.eq.f32.partialorder %v1605_v35, 8.507059e+37  ;;  %v1612_v59 = vmul.f32 %v2855_v51, %v3457_v22  ;;  %vm1903_vm6 = vmor %vm1901_vm13, %vm1902_vm3 }
 0x21a   : > { %v1894_v48 = vsel %vm3471_vm12, %v1893_v3, %v1889_v53  ;;  %vm3511_vm5 = vcmp.eq.f32.partialorder %v1620_v40, 8.507059e+37  ;;  %v1365_v61 = vadd.f32 %v1364_v49, %v3314_v55  ;;  %v1598_v1 = vsub.f32 1.0, %v1597_v56  ;;  %v1400_v29 = vpop.f32.mrf.mxu3 }
 0x21b   : > { %1979 = vst [vmem:[%s3251_s8 + $0xb8] sm:$0xff] %v1894_v48  ;;  %v1900_v62 = vadd.f32 %v2849_v26, %v1899_v54  ;;  %v1623_v4 = vor.u32 1.1754944e-38, %v1622_v47  ;;  %2860 = vrcp.f32 %v3493_v9  ;;  %vm1602_vm7 = vweird.f32 %v2853_v50  ;;  %v1414_v34 = vpop.f32.mrf.mxu0 }
 0x21c   : > { %v2857_v5 = vpop.eup %2856  ;;  %v1613_v6 = vsub.f32 1.0, %v1612_v59  ;;  %v1710_v7 = vand.u32 2147483647, %v3488_v41  ;;  %v1712_v11 = vand.u32 2147483648, %v3488_v41  ;;  %v1599_v55 = vmul.f32 %v2853_v50, %v1598_v1  ;;  %vm1603_vm10 = vmor %vm1601_vm1, %vm1602_vm7 }
 0x21d   : > { %v1904_v12 = vsel %vm1903_vm6, %v2849_v26, %v1900_v62  ;;  %vm1706_vm8 = vweird.f32 %v3488_v41  ;;  %v3523_v13 = vadd.f32 1.0, %v2857_v5  ;;  %v1382_v52 = vadd.f32 %v3449_v15, %v3462_v14 }
 0x21e   : > { %v2859_v16 = vpop.eup %2858  ;;  %v1909_v63 = vsel %vm3482_vm15, %v1908_v39, %v1904_v12  ;;  %v1614_v18 = vmul.f32 %v2855_v51, %v1613_v6  ;;  %vm1617_vm9 = vweird.f32 %v2855_v51  ;;  %v1725_v10 = vand.u32 2147483647, %v3493_v9  ;;  %v1421_v6 = vpop.f32.mrf.mxu1 }
 0x21f   : > { %1980 = vst [vmem:[%s3251_s8 + $0xc0] sm:$0xff] %v1909_v63  ;;  %v1600_v21 = vadd.f32 %v2853_v50, %v1599_v55  ;;  %v1702_v23 = vmul.f32 %v2859_v16, %v3488_v41  ;;  %v1727_v24 = vand.u32 2147483648, %v3493_v9  ;;  %2862 = vrcp.f32 %v3523_v13  ;;  %vm1618_vm13 = vmor %vm1616_vm2, %vm1617_vm9 }
 0x220   : > { %v1395_v20 = vpop.f32.mrf.mxu2  ;;  %v1615_v15 = vadd.f32 %v2855_v51, %v1614_v18  ;;  %vm3537_vm11 = vcmp.eq.f32.partialorder %v1710_v7, 8.507059e+37  ;;  %v1713_v14 = vor.u32 1.1754944e-38, %v1712_v11  ;;  %vm1721_vm12 = vweird.f32 %v3493_v9 }
 0x221   : > { %v2861_v17 = vpop.eup %2860  ;;  %v1604_v27 = vsel %vm1603_vm10, %v2853_v50, %v1600_v21  ;;  %v1703_v8 = vsub.f32 1.0, %v1702_v23  ;;  %v2576_v31 = vmul.f32 -1.442695, %v1382_v52  ;;  %v1327_v19 = vadd.f32 %v3469_v30, %v3317_v57 }
 0x222   : > { %v1609_v43 = vsel %vm3504_vm4, %v1608_v0, %v1604_v27  ;;  %v1619_v26 = vsel %vm1618_vm13, %v2855_v51, %v1615_v15  ;;  %v1717_v42 = vmul.f32 %v2861_v17, %v3493_v9  ;;  %vm3550_vm14 = vcmp.eq.f32.partialorder %v1725_v10, 8.507059e+37  ;;  %v1402_v50 = vpop.f32.mrf.mxu3 }
 0x223   : > { %1960 = vst [vmem:[%s3251_s8 + $0x20] sm:$0xff] %v1609_v43  ;;  %v1624_v22 = vsel %vm3511_vm5, %v1623_v4, %v1619_v26  ;;  %v1704_v36 = vmul.f32 %v2859_v16, %v1703_v8  ;;  %vm1707_vm15 = vweird.f32 %v2859_v16  ;;  %v1728_v37 = vor.u32 1.1754944e-38, %v1727_v24 }
 0x224   : > { %1961 = vst [vmem:[%s3251_s8 + $0x28] sm:$0xff] %v1624_v22  ;;  %v1718_v57 = vsub.f32 1.0, %v1717_v42  ;;  %2864 = vpow2.f32 %v2576_v31  ;;  %v1346_v30 = vadd.f32 %v3501_v46, %v1327_v19  ;;  %v1384_v33 = vadd.f32 %v3490_v44, %v1365_v61  ;;  %vm1708_vm0 = vmor %vm1706_vm8, %vm1707_vm15 }
 0x225   : > { %v2863_v35 = vpop.eup %2862  ;;  %v1705_v38 = vadd.f32 %v2859_v16, %v1704_v36  ;;  %v1815_v39 = vand.u32 2147483647, %v3523_v13  ;;  %v1817_v40 = vand.u32 2147483648, %v3523_v13  ;;  %v574_v2 = vperm.slane %v3188_v28, 6 }
 0x226   : > { %v1719_v45 = vmul.f32 %v2861_v17, %v1718_v57  ;;  %vm1722_vm1 = vweird.f32 %v2861_v17  ;;  %v1807_v47 = vmul.f32 %v2863_v35, %v3523_v13  ;;  %v2582_v49 = vmul.f32 -1.442695, %v1346_v30 }
 0x227   : > { %v1709_v0 = vsel %vm1708_vm0, %v2859_v16, %v1705_v38  ;;  %v2583_v44 = vmul.f32 -1.442695, %v1384_v33  ;;  %v1401_v46 = vadd.f32 %v1400_v29, %v574_v2  ;;  %v1396_v51 = vadd.f32 %v1395_v20, %v574_v2  ;;  %vm1723_vm2 = vmor %vm1721_vm12, %vm1722_vm1  ;;  %v1416_v29 = vpop.f32.mrf.mxu0 }
 0x228   : > { %v1397_v53 = vpop.f32.mrf.mxu2  ;;  %v1714_v54 = vsel %vm3537_vm11, %v1713_v14, %v1709_v0  ;;  %v1720_v56 = vadd.f32 %v2861_v17, %v1719_v45  ;;  %v1808_v28 = vsub.f32 1.0, %v1807_v47  ;;  %2866 = vpow2.f32 %v2582_v49 }
 0x229   : > { %1967 = vst [vmem:[%s3251_s8 + $0x58] sm:$0xff] %v1714_v54  ;;  %2868 = vpow2.f32 %v2583_v44  ;;  %v1420_v41 = vadd.f32 %v1419_v32, %v1401_v46  ;;  %v1415_v58 = vadd.f32 %v1414_v34, %v1396_v51  ;;  %v1403_v48 = vadd.f32 %v1402_v50, %v574_v2 }
 0x22a   : > { %v2865_v59 = vpop.eup %2864  ;;  %v1724_v60 = vsel %vm1723_vm2, %v2861_v17, %v1720_v56  ;;  %v1809_v61 = vmul.f32 %v2863_v35, %v1808_v28  ;;  %vm1812_vm3 = vweird.f32 %v2863_v35  ;;  %v1398_v62 = vadd.f32 %v1397_v53, %v574_v2 }
 0x22b   : > { %v1729_v1 = vsel %vm3550_vm14, %v1728_v37, %v1724_v60  ;;  %v1527_v4 = vadd.f32 1.0, %v2865_v59  ;;  %v2577_v5 = vmul.f32 -1.442695, %v1420_v41  ;;  %vm1811_vm4 = vweird.f32 %v3523_v13 }
 0x22c   : > { %1968 = vst [vmem:[%s3251_s8 + $0x60] sm:$0xff] %v1729_v1  ;;  %v1810_v7 = vadd.f32 %v2863_v35, %v1809_v61  ;;  %v2563_v9 = vmul.f32 -1.442695, %v1415_v58  ;;  %v1422_v11 = vadd.f32 %v1421_v6, %v1403_v48  ;;  %vm1813_vm5 = vmor %vm1811_vm4, %vm1812_vm3  ;;  %v1818_v12 = vor.u32 1.1754944e-38, %v1817_v40 }
 0x22d   : > { %2870 = vrcp.f32 %v1527_v4  ;;  %v1417_v55 = vadd.f32 %v1416_v29, %v1398_v62  ;;  %vm1816_vm6 = vcmp.eq.f32.partialorder %v1815_v39, 8.507059e+37  ;;  %v1830_v25 = vand.u32 2147483647, %v1527_v4 }
 0x22e   : > { %v2867_v52 = vpop.eup %2866  ;;  %v1814_v16 = vsel %vm1813_vm5, %v2863_v35, %v1810_v7  ;;  %2872 = vpow2.f32 %v2577_v5  ;;  %v2584_v20 = vmul.f32 -1.442695, %v1422_v11  ;;  %v1832_v14 = vand.u32 2147483648, %v1527_v4 }
 0x22f   : > { %v2869_v63 = vpop.eup %2868  ;;  %v1819_v18 = vsel %vm1816_vm6, %v1818_v12, %v1814_v16  ;;  %v1533_v10 = vadd.f32 1.0, %v2867_v52  ;;  %2874 = vpow2.f32 %v2563_v9  ;;  %v2570_v13 = vmul.f32 -1.442695, %v1417_v55 }
 0x230   : > { %1974 = vst [vmem:[%s3251_s8 + $0x90] sm:$0xff] %v1819_v18  ;;  %v1534_v21 = vadd.f32 1.0, %v2869_v63  ;;  %vm1826_vm7 = vweird.f32 %v1527_v4  ;;  %vm3581_vm9 = vcmp.eq.f32.partialorder %v1830_v25, 8.507059e+37  ;;  %v1833_v34 = vor.u32 1.1754944e-38, %v1832_v14 }
 0x231   : > { %2876 = vrcp.f32 %v1533_v10  ;;  %v1920_v22 = vand.u32 2147483647, %v1533_v10  ;;  %v1922_v30 = vand.u32 2147483648, %v1533_v10  ;;  %vm1916_vm12 = vweird.f32 %v1533_v10 }
 0x232   : > { %2878 = vrcp.f32 %v1534_v21  ;;  %v1935_v38 = vand.u32 2147483647, %v1534_v21  ;;  %v1937_v39 = vand.u32 2147483648, %v1534_v21  ;;  %vm1931_vm14 = vweird.f32 %v1534_v21 }
 0x233   : > { %v2871_v23 = vpop.eup %2870  ;;  %2880 = vpow2.f32 %v2584_v20  ;;  %vm1921_vm0 = vcmp.eq.f32.partialorder %v1920_v22, 8.507059e+37  ;;  %v1923_v51 = vor.u32 1.1754944e-38, %v1922_v30 }
 0x234   : > { %v2873_v24 = vpop.eup %2872  ;;  %v1822_v15 = vmul.f32 %v2871_v23, %v1527_v4  ;;  %2882 = vpow2.f32 %v2570_v13  ;;  %vm1827_vm8 = vweird.f32 %v2871_v23  ;;  %vm1936_vm1 = vcmp.eq.f32.partialorder %v1935_v38, 8.507059e+37 }
 0x235   : > { %v3576_v17 = vadd.f32 1.0, %v2873_v24  ;;  %v2875_v27 = vpop.eup %2874  ;;  %vm1828_vm10 = vmor %vm1826_vm7, %vm1827_vm8  ;;  %v1938_v28 = vor.u32 1.1754944e-38, %v1937_v39 }
 0x236   : > { %v1823_v8 = vsub.f32 1.0, %v1822_v15  ;;  %v3579_v26 = vadd.f32 1.0, %v2875_v27 }
 0x237   : > { %v2877_v31 = vpop.eup %2876  ;;  %2884 = vrcp.f32 %v3576_v17  ;;  %v1847_v59 = vand.u32 2147483648, %v3576_v17  ;;  %v1845_v1 = vand.u32 2147483647, %v3576_v17  ;;  %vm1841_vm4 = vweird.f32 %v3576_v17 }
 0x238   : > { %v2879_v19 = vpop.eup %2878  ;;  %v1824_v32 = vmul.f32 %v2871_v23, %v1823_v8  ;;  %v1912_v43 = vmul.f32 %v2877_v31, %v1533_v10  ;;  %2886 = vrcp.f32 %v3579_v26  ;;  %vm1917_vm11 = vweird.f32 %v2877_v31 }
 0x239   : > { %v2881_v42 = vpop.eup %2880  ;;  %v1927_v36 = vmul.f32 %v2879_v19, %v1534_v21  ;;  %vm1932_vm13 = vweird.f32 %v2879_v19  ;;  %vm1918_vm15 = vmor %vm1916_vm12, %vm1917_vm11  ;;  %v1635_v7 = vand.u32 2147483647, %v3579_v26  ;;  %v1637_v9 = vand.u32 2147483648, %v3579_v26 }
 0x23a   : > { %v1825_v37 = vadd.f32 %v2871_v23, %v1824_v32  ;;  %v1913_v57 = vsub.f32 1.0, %v1912_v43  ;;  %v2883_v33 = vpop.eup %2882  ;;  %v3587_v40 = vadd.f32 1.0, %v2881_v42  ;;  %vm1933_vm2 = vmor %vm1931_vm14, %vm1932_vm13  ;;  %v1848_v11 = vor.u32 1.1754944e-38, %v1847_v59 }
 0x23b   : > { %v1928_v35 = vsub.f32 1.0, %v1927_v36  ;;  %v3589_v47 = vadd.f32 1.0, %v2883_v33  ;;  %vm1846_vm7 = vcmp.eq.f32.partialorder %v1845_v1, 8.507059e+37  ;;  %vm1631_vm8 = vweird.f32 %v3579_v26 }
 0x23c   : > { %v1829_v2 = vsel %vm1828_vm10, %v2871_v23, %v1825_v37  ;;  %v1914_v45 = vmul.f32 %v2877_v31, %v1913_v57  ;;  %2888 = vrcp.f32 %v3587_v40  ;;  %vm1636_vm10 = vcmp.eq.f32.partialorder %v1635_v7, 8.507059e+37 }
 0x23d   : > { %v2885_v49 = vpop.eup %2884  ;;  %v1834_v50 = vsel %vm3581_vm9, %v1833_v34, %v1829_v2  ;;  %v1929_v0 = vmul.f32 %v2879_v19, %v1928_v35  ;;  %2890 = vrcp.f32 %v3589_v47  ;;  %v1638_v20 = vor.u32 1.1754944e-38, %v1637_v9 }
 0x23e   : > { %1975 = vst [vmem:[%s3251_s8 + $0x98] sm:$0xff] %v1834_v50  ;;  %v1915_v44 = vadd.f32 %v2877_v31, %v1914_v45  ;;  %v1837_v46 = vmul.f32 %v2885_v49, %v3576_v17  ;;  %v2887_v54 = vpop.eup %2886  ;;  %vm1842_vm3 = vweird.f32 %v2885_v49  ;;  %v1950_v21 = vand.u32 2147483647, %v3587_v40 }
 0x23f   : > { %v1930_v53 = vadd.f32 %v2879_v19, %v1929_v0  ;;  %v1627_v60 = vmul.f32 %v2887_v54, %v3579_v26  ;;  %vm1843_vm5 = vmor %vm1841_vm4, %vm1842_vm3  ;;  %vm1632_vm6 = vweird.f32 %v2887_v54  ;;  %v1952_v13 = vand.u32 2147483648, %v3587_v40 }
 0x240   : > { %v1919_v56 = vsel %vm1918_vm15, %v2877_v31, %v1915_v44  ;;  %v1838_v41 = vsub.f32 1.0, %v1837_v46  ;;  %vm1633_vm9 = vmor %vm1631_vm8, %vm1632_vm6  ;;  %vm1946_vm12 = vweird.f32 %v3587_v40  ;;  %v1742_v14 = vand.u32 2147483648, %v3589_v47 }
 0x241   : > { %v1924_v58 = vsel %vm1921_vm0, %v1923_v51, %v1919_v56  ;;  %v1934_v48 = vsel %vm1933_vm2, %v2879_v19, %v1930_v53  ;;  %v1628_v4 = vsub.f32 1.0, %v1627_v60  ;;  %v1740_v8 = vand.u32 2147483647, %v3589_v47 }
 0x242   : > { %1981 = vst [vmem:[%s3251_s8 + $0xc8] sm:$0xff] %v1924_v58  ;;  %v1939_v61 = vsel %vm1936_vm1, %v1938_v28, %v1934_v48  ;;  %v1839_v62 = vmul.f32 %v2885_v49, %v1838_v41  ;;  %v2889_v5 = vpop.eup %2888  ;;  %v1953_v31 = vor.u32 1.1754944e-38, %v1952_v13  ;;  %vm1951_vm15 = vcmp.eq.f32.partialorder %v1950_v21, 8.507059e+37 }
 0x243   : > { %1982 = vst [vmem:[%s3251_s8 + $0xd0] sm:$0xff] %v1939_v61  ;;  %v1629_v29 = vmul.f32 %v2887_v54, %v1628_v4  ;;  %v1942_v12 = vmul.f32 %v2889_v5, %v3587_v40  ;;  %v2891_v55 = vpop.eup %2890  ;;  %vm1947_vm11 = vweird.f32 %v2889_v5  ;;  %vm1736_vm0 = vweird.f32 %v3589_v47 }
 0x244   : > { %v1840_v6 = vadd.f32 %v2885_v49, %v1839_v62  ;;  %v1732_v10 = vmul.f32 %v2891_v55, %v3589_v47  ;;  %vm1737_vm13 = vweird.f32 %v2891_v55  ;;  %vm1948_vm14 = vmor %vm1946_vm12, %vm1947_vm11  ;;  %v1743_v26 = vor.u32 1.1754944e-38, %v1742_v14 }
 0x245   : > { %v1630_v63 = vadd.f32 %v2887_v54, %v1629_v29  ;;  %v1943_v18 = vsub.f32 1.0, %v1942_v12  ;;  %vm1738_vm1 = vmor %vm1736_vm0, %vm1737_vm13  ;;  %vm1741_vm2 = vcmp.eq.f32.partialorder %v1740_v8, 8.507059e+37 }
 0x246   : > { %v1844_v52 = vsel %vm1843_vm5, %v2885_v49, %v1840_v6  ;;  %v1733_v15 = vsub.f32 1.0, %v1732_v10 }
 0x247   : > { %v1849_v16 = vsel %vm1846_vm7, %v1848_v11, %v1844_v52  ;;  %v1634_v23 = vsel %vm1633_vm9, %v2887_v54, %v1630_v63  ;;  %v1944_v24 = vmul.f32 %v2889_v5, %v1943_v18 }
 0x248   : > { %1976 = vst [vmem:[%s3251_s8 + $0xa0] sm:$0xff] %v1849_v16  ;;  %v1639_v25 = vsel %vm1636_vm10, %v1638_v20, %v1634_v23  ;;  %v1734_v27 = vmul.f32 %v2891_v55, %v1733_v15 }
 0x249   : > { %1962 = vst [vmem:[%s3251_s8 + $0x30] sm:$0xff] %v1639_v25  ;;  %v1945_v17 = vadd.f32 %v2889_v5, %v1944_v24 }
 0x24a   : > { %v1735_v32 = vadd.f32 %v2891_v55, %v1734_v27 }
 0x24b   : > { %v1949_v19 = vsel %vm1948_vm14, %v2889_v5, %v1945_v17 }
 0x24c   : > { %v1954_v43 = vsel %vm1951_vm15, %v1953_v31, %v1949_v19  ;;  %v1739_v42 = vsel %vm1738_vm1, %v2891_v55, %v1735_v32 }
 0x24d   : > { %1983 = vst [vmem:[%s3251_s8 + $0xd8] sm:$0xff] %v1954_v43  ;;  %v1744_v3 = vsel %vm1741_vm2, %v1743_v26, %v1739_v42 }
 0x24e   : > { %1969 = vst [vmem:[%s3251_s8 + $0x68] sm:$0xff] %v1744_v3 }
 0x24f   : > { %2949 = shalt.err (!%p2946_p8)
}
 0x250   : > { %s2993_s23 = smov 896   ;;  %s2994_s8 = smov 56  }
 0x251   : > { %2729 = dma.vmem_to_hbm [thread:$0]  (%p3073_p5), %s1999_s15, 3584, %s2001_s16, %s1985_s17, %s2993_s23, %s2993_s23, %s2994_s8  }
 0x252 PF: > { %p2741_p9 = scmp.ge.s32.totalorder %s2988_s27, 2  ;;  %s2015_s28 = sand.u32 1, %s2976_s24  }
 0x253   : > { %s2016_s13 = scalar_lea.sflag [#allocation4], %s2015_s28 }
 0x254   : > { %p2736_p10 = pnand %p2741_p9, %p3077_p6 }
 0x256   : > { %p2737_p11 = pneg %p2736_p10 }
 0x258   : > { %2971 = dma.done.wait (%p2737_p11), %s2016_s13, 3584  }
 0x259   : > { %2973 = vsyncadd (%p2737_p11), %s2016_s13, 4294963712  ;;  %p18_p12 = scmp.ge.s32.totalorder %s3060_s30, 4   ;;  %s3702_s24 = smov %s2980_s25 }
 0x25a   : > { %s3703_s25 = smov %s2984_s26  ;;  %s3704_s26 = smov %s3071_s10 }
 0x25b   : > { %s3705_s27 = smov %s3060_s30  ;;  %20 = sbr.rel (!%p18_p12) target bundleno = 4 (0x4), region = 88 }
 0x260   :  { %2022 = vsyncpa [#allocation3], 1 }
 0x261   :  { %2024 = vsyncpa [#allocation3 + $0x1], 1 }
 0x262   :  { %2025 = vsyncpa [#allocation4], 1 }
 0x263   :  { %2027 = vsyncpa [#allocation4 + $0x1], 1 }

</bundles_post_ra>
